<compile_context>
chip_gen: v5e
topology: v5e:2x2
jax: 0.10.0
libtpu: 0.0.40
codegen_flags: <defaults>
</compile_context>

<pallas_src>
import functools

import jax
import jax.numpy as jnp
import numpy as np
from jax.experimental import pallas as pl
from jax.experimental.pallas import tpu as pltpu


def _categorical_loss_kernel(qp_ref, qt_ref, scal_ref, coef_ref,
                             mag_ref, loss_ref, *,
                             num_atoms, tile_rows, sub_rows):
    """One row tile: project q_target onto the atom grid, reduce to mag & loss.

    qp_ref, qt_ref : (A, tile_rows)  atoms on sublanes, rows on lanes
    scal_ref       : (3, tile_rows)  [alpha, ends, is_weights/batch]
    coef_ref       : (A, 1)          gamma^n * atoms / delta_z
    mag_ref        : (1, tile_rows)  per-row cross-entropy (lane-dense)
    loss_ref       : (1, 1, 1)       per-tile partial loss
    """
    b_max = float(num_atoms - 1)
    num_chunks = tile_rows // sub_rows

    # Hoisted once per tile: per-source-atom slope, lane-broadcast.
    coef_b = jnp.broadcast_to(coef_ref[...], (num_atoms, sub_rows))   # (A, SR)

    wsum = jnp.zeros((1, sub_rows), jnp.float32)   # weighted-loss lane partials
    for c in range(num_chunks):                    # static -> static lane slices
        cols = pl.ds(c * sub_rows, sub_rows)

        alpha = scal_ref[pl.ds(0, 1), cols]        # (1, SR) (returns - v_min)/dz
        beta = scal_ref[pl.ds(1, 1), cols]         # (1, SR) ends
        isw = scal_ref[pl.ds(2, 1), cols]          # (1, SR) is_weights / batch

        qt = qt_ref[:, cols]                       # (A, SR) normalized targets
        # Clipped projected position of every source atom for these rows.
        b = jnp.clip(alpha + coef_b * beta, 0.0, b_max)               # (A, SR)

        mag = jnp.zeros((1, sub_rows), jnp.float32)
        for d in range(num_atoms):                 # unrolled; d is a splat const
            # Triangle ("hat") weight == the reference floor/ceil scatter-add.
            w = jnp.maximum(1.0 - jnp.abs(b - float(d)), 0.0)         # (A, SR)
            m_d = jnp.sum(qt * w, axis=0, keepdims=True)              # (1, SR)
            mag = mag - qp_ref[pl.ds(d, 1), cols] * m_d

        mag_ref[:, cols] = mag                     # lane-dense full-width store
        wsum = wsum + isw * mag

    loss_ref[0] = jnp.sum(wsum, keepdims=True)     # (1, 1) per-tile partial


def categorical_loss(q_pred, q_target, ends, returns, is_weights,
                     atoms_base, gamma, n, *, tile_rows=1024,
                     core_parallel=False):
    """Pallas implementation of CategoricalLoss.forward.

    q_pred, q_target: (batch, *, A); ends, returns, is_weights: (batch, *).
    atoms_base must be concrete host values (module constant).
    Returns (magnitudes of shape (batch, *), scalar loss).
    Set core_parallel=True on v7x to split the tile grid across both TensorCores.
    """
    atoms_np = np.asarray(atoms_base, dtype=np.float64)   # compile-time constants
    num_atoms = int(atoms_np.shape[0])
    v_min = float(atoms_np[0])
    delta_z = float((atoms_np[-1] - atoms_np[0]) / (num_atoms - 1))
    disc = float(gamma) ** int(n)
    coef_np = (disc * atoms_np / delta_z).astype(np.float32).reshape(num_atoms, 1)

    lead_shape = q_pred.shape[:-1]
    batch_size = int(q_pred.shape[0])
    n_rows = int(np.prod(lead_shape))
    a = num_atoms

    # Transposed compute layout: atoms on sublanes, rows on lanes.
    qp = jnp.transpose(q_pred.reshape(n_rows, a).astype(jnp.float32))    # (A, N)
    qt = jnp.transpose(q_target.reshape(n_rows, a).astype(jnp.float32))  # (A, N)
    ends_f = ends.reshape(n_rows).astype(jnp.float32)
    returns_f = returns.reshape(n_rows).astype(jnp.float32)
    isw_f = is_weights.reshape(n_rows).astype(jnp.float32)

    alpha = (returns_f - v_min) / delta_z
    scal = jnp.stack([alpha, ends_f, isw_f / batch_size], axis=0)        # (3, N)
    coef = jnp.asarray(coef_np)                                          # (A, 1)

    # --- tile sizing: big tiles for step-overhead amortization, but keep the
    # grid >= 2 tiles when there is enough work (v7x megacore). 128-lane chunks
    # inside the kernel keep live vregs well under 64. ---
    lane = 128
    tile_rows = max(lane, (int(tile_rows) // lane) * lane)
    n_pad_lane = ((n_rows + lane - 1) // lane) * lane
    if n_pad_lane <= tile_rows:
        if n_pad_lane >= 2 * lane:
            tile_rows = ((n_pad_lane // 2 + lane - 1) // lane) * lane    # 2 tiles
        else:
            tile_rows = lane                                             # tiny input
    elif n_pad_lane <= 2 * tile_rows:
        tile_rows = ((pl.cdiv(n_pad_lane, 2) + lane - 1) // lane) * lane  # even split

    n_pad = pl.cdiv(n_rows, tile_rows) * tile_rows
    pad = n_pad - n_rows
    if pad:
        # Padded rows: q_target == 0 and is_weights == 0 -> contribute nothing.
        qp = jnp.pad(qp, ((0, 0), (0, pad)))
        qt = jnp.pad(qt, ((0, 0), (0, pad)))
        scal = jnp.pad(scal, ((0, 0), (0, pad)))
    num_tiles = n_pad // tile_rows

    kernel = functools.partial(
        _categorical_loss_kernel, num_atoms=a,
        tile_rows=tile_rows, sub_rows=lane)

    sem = pltpu.CORE_PARALLEL if core_parallel else "parallel"

    mag_padded, loss_partials = pl.pallas_call(
        kernel,
        out_shape=(jax.ShapeDtypeStruct((1, n_pad), jnp.float32),
                   jax.ShapeDtypeStruct((num_tiles, 1, 1), jnp.float32)),
        grid_spec=pltpu.PrefetchScalarGridSpec(
            num_scalar_prefetch=0,
            grid=(num_tiles,),
            in_specs=[
                pl.BlockSpec((a, tile_rows), lambda i: (0, i)),   # q_pred   (A,N)
                pl.BlockSpec((a, tile_rows), lambda i: (0, i)),   # q_target (A,N)
                pl.BlockSpec((3, tile_rows), lambda i: (0, i)),   # scalars  (3,N)
                pl.BlockSpec((a, 1), lambda i: (0, 0)),           # atom coefs
            ],
            out_specs=[
                pl.BlockSpec((1, tile_rows), lambda i: (0, i)),   # magnitudes
                pl.BlockSpec((1, 1, 1), lambda i: (i, 0, 0)),     # loss partials
            ],
        ),
        compiler_params=pltpu.CompilerParams(
            dimension_semantics=(sem,)),            # independent tiles
        cost_estimate=pl.CostEstimate(
            flops=int(7 * a * a * n_pad),
            transcendentals=0,
            bytes_accessed=int((2 * a + 4) * 4 * n_pad)),
    )(qp, qt, scal, coef)

    magnitudes = mag_padded[0, :n_rows].reshape(lead_shape)
    loss = jnp.sum(loss_partials)                  # isw already scaled by 1/batch
    return magnitudes, loss


def _reference(q_pred, q_target, ends, returns, is_weights,
               atoms_base, gamma, n):
    """Pure NumPy replica of the PyTorch forward, for verification."""
    q_pred = np.asarray(q_pred, np.float32)
    q_target = np.asarray(q_target, np.float32)
    ends = np.asarray(ends, np.float32)
    returns = np.asarray(returns, np.float32)
    is_weights = np.asarray(is_weights, np.float32)
    atoms_base = np.asarray(atoms_base, np.float32)

    a = atoms_base.shape[0]
    v_min = np.float32(atoms_base[0])
    delta_z = np.float32((atoms_base[-1] - v_min) / (a - 1))
    atoms_disc = np.float32(gamma ** n) * atoms_base

    tau = returns[..., None] + ends[..., None] * atoms_disc
    b = np.clip((tau - v_min) / delta_z, 0, a - 1)
    fl = np.floor(b).astype(np.int64)
    ce = np.ceil(b).astype(np.int64)

    lead = q_target.shape[:-1]
    qt = q_target.reshape(-1, a)
    qp = q_pred.reshape(-1, a)
    bb = b.reshape(-1, a)
    fl = fl.reshape(-1, a)
    ce = ce.reshape(-1, a)

    m = np.zeros_like(qt)
    for i in range(qt.shape[0]):
        np.add.at(m[i], fl[i], qt[i] * (ce[i] - bb[i]))
        np.add.at(m[i], ce[i], qt[i] * (bb[i] - fl[i]))
        np.add.at(m[i], fl[i], qt[i] * (fl[i] == ce[i]).astype(np.float32))

    magnitudes = -np.sum(m * qp, axis=-1).reshape(lead)
    loss = np.sum(is_weights * magnitudes) / magnitudes.shape[0]
    return magnitudes, loss


def _make_inputs(key, shape, num_atoms):
    k1, k2, k3, k4, k5 = jax.random.split(key, 5)
    q_pred = jax.nn.log_softmax(
        jax.random.normal(k1, shape + (num_atoms,), dtype=jnp.float32), axis=-1)
    q_target = jax.nn.softmax(
        jax.random.normal(k2, shape + (num_atoms,), dtype=jnp.float32), axis=-1)
    ends = (jax.random.uniform(k3, shape) > 0.3).astype(jnp.float32)
    returns = 2.0 * jax.random.normal(k4, shape, dtype=jnp.float32)
    is_weights = jax.random.uniform(k5, shape, dtype=jnp.float32) + 0.5
    return q_pred, q_target, ends, returns, is_weights


if __name__ == "__main__":
    A = 51
    gamma, n_step = 0.99, 3
    # Host-side atom positions (module constant) -> no device sync at trace time.
    atoms_base = np.linspace(-10.0, 10.0, A, dtype=np.float32)

    key = jax.random.PRNGKey(0)
    k_small, k_big = jax.random.split(key)

    # Test 1: small (batch=4, seq=3) -> single tile, heavy lane padding.
    inputs = _make_inputs(k_small, (4, 3), A)
    mag, loss = categorical_loss(*inputs, atoms_base, gamma, n_step)
    (mag, loss) = jax.block_until_ready((mag, loss))
    ref_mag, ref_loss = _reference(*inputs, atoms_base, gamma, n_step)
    np.testing.assert_allclose(np.asarray(mag), ref_mag, rtol=1e-3, atol=1e-3)
    np.testing.assert_allclose(float(loss), float(ref_loss), rtol=1e-3, atol=1e-3)

    # Test 2: (batch=8, seq=37) -> 296 rows -> 2 grid tiles + padded tail.
    inputs2 = _make_inputs(k_big, (8, 37), A)
    mag2, loss2 = categorical_loss(*inputs2, atoms_base, gamma, n_step)
    (mag2, loss2) = jax.block_until_ready((mag2, loss2))
    ref_mag2, ref_loss2 = _reference(*inputs2, atoms_base, gamma, n_step)
    np.testing.assert_allclose(np.asarray(mag2), ref_mag2, rtol=1e-3, atol=1e-3)
    np.testing.assert_allclose(float(loss2), float(ref_loss2), rtol=1e-3, atol=1e-3)

    print("KERNEL_OK")
</pallas_src>

<mosaic_0001>
module attributes {stable_mosaic.version = 11 : i64} {
  func.func @_categorical_loss_kernel(%arg0: i32, %arg1: memref<51x128xf32, #tpu.memory_space<vmem>>, %arg2: memref<51x128xf32, #tpu.memory_space<vmem>>, %arg3: memref<3x128xf32, #tpu.memory_space<vmem>>, %arg4: memref<51x1xf32, #tpu.memory_space<vmem>>, %arg5: memref<1x128xf32, #tpu.memory_space<vmem>>, %arg6: memref<1x1x1xf32, #tpu.memory_space<vmem>>) attributes {dimension_semantics = [#tpu.dimension_semantics<parallel>], iteration_bounds = array<i64: 1>, scalar_prefetch = 0 : i64, scratch_operands = 0 : i64, tpu.core_type = #tpu.core_type<tc>, window_params = [{transform_indices = @transform_0, window_bounds = array<i64: 51, 128>}, {transform_indices = @transform_1, window_bounds = array<i64: 51, 128>}, {transform_indices = @transform_2, window_bounds = array<i64: 3, 128>}, {pipeline_mode = #tpu.pipeline_mode<synchronous>, transform_indices = @transform_3, window_bounds = array<i64: 51, 1>}, {transform_indices = @transform_4, window_bounds = array<i64: 1, 128>}, {transform_indices = @transform_5, window_bounds = array<i64: 1, 1, 1>}]} {
    %c0 = arith.constant 0 : index
    %c0_0 = arith.constant 0 : index
    %0 = vector.load %arg4[%c0, %c0_0] : memref<51x1xf32, #tpu.memory_space<vmem>>, vector<51x1xf32>
    %1 = vector.shape_cast %0 : vector<51x1xf32> to vector<51x1xf32>
    %2 = vector.broadcast %1 : vector<51x1xf32> to vector<51x128xf32>
    %cst = arith.constant 0.000000e+00 : f32
    %3 = vector.broadcast %cst : f32 to vector<1x128xf32>
    %c0_1 = arith.constant 0 : index
    %c0_2 = arith.constant 0 : index
    %4 = vector.load %arg3[%c0_1, %c0_2] : memref<3x128xf32, #tpu.memory_space<vmem>>, vector<1x128xf32>
    %c1 = arith.constant 1 : index
    %c0_3 = arith.constant 0 : index
    %5 = vector.load %arg3[%c1, %c0_3] : memref<3x128xf32, #tpu.memory_space<vmem>>, vector<1x128xf32>
    %c2 = arith.constant 2 : index
    %c0_4 = arith.constant 0 : index
    %6 = vector.load %arg3[%c2, %c0_4] : memref<3x128xf32, #tpu.memory_space<vmem>>, vector<1x128xf32>
    %c0_5 = arith.constant 0 : index
    %c0_6 = arith.constant 0 : index
    %7 = vector.load %arg2[%c0_5, %c0_6] : memref<51x128xf32, #tpu.memory_space<vmem>>, vector<51x128xf32>
    %8 = vector.broadcast %5 : vector<1x128xf32> to vector<51x128xf32>
    %9 = arith.mulf %2, %8 : vector<51x128xf32>
    %10 = vector.broadcast %4 : vector<1x128xf32> to vector<51x128xf32>
    %11 = arith.addf %10, %9 : vector<51x128xf32>
    %cst_7 = arith.constant 0.000000e+00 : f32
    %cst_8 = arith.constant 5.000000e+01 : f32
    %12 = vector.broadcast %cst_7 : f32 to vector<51x128xf32>
    %13 = arith.maximumf %12, %11 : vector<51x128xf32>
    %14 = vector.broadcast %cst_8 : f32 to vector<51x128xf32>
    %15 = arith.minimumf %14, %13 : vector<51x128xf32>
    %cst_9 = arith.constant 0.000000e+00 : f32
    %16 = vector.broadcast %cst_9 : f32 to vector<1x128xf32>
    %cst_10 = arith.constant 0.000000e+00 : f32
    %17 = vector.broadcast %cst_10 : f32 to vector<51x128xf32>
    %18 = arith.subf %15, %17 : vector<51x128xf32>
    %19 = math.absf %18 : vector<51x128xf32>
    %cst_11 = arith.constant 1.000000e+00 : f32
    %20 = vector.broadcast %cst_11 : f32 to vector<51x128xf32>
    %21 = arith.subf %20, %19 : vector<51x128xf32>
    %cst_12 = arith.constant 0.000000e+00 : f32
    %22 = vector.broadcast %cst_12 : f32 to vector<51x128xf32>
    %23 = arith.maximumf %21, %22 : vector<51x128xf32>
    %24 = arith.mulf %7, %23 : vector<51x128xf32>
    %cst_13 = arith.constant dense<0.000000e+00> : vector<128xf32>
    %25 = vector.multi_reduction <add>, %24, %cst_13 [0] : vector<51x128xf32> to vector<128xf32>
    %26 = vector.shape_cast %25 : vector<128xf32> to vector<1x128xf32>
    %c0_14 = arith.constant 0 : index
    %c0_15 = arith.constant 0 : index
    %27 = vector.load %arg1[%c0_14, %c0_15] : memref<51x128xf32, #tpu.memory_space<vmem>>, vector<1x128xf32>
    %28 = arith.mulf %27, %26 : vector<1x128xf32>
    %29 = arith.subf %16, %28 : vector<1x128xf32>
    %cst_16 = arith.constant 1.000000e+00 : f32
    %30 = vector.broadcast %cst_16 : f32 to vector<51x128xf32>
    %31 = arith.subf %15, %30 : vector<51x128xf32>
    %32 = math.absf %31 : vector<51x128xf32>
    %cst_17 = arith.constant 1.000000e+00 : f32
    %33 = vector.broadcast %cst_17 : f32 to vector<51x128xf32>
    %34 = arith.subf %33, %32 : vector<51x128xf32>
    %cst_18 = arith.constant 0.000000e+00 : f32
    %35 = vector.broadcast %cst_18 : f32 to vector<51x128xf32>
    %36 = arith.maximumf %34, %35 : vector<51x128xf32>
    %37 = arith.mulf %7, %36 : vector<51x128xf32>
    %cst_19 = arith.constant dense<0.000000e+00> : vector<128xf32>
    %38 = vector.multi_reduction <add>, %37, %cst_19 [0] : vector<51x128xf32> to vector<128xf32>
    %39 = vector.shape_cast %38 : vector<128xf32> to vector<1x128xf32>
    %c1_20 = arith.constant 1 : index
    %c0_21 = arith.constant 0 : index
    %40 = vector.load %arg1[%c1_20, %c0_21] : memref<51x128xf32, #tpu.memory_space<vmem>>, vector<1x128xf32>
    %41 = arith.mulf %40, %39 : vector<1x128xf32>
    %42 = arith.subf %29, %41 : vector<1x128xf32>
    %cst_22 = arith.constant 2.000000e+00 : f32
    %43 = vector.broadcast %cst_22 : f32 to vector<51x128xf32>
    %44 = arith.subf %15, %43 : vector<51x128xf32>
    %45 = math.absf %44 : vector<51x128xf32>
    %cst_23 = arith.constant 1.000000e+00 : f32
    %46 = vector.broadcast %cst_23 : f32 to vector<51x128xf32>
    %47 = arith.subf %46, %45 : vector<51x128xf32>
    %cst_24 = arith.constant 0.000000e+00 : f32
    %48 = vector.broadcast %cst_24 : f32 to vector<51x128xf32>
    %49 = arith.maximumf %47, %48 : vector<51x128xf32>
    %50 = arith.mulf %7, %49 : vector<51x128xf32>
    %cst_25 = arith.constant dense<0.000000e+00> : vector<128xf32>
    %51 = vector.multi_reduction <add>, %50, %cst_25 [0] : vector<51x128xf32> to vector<128xf32>
    %52 = vector.shape_cast %51 : vector<128xf32> to vector<1x128xf32>
    %c2_26 = arith.constant 2 : index
    %c0_27 = arith.constant 0 : index
    %53 = vector.load %arg1[%c2_26, %c0_27] : memref<51x128xf32, #tpu.memory_space<vmem>>, vector<1x128xf32>
    %54 = arith.mulf %53, %52 : vector<1x128xf32>
    %55 = arith.subf %42, %54 : vector<1x128xf32>
    %cst_28 = arith.constant 3.000000e+00 : f32
    %56 = vector.broadcast %cst_28 : f32 to vector<51x128xf32>
    %57 = arith.subf %15, %56 : vector<51x128xf32>
    %58 = math.absf %57 : vector<51x128xf32>
    %cst_29 = arith.constant 1.000000e+00 : f32
    %59 = vector.broadcast %cst_29 : f32 to vector<51x128xf32>
    %60 = arith.subf %59, %58 : vector<51x128xf32>
    %cst_30 = arith.constant 0.000000e+00 : f32
    %61 = vector.broadcast %cst_30 : f32 to vector<51x128xf32>
    %62 = arith.maximumf %60, %61 : vector<51x128xf32>
    %63 = arith.mulf %7, %62 : vector<51x128xf32>
    %cst_31 = arith.constant dense<0.000000e+00> : vector<128xf32>
    %64 = vector.multi_reduction <add>, %63, %cst_31 [0] : vector<51x128xf32> to vector<128xf32>
    %65 = vector.shape_cast %64 : vector<128xf32> to vector<1x128xf32>
    %c3 = arith.constant 3 : index
    %c0_32 = arith.constant 0 : index
    %66 = vector.load %arg1[%c3, %c0_32] : memref<51x128xf32, #tpu.memory_space<vmem>>, vector<1x128xf32>
    %67 = arith.mulf %66, %65 : vector<1x128xf32>
    %68 = arith.subf %55, %67 : vector<1x128xf32>
    %cst_33 = arith.constant 4.000000e+00 : f32
    %69 = vector.broadcast %cst_33 : f32 to vector<51x128xf32>
    %70 = arith.subf %15, %69 : vector<51x128xf32>
    %71 = math.absf %70 : vector<51x128xf32>
    %cst_34 = arith.constant 1.000000e+00 : f32
    %72 = vector.broadcast %cst_34 : f32 to vector<51x128xf32>
    %73 = arith.subf %72, %71 : vector<51x128xf32>
    %cst_35 = arith.constant 0.000000e+00 : f32
    %74 = vector.broadcast %cst_35 : f32 to vector<51x128xf32>
    %75 = arith.maximumf %73, %74 : vector<51x128xf32>
    %76 = arith.mulf %7, %75 : vector<51x128xf32>
    %cst_36 = arith.constant dense<0.000000e+00> : vector<128xf32>
    %77 = vector.multi_reduction <add>, %76, %cst_36 [0] : vector<51x128xf32> to vector<128xf32>
    %78 = vector.shape_cast %77 : vector<128xf32> to vector<1x128xf32>
    %c4 = arith.constant 4 : index
    %c0_37 = arith.constant 0 : index
    %79 = vector.load %arg1[%c4, %c0_37] : memref<51x128xf32, #tpu.memory_space<vmem>>, vector<1x128xf32>
    %80 = arith.mulf %79, %78 : vector<1x128xf32>
    %81 = arith.subf %68, %80 : vector<1x128xf32>
    %cst_38 = arith.constant 5.000000e+00 : f32
    %82 = vector.broadcast %cst_38 : f32 to vector<51x128xf32>
    %83 = arith.subf %15, %82 : vector<51x128xf32>
    %84 = math.absf %83 : vector<51x128xf32>
    %cst_39 = arith.constant 1.000000e+00 : f32
    %85 = vector.broadcast %cst_39 : f32 to vector<51x128xf32>
    %86 = arith.subf %85, %84 : vector<51x128xf32>
    %cst_40 = arith.constant 0.000000e+00 : f32
    %87 = vector.broadcast %cst_40 : f32 to vector<51x128xf32>
    %88 = arith.maximumf %86, %87 : vector<51x128xf32>
    %89 = arith.mulf %7, %88 : vector<51x128xf32>
    %cst_41 = arith.constant dense<0.000000e+00> : vector<128xf32>
    %90 = vector.multi_reduction <add>, %89, %cst_41 [0] : vector<51x128xf32> to vector<128xf32>
    %91 = vector.shape_cast %90 : vector<128xf32> to vector<1x128xf32>
    %c5 = arith.constant 5 : index
    %c0_42 = arith.constant 0 : index
    %92 = vector.load %arg1[%c5, %c0_42] : memref<51x128xf32, #tpu.memory_space<vmem>>, vector<1x128xf32>
    %93 = arith.mulf %92, %91 : vector<1x128xf32>
    %94 = arith.subf %81, %93 : vector<1x128xf32>
    %cst_43 = arith.constant 6.000000e+00 : f32
    %95 = vector.broadcast %cst_43 : f32 to vector<51x128xf32>
    %96 = arith.subf %15, %95 : vector<51x128xf32>
    %97 = math.absf %96 : vector<51x128xf32>
    %cst_44 = arith.constant 1.000000e+00 : f32
    %98 = vector.broadcast %cst_44 : f32 to vector<51x128xf32>
    %99 = arith.subf %98, %97 : vector<51x128xf32>
    %cst_45 = arith.constant 0.000000e+00 : f32
    %100 = vector.broadcast %cst_45 : f32 to vector<51x128xf32>
    %101 = arith.maximumf %99, %100 : vector<51x128xf32>
    %102 = arith.mulf %7, %101 : vector<51x128xf32>
    %cst_46 = arith.constant dense<0.000000e+00> : vector<128xf32>
    %103 = vector.multi_reduction <add>, %102, %cst_46 [0] : vector<51x128xf32> to vector<128xf32>
    %104 = vector.shape_cast %103 : vector<128xf32> to vector<1x128xf32>
    %c6 = arith.constant 6 : index
    %c0_47 = arith.constant 0 : index
    %105 = vector.load %arg1[%c6, %c0_47] : memref<51x128xf32, #tpu.memory_space<vmem>>, vector<1x128xf32>
    %106 = arith.mulf %105, %104 : vector<1x128xf32>
    %107 = arith.subf %94, %106 : vector<1x128xf32>
    %cst_48 = arith.constant 7.000000e+00 : f32
    %108 = vector.broadcast %cst_48 : f32 to vector<51x128xf32>
    %109 = arith.subf %15, %108 : vector<51x128xf32>
    %110 = math.absf %109 : vector<51x128xf32>
    %cst_49 = arith.constant 1.000000e+00 : f32
    %111 = vector.broadcast %cst_49 : f32 to vector<51x128xf32>
    %112 = arith.subf %111, %110 : vector<51x128xf32>
    %cst_50 = arith.constant 0.000000e+00 : f32
    %113 = vector.broadcast %cst_50 : f32 to vector<51x128xf32>
    %114 = arith.maximumf %112, %113 : vector<51x128xf32>
    %115 = arith.mulf %7, %114 : vector<51x128xf32>
    %cst_51 = arith.constant dense<0.000000e+00> : vector<128xf32>
    %116 = vector.multi_reduction <add>, %115, %cst_51 [0] : vector<51x128xf32> to vector<128xf32>
    %117 = vector.shape_cast %116 : vector<128xf32> to vector<1x128xf32>
    %c7 = arith.constant 7 : index
    %c0_52 = arith.constant 0 : index
    %118 = vector.load %arg1[%c7, %c0_52] : memref<51x128xf32, #tpu.memory_space<vmem>>, vector<1x128xf32>
    %119 = arith.mulf %118, %117 : vector<1x128xf32>
    %120 = arith.subf %107, %119 : vector<1x128xf32>
    %cst_53 = arith.constant 8.000000e+00 : f32
    %121 = vector.broadcast %cst_53 : f32 to vector<51x128xf32>
    %122 = arith.subf %15, %121 : vector<51x128xf32>
    %123 = math.absf %122 : vector<51x128xf32>
    %cst_54 = arith.constant 1.000000e+00 : f32
    %124 = vector.broadcast %cst_54 : f32 to vector<51x128xf32>
    %125 = arith.subf %124, %123 : vector<51x128xf32>
    %cst_55 = arith.constant 0.000000e+00 : f32
    %126 = vector.broadcast %cst_55 : f32 to vector<51x128xf32>
    %127 = arith.maximumf %125, %126 : vector<51x128xf32>
    %128 = arith.mulf %7, %127 : vector<51x128xf32>
    %cst_56 = arith.constant dense<0.000000e+00> : vector<128xf32>
    %129 = vector.multi_reduction <add>, %128, %cst_56 [0] : vector<51x128xf32> to vector<128xf32>
    %130 = vector.shape_cast %129 : vector<128xf32> to vector<1x128xf32>
    %c8 = arith.constant 8 : index
    %c0_57 = arith.constant 0 : index
    %131 = vector.load %arg1[%c8, %c0_57] : memref<51x128xf32, #tpu.memory_space<vmem>>, vector<1x128xf32>
    %132 = arith.mulf %131, %130 : vector<1x128xf32>
    %133 = arith.subf %120, %132 : vector<1x128xf32>
    %cst_58 = arith.constant 9.000000e+00 : f32
    %134 = vector.broadcast %cst_58 : f32 to vector<51x128xf32>
    %135 = arith.subf %15, %134 : vector<51x128xf32>
    %136 = math.absf %135 : vector<51x128xf32>
    %cst_59 = arith.constant 1.000000e+00 : f32
    %137 = vector.broadcast %cst_59 : f32 to vector<51x128xf32>
    %138 = arith.subf %137, %136 : vector<51x128xf32>
    %cst_60 = arith.constant 0.000000e+00 : f32
    %139 = vector.broadcast %cst_60 : f32 to vector<51x128xf32>
    %140 = arith.maximumf %138, %139 : vector<51x128xf32>
    %141 = arith.mulf %7, %140 : vector<51x128xf32>
    %cst_61 = arith.constant dense<0.000000e+00> : vector<128xf32>
    %142 = vector.multi_reduction <add>, %141, %cst_61 [0] : vector<51x128xf32> to vector<128xf32>
    %143 = vector.shape_cast %142 : vector<128xf32> to vector<1x128xf32>
    %c9 = arith.constant 9 : index
    %c0_62 = arith.constant 0 : index
    %144 = vector.load %arg1[%c9, %c0_62] : memref<51x128xf32, #tpu.memory_space<vmem>>, vector<1x128xf32>
    %145 = arith.mulf %144, %143 : vector<1x128xf32>
    %146 = arith.subf %133, %145 : vector<1x128xf32>
    %cst_63 = arith.constant 1.000000e+01 : f32
    %147 = vector.broadcast %cst_63 : f32 to vector<51x128xf32>
    %148 = arith.subf %15, %147 : vector<51x128xf32>
    %149 = math.absf %148 : vector<51x128xf32>
    %cst_64 = arith.constant 1.000000e+00 : f32
    %150 = vector.broadcast %cst_64 : f32 to vector<51x128xf32>
    %151 = arith.subf %150, %149 : vector<51x128xf32>
    %cst_65 = arith.constant 0.000000e+00 : f32
    %152 = vector.broadcast %cst_65 : f32 to vector<51x128xf32>
    %153 = arith.maximumf %151, %152 : vector<51x128xf32>
    %154 = arith.mulf %7, %153 : vector<51x128xf32>
    %cst_66 = arith.constant dense<0.000000e+00> : vector<128xf32>
    %155 = vector.multi_reduction <add>, %154, %cst_66 [0] : vector<51x128xf32> to vector<128xf32>
    %156 = vector.shape_cast %155 : vector<128xf32> to vector<1x128xf32>
    %c10 = arith.constant 10 : index
    %c0_67 = arith.constant 0 : index
    %157 = vector.load %arg1[%c10, %c0_67] : memref<51x128xf32, #tpu.memory_space<vmem>>, vector<1x128xf32>
    %158 = arith.mulf %157, %156 : vector<1x128xf32>
    %159 = arith.subf %146, %158 : vector<1x128xf32>
    %cst_68 = arith.constant 1.100000e+01 : f32
    %160 = vector.broadcast %cst_68 : f32 to vector<51x128xf32>
    %161 = arith.subf %15, %160 : vector<51x128xf32>
    %162 = math.absf %161 : vector<51x128xf32>
    %cst_69 = arith.constant 1.000000e+00 : f32
    %163 = vector.broadcast %cst_69 : f32 to vector<51x128xf32>
    %164 = arith.subf %163, %162 : vector<51x128xf32>
    %cst_70 = arith.constant 0.000000e+00 : f32
    %165 = vector.broadcast %cst_70 : f32 to vector<51x128xf32>
    %166 = arith.maximumf %164, %165 : vector<51x128xf32>
    %167 = arith.mulf %7, %166 : vector<51x128xf32>
    %cst_71 = arith.constant dense<0.000000e+00> : vector<128xf32>
    %168 = vector.multi_reduction <add>, %167, %cst_71 [0] : vector<51x128xf32> to vector<128xf32>
    %169 = vector.shape_cast %168 : vector<128xf32> to vector<1x128xf32>
    %c11 = arith.constant 11 : index
    %c0_72 = arith.constant 0 : index
    %170 = vector.load %arg1[%c11, %c0_72] : memref<51x128xf32, #tpu.memory_space<vmem>>, vector<1x128xf32>
    %171 = arith.mulf %170, %169 : vector<1x128xf32>
    %172 = arith.subf %159, %171 : vector<1x128xf32>
    %cst_73 = arith.constant 1.200000e+01 : f32
    %173 = vector.broadcast %cst_73 : f32 to vector<51x128xf32>
    %174 = arith.subf %15, %173 : vector<51x128xf32>
    %175 = math.absf %174 : vector<51x128xf32>
    %cst_74 = arith.constant 1.000000e+00 : f32
    %176 = vector.broadcast %cst_74 : f32 to vector<51x128xf32>
    %177 = arith.subf %176, %175 : vector<51x128xf32>
    %cst_75 = arith.constant 0.000000e+00 : f32
    %178 = vector.broadcast %cst_75 : f32 to vector<51x128xf32>
    %179 = arith.maximumf %177, %178 : vector<51x128xf32>
    %180 = arith.mulf %7, %179 : vector<51x128xf32>
    %cst_76 = arith.constant dense<0.000000e+00> : vector<128xf32>
    %181 = vector.multi_reduction <add>, %180, %cst_76 [0] : vector<51x128xf32> to vector<128xf32>
    %182 = vector.shape_cast %181 : vector<128xf32> to vector<1x128xf32>
    %c12 = arith.constant 12 : index
    %c0_77 = arith.constant 0 : index
    %183 = vector.load %arg1[%c12, %c0_77] : memref<51x128xf32, #tpu.memory_space<vmem>>, vector<1x128xf32>
    %184 = arith.mulf %183, %182 : vector<1x128xf32>
    %185 = arith.subf %172, %184 : vector<1x128xf32>
    %cst_78 = arith.constant 1.300000e+01 : f32
    %186 = vector.broadcast %cst_78 : f32 to vector<51x128xf32>
    %187 = arith.subf %15, %186 : vector<51x128xf32>
    %188 = math.absf %187 : vector<51x128xf32>
    %cst_79 = arith.constant 1.000000e+00 : f32
    %189 = vector.broadcast %cst_79 : f32 to vector<51x128xf32>
    %190 = arith.subf %189, %188 : vector<51x128xf32>
    %cst_80 = arith.constant 0.000000e+00 : f32
    %191 = vector.broadcast %cst_80 : f32 to vector<51x128xf32>
    %192 = arith.maximumf %190, %191 : vector<51x128xf32>
    %193 = arith.mulf %7, %192 : vector<51x128xf32>
    %cst_81 = arith.constant dense<0.000000e+00> : vector<128xf32>
    %194 = vector.multi_reduction <add>, %193, %cst_81 [0] : vector<51x128xf32> to vector<128xf32>
    %195 = vector.shape_cast %194 : vector<128xf32> to vector<1x128xf32>
    %c13 = arith.constant 13 : index
    %c0_82 = arith.constant 0 : index
    %196 = vector.load %arg1[%c13, %c0_82] : memref<51x128xf32, #tpu.memory_space<vmem>>, vector<1x128xf32>
    %197 = arith.mulf %196, %195 : vector<1x128xf32>
    %198 = arith.subf %185, %197 : vector<1x128xf32>
    %cst_83 = arith.constant 1.400000e+01 : f32
    %199 = vector.broadcast %cst_83 : f32 to vector<51x128xf32>
    %200 = arith.subf %15, %199 : vector<51x128xf32>
    %201 = math.absf %200 : vector<51x128xf32>
    %cst_84 = arith.constant 1.000000e+00 : f32
    %202 = vector.broadcast %cst_84 : f32 to vector<51x128xf32>
    %203 = arith.subf %202, %201 : vector<51x128xf32>
    %cst_85 = arith.constant 0.000000e+00 : f32
    %204 = vector.broadcast %cst_85 : f32 to vector<51x128xf32>
    %205 = arith.maximumf %203, %204 : vector<51x128xf32>
    %206 = arith.mulf %7, %205 : vector<51x128xf32>
    %cst_86 = arith.constant dense<0.000000e+00> : vector<128xf32>
    %207 = vector.multi_reduction <add>, %206, %cst_86 [0] : vector<51x128xf32> to vector<128xf32>
    %208 = vector.shape_cast %207 : vector<128xf32> to vector<1x128xf32>
    %c14 = arith.constant 14 : index
    %c0_87 = arith.constant 0 : index
    %209 = vector.load %arg1[%c14, %c0_87] : memref<51x128xf32, #tpu.memory_space<vmem>>, vector<1x128xf32>
    %210 = arith.mulf %209, %208 : vector<1x128xf32>
    %211 = arith.subf %198, %210 : vector<1x128xf32>
    %cst_88 = arith.constant 1.500000e+01 : f32
    %212 = vector.broadcast %cst_88 : f32 to vector<51x128xf32>
    %213 = arith.subf %15, %212 : vector<51x128xf32>
    %214 = math.absf %213 : vector<51x128xf32>
    %cst_89 = arith.constant 1.000000e+00 : f32
    %215 = vector.broadcast %cst_89 : f32 to vector<51x128xf32>
    %216 = arith.subf %215, %214 : vector<51x128xf32>
    %cst_90 = arith.constant 0.000000e+00 : f32
    %217 = vector.broadcast %cst_90 : f32 to vector<51x128xf32>
    %218 = arith.maximumf %216, %217 : vector<51x128xf32>
    %219 = arith.mulf %7, %218 : vector<51x128xf32>
    %cst_91 = arith.constant dense<0.000000e+00> : vector<128xf32>
    %220 = vector.multi_reduction <add>, %219, %cst_91 [0] : vector<51x128xf32> to vector<128xf32>
    %221 = vector.shape_cast %220 : vector<128xf32> to vector<1x128xf32>
    %c15 = arith.constant 15 : index
    %c0_92 = arith.constant 0 : index
    %222 = vector.load %arg1[%c15, %c0_92] : memref<51x128xf32, #tpu.memory_space<vmem>>, vector<1x128xf32>
    %223 = arith.mulf %222, %221 : vector<1x128xf32>
    %224 = arith.subf %211, %223 : vector<1x128xf32>
    %cst_93 = arith.constant 1.600000e+01 : f32
    %225 = vector.broadcast %cst_93 : f32 to vector<51x128xf32>
    %226 = arith.subf %15, %225 : vector<51x128xf32>
    %227 = math.absf %226 : vector<51x128xf32>
    %cst_94 = arith.constant 1.000000e+00 : f32
    %228 = vector.broadcast %cst_94 : f32 to vector<51x128xf32>
    %229 = arith.subf %228, %227 : vector<51x128xf32>
    %cst_95 = arith.constant 0.000000e+00 : f32
    %230 = vector.broadcast %cst_95 : f32 to vector<51x128xf32>
    %231 = arith.maximumf %229, %230 : vector<51x128xf32>
    %232 = arith.mulf %7, %231 : vector<51x128xf32>
    %cst_96 = arith.constant dense<0.000000e+00> : vector<128xf32>
    %233 = vector.multi_reduction <add>, %232, %cst_96 [0] : vector<51x128xf32> to vector<128xf32>
    %234 = vector.shape_cast %233 : vector<128xf32> to vector<1x128xf32>
    %c16 = arith.constant 16 : index
    %c0_97 = arith.constant 0 : index
    %235 = vector.load %arg1[%c16, %c0_97] : memref<51x128xf32, #tpu.memory_space<vmem>>, vector<1x128xf32>
    %236 = arith.mulf %235, %234 : vector<1x128xf32>
    %237 = arith.subf %224, %236 : vector<1x128xf32>
    %cst_98 = arith.constant 1.700000e+01 : f32
    %238 = vector.broadcast %cst_98 : f32 to vector<51x128xf32>
    %239 = arith.subf %15, %238 : vector<51x128xf32>
    %240 = math.absf %239 : vector<51x128xf32>
    %cst_99 = arith.constant 1.000000e+00 : f32
    %241 = vector.broadcast %cst_99 : f32 to vector<51x128xf32>
    %242 = arith.subf %241, %240 : vector<51x128xf32>
    %cst_100 = arith.constant 0.000000e+00 : f32
    %243 = vector.broadcast %cst_100 : f32 to vector<51x128xf32>
    %244 = arith.maximumf %242, %243 : vector<51x128xf32>
    %245 = arith.mulf %7, %244 : vector<51x128xf32>
    %cst_101 = arith.constant dense<0.000000e+00> : vector<128xf32>
    %246 = vector.multi_reduction <add>, %245, %cst_101 [0] : vector<51x128xf32> to vector<128xf32>
    %247 = vector.shape_cast %246 : vector<128xf32> to vector<1x128xf32>
    %c17 = arith.constant 17 : index
    %c0_102 = arith.constant 0 : index
    %248 = vector.load %arg1[%c17, %c0_102] : memref<51x128xf32, #tpu.memory_space<vmem>>, vector<1x128xf32>
    %249 = arith.mulf %248, %247 : vector<1x128xf32>
    %250 = arith.subf %237, %249 : vector<1x128xf32>
    %cst_103 = arith.constant 1.800000e+01 : f32
    %251 = vector.broadcast %cst_103 : f32 to vector<51x128xf32>
    %252 = arith.subf %15, %251 : vector<51x128xf32>
    %253 = math.absf %252 : vector<51x128xf32>
    %cst_104 = arith.constant 1.000000e+00 : f32
    %254 = vector.broadcast %cst_104 : f32 to vector<51x128xf32>
    %255 = arith.subf %254, %253 : vector<51x128xf32>
    %cst_105 = arith.constant 0.000000e+00 : f32
    %256 = vector.broadcast %cst_105 : f32 to vector<51x128xf32>
    %257 = arith.maximumf %255, %256 : vector<51x128xf32>
    %258 = arith.mulf %7, %257 : vector<51x128xf32>
    %cst_106 = arith.constant dense<0.000000e+00> : vector<128xf32>
    %259 = vector.multi_reduction <add>, %258, %cst_106 [0] : vector<51x128xf32> to vector<128xf32>
    %260 = vector.shape_cast %259 : vector<128xf32> to vector<1x128xf32>
    %c18 = arith.constant 18 : index
    %c0_107 = arith.constant 0 : index
    %261 = vector.load %arg1[%c18, %c0_107] : memref<51x128xf32, #tpu.memory_space<vmem>>, vector<1x128xf32>
    %262 = arith.mulf %261, %260 : vector<1x128xf32>
    %263 = arith.subf %250, %262 : vector<1x128xf32>
    %cst_108 = arith.constant 1.900000e+01 : f32
    %264 = vector.broadcast %cst_108 : f32 to vector<51x128xf32>
    %265 = arith.subf %15, %264 : vector<51x128xf32>
    %266 = math.absf %265 : vector<51x128xf32>
    %cst_109 = arith.constant 1.000000e+00 : f32
    %267 = vector.broadcast %cst_109 : f32 to vector<51x128xf32>
    %268 = arith.subf %267, %266 : vector<51x128xf32>
    %cst_110 = arith.constant 0.000000e+00 : f32
    %269 = vector.broadcast %cst_110 : f32 to vector<51x128xf32>
    %270 = arith.maximumf %268, %269 : vector<51x128xf32>
    %271 = arith.mulf %7, %270 : vector<51x128xf32>
    %cst_111 = arith.constant dense<0.000000e+00> : vector<128xf32>
    %272 = vector.multi_reduction <add>, %271, %cst_111 [0] : vector<51x128xf32> to vector<128xf32>
    %273 = vector.shape_cast %272 : vector<128xf32> to vector<1x128xf32>
    %c19 = arith.constant 19 : index
    %c0_112 = arith.constant 0 : index
    %274 = vector.load %arg1[%c19, %c0_112] : memref<51x128xf32, #tpu.memory_space<vmem>>, vector<1x128xf32>
    %275 = arith.mulf %274, %273 : vector<1x128xf32>
    %276 = arith.subf %263, %275 : vector<1x128xf32>
    %cst_113 = arith.constant 2.000000e+01 : f32
    %277 = vector.broadcast %cst_113 : f32 to vector<51x128xf32>
    %278 = arith.subf %15, %277 : vector<51x128xf32>
    %279 = math.absf %278 : vector<51x128xf32>
    %cst_114 = arith.constant 1.000000e+00 : f32
    %280 = vector.broadcast %cst_114 : f32 to vector<51x128xf32>
    %281 = arith.subf %280, %279 : vector<51x128xf32>
    %cst_115 = arith.constant 0.000000e+00 : f32
    %282 = vector.broadcast %cst_115 : f32 to vector<51x128xf32>
    %283 = arith.maximumf %281, %282 : vector<51x128xf32>
    %284 = arith.mulf %7, %283 : vector<51x128xf32>
    %cst_116 = arith.constant dense<0.000000e+00> : vector<128xf32>
    %285 = vector.multi_reduction <add>, %284, %cst_116 [0] : vector<51x128xf32> to vector<128xf32>
    %286 = vector.shape_cast %285 : vector<128xf32> to vector<1x128xf32>
    %c20 = arith.constant 20 : index
    %c0_117 = arith.constant 0 : index
    %287 = vector.load %arg1[%c20, %c0_117] : memref<51x128xf32, #tpu.memory_space<vmem>>, vector<1x128xf32>
    %288 = arith.mulf %287, %286 : vector<1x128xf32>
    %289 = arith.subf %276, %288 : vector<1x128xf32>
    %cst_118 = arith.constant 2.100000e+01 : f32
    %290 = vector.broadcast %cst_118 : f32 to vector<51x128xf32>
    %291 = arith.subf %15, %290 : vector<51x128xf32>
    %292 = math.absf %291 : vector<51x128xf32>
    %cst_119 = arith.constant 1.000000e+00 : f32
    %293 = vector.broadcast %cst_119 : f32 to vector<51x128xf32>
    %294 = arith.subf %293, %292 : vector<51x128xf32>
    %cst_120 = arith.constant 0.000000e+00 : f32
    %295 = vector.broadcast %cst_120 : f32 to vector<51x128xf32>
    %296 = arith.maximumf %294, %295 : vector<51x128xf32>
    %297 = arith.mulf %7, %296 : vector<51x128xf32>
    %cst_121 = arith.constant dense<0.000000e+00> : vector<128xf32>
    %298 = vector.multi_reduction <add>, %297, %cst_121 [0] : vector<51x128xf32> to vector<128xf32>
    %299 = vector.shape_cast %298 : vector<128xf32> to vector<1x128xf32>
    %c21 = arith.constant 21 : index
    %c0_122 = arith.constant 0 : index
    %300 = vector.load %arg1[%c21, %c0_122] : memref<51x128xf32, #tpu.memory_space<vmem>>, vector<1x128xf32>
    %301 = arith.mulf %300, %299 : vector<1x128xf32>
    %302 = arith.subf %289, %301 : vector<1x128xf32>
    %cst_123 = arith.constant 2.200000e+01 : f32
    %303 = vector.broadcast %cst_123 : f32 to vector<51x128xf32>
    %304 = arith.subf %15, %303 : vector<51x128xf32>
    %305 = math.absf %304 : vector<51x128xf32>
    %cst_124 = arith.constant 1.000000e+00 : f32
    %306 = vector.broadcast %cst_124 : f32 to vector<51x128xf32>
    %307 = arith.subf %306, %305 : vector<51x128xf32>
    %cst_125 = arith.constant 0.000000e+00 : f32
    %308 = vector.broadcast %cst_125 : f32 to vector<51x128xf32>
    %309 = arith.maximumf %307, %308 : vector<51x128xf32>
    %310 = arith.mulf %7, %309 : vector<51x128xf32>
    %cst_126 = arith.constant dense<0.000000e+00> : vector<128xf32>
    %311 = vector.multi_reduction <add>, %310, %cst_126 [0] : vector<51x128xf32> to vector<128xf32>
    %312 = vector.shape_cast %311 : vector<128xf32> to vector<1x128xf32>
    %c22 = arith.constant 22 : index
    %c0_127 = arith.constant 0 : index
    %313 = vector.load %arg1[%c22, %c0_127] : memref<51x128xf32, #tpu.memory_space<vmem>>, vector<1x128xf32>
    %314 = arith.mulf %313, %312 : vector<1x128xf32>
    %315 = arith.subf %302, %314 : vector<1x128xf32>
    %cst_128 = arith.constant 2.300000e+01 : f32
    %316 = vector.broadcast %cst_128 : f32 to vector<51x128xf32>
    %317 = arith.subf %15, %316 : vector<51x128xf32>
    %318 = math.absf %317 : vector<51x128xf32>
    %cst_129 = arith.constant 1.000000e+00 : f32
    %319 = vector.broadcast %cst_129 : f32 to vector<51x128xf32>
    %320 = arith.subf %319, %318 : vector<51x128xf32>
    %cst_130 = arith.constant 0.000000e+00 : f32
    %321 = vector.broadcast %cst_130 : f32 to vector<51x128xf32>
    %322 = arith.maximumf %320, %321 : vector<51x128xf32>
    %323 = arith.mulf %7, %322 : vector<51x128xf32>
    %cst_131 = arith.constant dense<0.000000e+00> : vector<128xf32>
    %324 = vector.multi_reduction <add>, %323, %cst_131 [0] : vector<51x128xf32> to vector<128xf32>
    %325 = vector.shape_cast %324 : vector<128xf32> to vector<1x128xf32>
    %c23 = arith.constant 23 : index
    %c0_132 = arith.constant 0 : index
    %326 = vector.load %arg1[%c23, %c0_132] : memref<51x128xf32, #tpu.memory_space<vmem>>, vector<1x128xf32>
    %327 = arith.mulf %326, %325 : vector<1x128xf32>
    %328 = arith.subf %315, %327 : vector<1x128xf32>
    %cst_133 = arith.constant 2.400000e+01 : f32
    %329 = vector.broadcast %cst_133 : f32 to vector<51x128xf32>
    %330 = arith.subf %15, %329 : vector<51x128xf32>
    %331 = math.absf %330 : vector<51x128xf32>
    %cst_134 = arith.constant 1.000000e+00 : f32
    %332 = vector.broadcast %cst_134 : f32 to vector<51x128xf32>
    %333 = arith.subf %332, %331 : vector<51x128xf32>
    %cst_135 = arith.constant 0.000000e+00 : f32
    %334 = vector.broadcast %cst_135 : f32 to vector<51x128xf32>
    %335 = arith.maximumf %333, %334 : vector<51x128xf32>
    %336 = arith.mulf %7, %335 : vector<51x128xf32>
    %cst_136 = arith.constant dense<0.000000e+00> : vector<128xf32>
    %337 = vector.multi_reduction <add>, %336, %cst_136 [0] : vector<51x128xf32> to vector<128xf32>
    %338 = vector.shape_cast %337 : vector<128xf32> to vector<1x128xf32>
    %c24 = arith.constant 24 : index
    %c0_137 = arith.constant 0 : index
    %339 = vector.load %arg1[%c24, %c0_137] : memref<51x128xf32, #tpu.memory_space<vmem>>, vector<1x128xf32>
    %340 = arith.mulf %339, %338 : vector<1x128xf32>
    %341 = arith.subf %328, %340 : vector<1x128xf32>
    %cst_138 = arith.constant 2.500000e+01 : f32
    %342 = vector.broadcast %cst_138 : f32 to vector<51x128xf32>
    %343 = arith.subf %15, %342 : vector<51x128xf32>
    %344 = math.absf %343 : vector<51x128xf32>
    %cst_139 = arith.constant 1.000000e+00 : f32
    %345 = vector.broadcast %cst_139 : f32 to vector<51x128xf32>
    %346 = arith.subf %345, %344 : vector<51x128xf32>
    %cst_140 = arith.constant 0.000000e+00 : f32
    %347 = vector.broadcast %cst_140 : f32 to vector<51x128xf32>
    %348 = arith.maximumf %346, %347 : vector<51x128xf32>
    %349 = arith.mulf %7, %348 : vector<51x128xf32>
    %cst_141 = arith.constant dense<0.000000e+00> : vector<128xf32>
    %350 = vector.multi_reduction <add>, %349, %cst_141 [0] : vector<51x128xf32> to vector<128xf32>
    %351 = vector.shape_cast %350 : vector<128xf32> to vector<1x128xf32>
    %c25 = arith.constant 25 : index
    %c0_142 = arith.constant 0 : index
    %352 = vector.load %arg1[%c25, %c0_142] : memref<51x128xf32, #tpu.memory_space<vmem>>, vector<1x128xf32>
    %353 = arith.mulf %352, %351 : vector<1x128xf32>
    %354 = arith.subf %341, %353 : vector<1x128xf32>
    %cst_143 = arith.constant 2.600000e+01 : f32
    %355 = vector.broadcast %cst_143 : f32 to vector<51x128xf32>
    %356 = arith.subf %15, %355 : vector<51x128xf32>
    %357 = math.absf %356 : vector<51x128xf32>
    %cst_144 = arith.constant 1.000000e+00 : f32
    %358 = vector.broadcast %cst_144 : f32 to vector<51x128xf32>
    %359 = arith.subf %358, %357 : vector<51x128xf32>
    %cst_145 = arith.constant 0.000000e+00 : f32
    %360 = vector.broadcast %cst_145 : f32 to vector<51x128xf32>
    %361 = arith.maximumf %359, %360 : vector<51x128xf32>
    %362 = arith.mulf %7, %361 : vector<51x128xf32>
    %cst_146 = arith.constant dense<0.000000e+00> : vector<128xf32>
    %363 = vector.multi_reduction <add>, %362, %cst_146 [0] : vector<51x128xf32> to vector<128xf32>
    %364 = vector.shape_cast %363 : vector<128xf32> to vector<1x128xf32>
    %c26 = arith.constant 26 : index
    %c0_147 = arith.constant 0 : index
    %365 = vector.load %arg1[%c26, %c0_147] : memref<51x128xf32, #tpu.memory_space<vmem>>, vector<1x128xf32>
    %366 = arith.mulf %365, %364 : vector<1x128xf32>
    %367 = arith.subf %354, %366 : vector<1x128xf32>
    %cst_148 = arith.constant 2.700000e+01 : f32
    %368 = vector.broadcast %cst_148 : f32 to vector<51x128xf32>
    %369 = arith.subf %15, %368 : vector<51x128xf32>
    %370 = math.absf %369 : vector<51x128xf32>
    %cst_149 = arith.constant 1.000000e+00 : f32
    %371 = vector.broadcast %cst_149 : f32 to vector<51x128xf32>
    %372 = arith.subf %371, %370 : vector<51x128xf32>
    %cst_150 = arith.constant 0.000000e+00 : f32
    %373 = vector.broadcast %cst_150 : f32 to vector<51x128xf32>
    %374 = arith.maximumf %372, %373 : vector<51x128xf32>
    %375 = arith.mulf %7, %374 : vector<51x128xf32>
    %cst_151 = arith.constant dense<0.000000e+00> : vector<128xf32>
    %376 = vector.multi_reduction <add>, %375, %cst_151 [0] : vector<51x128xf32> to vector<128xf32>
    %377 = vector.shape_cast %376 : vector<128xf32> to vector<1x128xf32>
    %c27 = arith.constant 27 : index
    %c0_152 = arith.constant 0 : index
    %378 = vector.load %arg1[%c27, %c0_152] : memref<51x128xf32, #tpu.memory_space<vmem>>, vector<1x128xf32>
    %379 = arith.mulf %378, %377 : vector<1x128xf32>
    %380 = arith.subf %367, %379 : vector<1x128xf32>
    %cst_153 = arith.constant 2.800000e+01 : f32
    %381 = vector.broadcast %cst_153 : f32 to vector<51x128xf32>
    %382 = arith.subf %15, %381 : vector<51x128xf32>
    %383 = math.absf %382 : vector<51x128xf32>
    %cst_154 = arith.constant 1.000000e+00 : f32
    %384 = vector.broadcast %cst_154 : f32 to vector<51x128xf32>
    %385 = arith.subf %384, %383 : vector<51x128xf32>
    %cst_155 = arith.constant 0.000000e+00 : f32
    %386 = vector.broadcast %cst_155 : f32 to vector<51x128xf32>
    %387 = arith.maximumf %385, %386 : vector<51x128xf32>
    %388 = arith.mulf %7, %387 : vector<51x128xf32>
    %cst_156 = arith.constant dense<0.000000e+00> : vector<128xf32>
    %389 = vector.multi_reduction <add>, %388, %cst_156 [0] : vector<51x128xf32> to vector<128xf32>
    %390 = vector.shape_cast %389 : vector<128xf32> to vector<1x128xf32>
    %c28 = arith.constant 28 : index
    %c0_157 = arith.constant 0 : index
    %391 = vector.load %arg1[%c28, %c0_157] : memref<51x128xf32, #tpu.memory_space<vmem>>, vector<1x128xf32>
    %392 = arith.mulf %391, %390 : vector<1x128xf32>
    %393 = arith.subf %380, %392 : vector<1x128xf32>
    %cst_158 = arith.constant 2.900000e+01 : f32
    %394 = vector.broadcast %cst_158 : f32 to vector<51x128xf32>
    %395 = arith.subf %15, %394 : vector<51x128xf32>
    %396 = math.absf %395 : vector<51x128xf32>
    %cst_159 = arith.constant 1.000000e+00 : f32
    %397 = vector.broadcast %cst_159 : f32 to vector<51x128xf32>
    %398 = arith.subf %397, %396 : vector<51x128xf32>
    %cst_160 = arith.constant 0.000000e+00 : f32
    %399 = vector.broadcast %cst_160 : f32 to vector<51x128xf32>
    %400 = arith.maximumf %398, %399 : vector<51x128xf32>
    %401 = arith.mulf %7, %400 : vector<51x128xf32>
    %cst_161 = arith.constant dense<0.000000e+00> : vector<128xf32>
    %402 = vector.multi_reduction <add>, %401, %cst_161 [0] : vector<51x128xf32> to vector<128xf32>
    %403 = vector.shape_cast %402 : vector<128xf32> to vector<1x128xf32>
    %c29 = arith.constant 29 : index
    %c0_162 = arith.constant 0 : index
    %404 = vector.load %arg1[%c29, %c0_162] : memref<51x128xf32, #tpu.memory_space<vmem>>, vector<1x128xf32>
    %405 = arith.mulf %404, %403 : vector<1x128xf32>
    %406 = arith.subf %393, %405 : vector<1x128xf32>
    %cst_163 = arith.constant 3.000000e+01 : f32
    %407 = vector.broadcast %cst_163 : f32 to vector<51x128xf32>
    %408 = arith.subf %15, %407 : vector<51x128xf32>
    %409 = math.absf %408 : vector<51x128xf32>
    %cst_164 = arith.constant 1.000000e+00 : f32
    %410 = vector.broadcast %cst_164 : f32 to vector<51x128xf32>
    %411 = arith.subf %410, %409 : vector<51x128xf32>
    %cst_165 = arith.constant 0.000000e+00 : f32
    %412 = vector.broadcast %cst_165 : f32 to vector<51x128xf32>
    %413 = arith.maximumf %411, %412 : vector<51x128xf32>
    %414 = arith.mulf %7, %413 : vector<51x128xf32>
    %cst_166 = arith.constant dense<0.000000e+00> : vector<128xf32>
    %415 = vector.multi_reduction <add>, %414, %cst_166 [0] : vector<51x128xf32> to vector<128xf32>
    %416 = vector.shape_cast %415 : vector<128xf32> to vector<1x128xf32>
    %c30 = arith.constant 30 : index
    %c0_167 = arith.constant 0 : index
    %417 = vector.load %arg1[%c30, %c0_167] : memref<51x128xf32, #tpu.memory_space<vmem>>, vector<1x128xf32>
    %418 = arith.mulf %417, %416 : vector<1x128xf32>
    %419 = arith.subf %406, %418 : vector<1x128xf32>
    %cst_168 = arith.constant 3.100000e+01 : f32
    %420 = vector.broadcast %cst_168 : f32 to vector<51x128xf32>
    %421 = arith.subf %15, %420 : vector<51x128xf32>
    %422 = math.absf %421 : vector<51x128xf32>
    %cst_169 = arith.constant 1.000000e+00 : f32
    %423 = vector.broadcast %cst_169 : f32 to vector<51x128xf32>
    %424 = arith.subf %423, %422 : vector<51x128xf32>
    %cst_170 = arith.constant 0.000000e+00 : f32
    %425 = vector.broadcast %cst_170 : f32 to vector<51x128xf32>
    %426 = arith.maximumf %424, %425 : vector<51x128xf32>
    %427 = arith.mulf %7, %426 : vector<51x128xf32>
    %cst_171 = arith.constant dense<0.000000e+00> : vector<128xf32>
    %428 = vector.multi_reduction <add>, %427, %cst_171 [0] : vector<51x128xf32> to vector<128xf32>
    %429 = vector.shape_cast %428 : vector<128xf32> to vector<1x128xf32>
    %c31 = arith.constant 31 : index
    %c0_172 = arith.constant 0 : index
    %430 = vector.load %arg1[%c31, %c0_172] : memref<51x128xf32, #tpu.memory_space<vmem>>, vector<1x128xf32>
    %431 = arith.mulf %430, %429 : vector<1x128xf32>
    %432 = arith.subf %419, %431 : vector<1x128xf32>
    %cst_173 = arith.constant 3.200000e+01 : f32
    %433 = vector.broadcast %cst_173 : f32 to vector<51x128xf32>
    %434 = arith.subf %15, %433 : vector<51x128xf32>
    %435 = math.absf %434 : vector<51x128xf32>
    %cst_174 = arith.constant 1.000000e+00 : f32
    %436 = vector.broadcast %cst_174 : f32 to vector<51x128xf32>
    %437 = arith.subf %436, %435 : vector<51x128xf32>
    %cst_175 = arith.constant 0.000000e+00 : f32
    %438 = vector.broadcast %cst_175 : f32 to vector<51x128xf32>
    %439 = arith.maximumf %437, %438 : vector<51x128xf32>
    %440 = arith.mulf %7, %439 : vector<51x128xf32>
    %cst_176 = arith.constant dense<0.000000e+00> : vector<128xf32>
    %441 = vector.multi_reduction <add>, %440, %cst_176 [0] : vector<51x128xf32> to vector<128xf32>
    %442 = vector.shape_cast %441 : vector<128xf32> to vector<1x128xf32>
    %c32 = arith.constant 32 : index
    %c0_177 = arith.constant 0 : index
    %443 = vector.load %arg1[%c32, %c0_177] : memref<51x128xf32, #tpu.memory_space<vmem>>, vector<1x128xf32>
    %444 = arith.mulf %443, %442 : vector<1x128xf32>
    %445 = arith.subf %432, %444 : vector<1x128xf32>
    %cst_178 = arith.constant 3.300000e+01 : f32
    %446 = vector.broadcast %cst_178 : f32 to vector<51x128xf32>
    %447 = arith.subf %15, %446 : vector<51x128xf32>
    %448 = math.absf %447 : vector<51x128xf32>
    %cst_179 = arith.constant 1.000000e+00 : f32
    %449 = vector.broadcast %cst_179 : f32 to vector<51x128xf32>
    %450 = arith.subf %449, %448 : vector<51x128xf32>
    %cst_180 = arith.constant 0.000000e+00 : f32
    %451 = vector.broadcast %cst_180 : f32 to vector<51x128xf32>
    %452 = arith.maximumf %450, %451 : vector<51x128xf32>
    %453 = arith.mulf %7, %452 : vector<51x128xf32>
    %cst_181 = arith.constant dense<0.000000e+00> : vector<128xf32>
    %454 = vector.multi_reduction <add>, %453, %cst_181 [0] : vector<51x128xf32> to vector<128xf32>
    %455 = vector.shape_cast %454 : vector<128xf32> to vector<1x128xf32>
    %c33 = arith.constant 33 : index
    %c0_182 = arith.constant 0 : index
    %456 = vector.load %arg1[%c33, %c0_182] : memref<51x128xf32, #tpu.memory_space<vmem>>, vector<1x128xf32>
    %457 = arith.mulf %456, %455 : vector<1x128xf32>
    %458 = arith.subf %445, %457 : vector<1x128xf32>
    %cst_183 = arith.constant 3.400000e+01 : f32
    %459 = vector.broadcast %cst_183 : f32 to vector<51x128xf32>
    %460 = arith.subf %15, %459 : vector<51x128xf32>
    %461 = math.absf %460 : vector<51x128xf32>
    %cst_184 = arith.constant 1.000000e+00 : f32
    %462 = vector.broadcast %cst_184 : f32 to vector<51x128xf32>
    %463 = arith.subf %462, %461 : vector<51x128xf32>
    %cst_185 = arith.constant 0.000000e+00 : f32
    %464 = vector.broadcast %cst_185 : f32 to vector<51x128xf32>
    %465 = arith.maximumf %463, %464 : vector<51x128xf32>
    %466 = arith.mulf %7, %465 : vector<51x128xf32>
    %cst_186 = arith.constant dense<0.000000e+00> : vector<128xf32>
    %467 = vector.multi_reduction <add>, %466, %cst_186 [0] : vector<51x128xf32> to vector<128xf32>
    %468 = vector.shape_cast %467 : vector<128xf32> to vector<1x128xf32>
    %c34 = arith.constant 34 : index
    %c0_187 = arith.constant 0 : index
    %469 = vector.load %arg1[%c34, %c0_187] : memref<51x128xf32, #tpu.memory_space<vmem>>, vector<1x128xf32>
    %470 = arith.mulf %469, %468 : vector<1x128xf32>
    %471 = arith.subf %458, %470 : vector<1x128xf32>
    %cst_188 = arith.constant 3.500000e+01 : f32
    %472 = vector.broadcast %cst_188 : f32 to vector<51x128xf32>
    %473 = arith.subf %15, %472 : vector<51x128xf32>
    %474 = math.absf %473 : vector<51x128xf32>
    %cst_189 = arith.constant 1.000000e+00 : f32
    %475 = vector.broadcast %cst_189 : f32 to vector<51x128xf32>
    %476 = arith.subf %475, %474 : vector<51x128xf32>
    %cst_190 = arith.constant 0.000000e+00 : f32
    %477 = vector.broadcast %cst_190 : f32 to vector<51x128xf32>
    %478 = arith.maximumf %476, %477 : vector<51x128xf32>
    %479 = arith.mulf %7, %478 : vector<51x128xf32>
    %cst_191 = arith.constant dense<0.000000e+00> : vector<128xf32>
    %480 = vector.multi_reduction <add>, %479, %cst_191 [0] : vector<51x128xf32> to vector<128xf32>
    %481 = vector.shape_cast %480 : vector<128xf32> to vector<1x128xf32>
    %c35 = arith.constant 35 : index
    %c0_192 = arith.constant 0 : index
    %482 = vector.load %arg1[%c35, %c0_192] : memref<51x128xf32, #tpu.memory_space<vmem>>, vector<1x128xf32>
    %483 = arith.mulf %482, %481 : vector<1x128xf32>
    %484 = arith.subf %471, %483 : vector<1x128xf32>
    %cst_193 = arith.constant 3.600000e+01 : f32
    %485 = vector.broadcast %cst_193 : f32 to vector<51x128xf32>
    %486 = arith.subf %15, %485 : vector<51x128xf32>
    %487 = math.absf %486 : vector<51x128xf32>
    %cst_194 = arith.constant 1.000000e+00 : f32
    %488 = vector.broadcast %cst_194 : f32 to vector<51x128xf32>
    %489 = arith.subf %488, %487 : vector<51x128xf32>
    %cst_195 = arith.constant 0.000000e+00 : f32
    %490 = vector.broadcast %cst_195 : f32 to vector<51x128xf32>
    %491 = arith.maximumf %489, %490 : vector<51x128xf32>
    %492 = arith.mulf %7, %491 : vector<51x128xf32>
    %cst_196 = arith.constant dense<0.000000e+00> : vector<128xf32>
    %493 = vector.multi_reduction <add>, %492, %cst_196 [0] : vector<51x128xf32> to vector<128xf32>
    %494 = vector.shape_cast %493 : vector<128xf32> to vector<1x128xf32>
    %c36 = arith.constant 36 : index
    %c0_197 = arith.constant 0 : index
    %495 = vector.load %arg1[%c36, %c0_197] : memref<51x128xf32, #tpu.memory_space<vmem>>, vector<1x128xf32>
    %496 = arith.mulf %495, %494 : vector<1x128xf32>
    %497 = arith.subf %484, %496 : vector<1x128xf32>
    %cst_198 = arith.constant 3.700000e+01 : f32
    %498 = vector.broadcast %cst_198 : f32 to vector<51x128xf32>
    %499 = arith.subf %15, %498 : vector<51x128xf32>
    %500 = math.absf %499 : vector<51x128xf32>
    %cst_199 = arith.constant 1.000000e+00 : f32
    %501 = vector.broadcast %cst_199 : f32 to vector<51x128xf32>
    %502 = arith.subf %501, %500 : vector<51x128xf32>
    %cst_200 = arith.constant 0.000000e+00 : f32
    %503 = vector.broadcast %cst_200 : f32 to vector<51x128xf32>
    %504 = arith.maximumf %502, %503 : vector<51x128xf32>
    %505 = arith.mulf %7, %504 : vector<51x128xf32>
    %cst_201 = arith.constant dense<0.000000e+00> : vector<128xf32>
    %506 = vector.multi_reduction <add>, %505, %cst_201 [0] : vector<51x128xf32> to vector<128xf32>
    %507 = vector.shape_cast %506 : vector<128xf32> to vector<1x128xf32>
    %c37 = arith.constant 37 : index
    %c0_202 = arith.constant 0 : index
    %508 = vector.load %arg1[%c37, %c0_202] : memref<51x128xf32, #tpu.memory_space<vmem>>, vector<1x128xf32>
    %509 = arith.mulf %508, %507 : vector<1x128xf32>
    %510 = arith.subf %497, %509 : vector<1x128xf32>
    %cst_203 = arith.constant 3.800000e+01 : f32
    %511 = vector.broadcast %cst_203 : f32 to vector<51x128xf32>
    %512 = arith.subf %15, %511 : vector<51x128xf32>
    %513 = math.absf %512 : vector<51x128xf32>
    %cst_204 = arith.constant 1.000000e+00 : f32
    %514 = vector.broadcast %cst_204 : f32 to vector<51x128xf32>
    %515 = arith.subf %514, %513 : vector<51x128xf32>
    %cst_205 = arith.constant 0.000000e+00 : f32
    %516 = vector.broadcast %cst_205 : f32 to vector<51x128xf32>
    %517 = arith.maximumf %515, %516 : vector<51x128xf32>
    %518 = arith.mulf %7, %517 : vector<51x128xf32>
    %cst_206 = arith.constant dense<0.000000e+00> : vector<128xf32>
    %519 = vector.multi_reduction <add>, %518, %cst_206 [0] : vector<51x128xf32> to vector<128xf32>
    %520 = vector.shape_cast %519 : vector<128xf32> to vector<1x128xf32>
    %c38 = arith.constant 38 : index
    %c0_207 = arith.constant 0 : index
    %521 = vector.load %arg1[%c38, %c0_207] : memref<51x128xf32, #tpu.memory_space<vmem>>, vector<1x128xf32>
    %522 = arith.mulf %521, %520 : vector<1x128xf32>
    %523 = arith.subf %510, %522 : vector<1x128xf32>
    %cst_208 = arith.constant 3.900000e+01 : f32
    %524 = vector.broadcast %cst_208 : f32 to vector<51x128xf32>
    %525 = arith.subf %15, %524 : vector<51x128xf32>
    %526 = math.absf %525 : vector<51x128xf32>
    %cst_209 = arith.constant 1.000000e+00 : f32
    %527 = vector.broadcast %cst_209 : f32 to vector<51x128xf32>
    %528 = arith.subf %527, %526 : vector<51x128xf32>
    %cst_210 = arith.constant 0.000000e+00 : f32
    %529 = vector.broadcast %cst_210 : f32 to vector<51x128xf32>
    %530 = arith.maximumf %528, %529 : vector<51x128xf32>
    %531 = arith.mulf %7, %530 : vector<51x128xf32>
    %cst_211 = arith.constant dense<0.000000e+00> : vector<128xf32>
    %532 = vector.multi_reduction <add>, %531, %cst_211 [0] : vector<51x128xf32> to vector<128xf32>
    %533 = vector.shape_cast %532 : vector<128xf32> to vector<1x128xf32>
    %c39 = arith.constant 39 : index
    %c0_212 = arith.constant 0 : index
    %534 = vector.load %arg1[%c39, %c0_212] : memref<51x128xf32, #tpu.memory_space<vmem>>, vector<1x128xf32>
    %535 = arith.mulf %534, %533 : vector<1x128xf32>
    %536 = arith.subf %523, %535 : vector<1x128xf32>
    %cst_213 = arith.constant 4.000000e+01 : f32
    %537 = vector.broadcast %cst_213 : f32 to vector<51x128xf32>
    %538 = arith.subf %15, %537 : vector<51x128xf32>
    %539 = math.absf %538 : vector<51x128xf32>
    %cst_214 = arith.constant 1.000000e+00 : f32
    %540 = vector.broadcast %cst_214 : f32 to vector<51x128xf32>
    %541 = arith.subf %540, %539 : vector<51x128xf32>
    %cst_215 = arith.constant 0.000000e+00 : f32
    %542 = vector.broadcast %cst_215 : f32 to vector<51x128xf32>
    %543 = arith.maximumf %541, %542 : vector<51x128xf32>
    %544 = arith.mulf %7, %543 : vector<51x128xf32>
    %cst_216 = arith.constant dense<0.000000e+00> : vector<128xf32>
    %545 = vector.multi_reduction <add>, %544, %cst_216 [0] : vector<51x128xf32> to vector<128xf32>
    %546 = vector.shape_cast %545 : vector<128xf32> to vector<1x128xf32>
    %c40 = arith.constant 40 : index
    %c0_217 = arith.constant 0 : index
    %547 = vector.load %arg1[%c40, %c0_217] : memref<51x128xf32, #tpu.memory_space<vmem>>, vector<1x128xf32>
    %548 = arith.mulf %547, %546 : vector<1x128xf32>
    %549 = arith.subf %536, %548 : vector<1x128xf32>
    %cst_218 = arith.constant 4.100000e+01 : f32
    %550 = vector.broadcast %cst_218 : f32 to vector<51x128xf32>
    %551 = arith.subf %15, %550 : vector<51x128xf32>
    %552 = math.absf %551 : vector<51x128xf32>
    %cst_219 = arith.constant 1.000000e+00 : f32
    %553 = vector.broadcast %cst_219 : f32 to vector<51x128xf32>
    %554 = arith.subf %553, %552 : vector<51x128xf32>
    %cst_220 = arith.constant 0.000000e+00 : f32
    %555 = vector.broadcast %cst_220 : f32 to vector<51x128xf32>
    %556 = arith.maximumf %554, %555 : vector<51x128xf32>
    %557 = arith.mulf %7, %556 : vector<51x128xf32>
    %cst_221 = arith.constant dense<0.000000e+00> : vector<128xf32>
    %558 = vector.multi_reduction <add>, %557, %cst_221 [0] : vector<51x128xf32> to vector<128xf32>
    %559 = vector.shape_cast %558 : vector<128xf32> to vector<1x128xf32>
    %c41 = arith.constant 41 : index
    %c0_222 = arith.constant 0 : index
    %560 = vector.load %arg1[%c41, %c0_222] : memref<51x128xf32, #tpu.memory_space<vmem>>, vector<1x128xf32>
    %561 = arith.mulf %560, %559 : vector<1x128xf32>
    %562 = arith.subf %549, %561 : vector<1x128xf32>
    %cst_223 = arith.constant 4.200000e+01 : f32
    %563 = vector.broadcast %cst_223 : f32 to vector<51x128xf32>
    %564 = arith.subf %15, %563 : vector<51x128xf32>
    %565 = math.absf %564 : vector<51x128xf32>
    %cst_224 = arith.constant 1.000000e+00 : f32
    %566 = vector.broadcast %cst_224 : f32 to vector<51x128xf32>
    %567 = arith.subf %566, %565 : vector<51x128xf32>
    %cst_225 = arith.constant 0.000000e+00 : f32
    %568 = vector.broadcast %cst_225 : f32 to vector<51x128xf32>
    %569 = arith.maximumf %567, %568 : vector<51x128xf32>
    %570 = arith.mulf %7, %569 : vector<51x128xf32>
    %cst_226 = arith.constant dense<0.000000e+00> : vector<128xf32>
    %571 = vector.multi_reduction <add>, %570, %cst_226 [0] : vector<51x128xf32> to vector<128xf32>
    %572 = vector.shape_cast %571 : vector<128xf32> to vector<1x128xf32>
    %c42 = arith.constant 42 : index
    %c0_227 = arith.constant 0 : index
    %573 = vector.load %arg1[%c42, %c0_227] : memref<51x128xf32, #tpu.memory_space<vmem>>, vector<1x128xf32>
    %574 = arith.mulf %573, %572 : vector<1x128xf32>
    %575 = arith.subf %562, %574 : vector<1x128xf32>
    %cst_228 = arith.constant 4.300000e+01 : f32
    %576 = vector.broadcast %cst_228 : f32 to vector<51x128xf32>
    %577 = arith.subf %15, %576 : vector<51x128xf32>
    %578 = math.absf %577 : vector<51x128xf32>
    %cst_229 = arith.constant 1.000000e+00 : f32
    %579 = vector.broadcast %cst_229 : f32 to vector<51x128xf32>
    %580 = arith.subf %579, %578 : vector<51x128xf32>
    %cst_230 = arith.constant 0.000000e+00 : f32
    %581 = vector.broadcast %cst_230 : f32 to vector<51x128xf32>
    %582 = arith.maximumf %580, %581 : vector<51x128xf32>
    %583 = arith.mulf %7, %582 : vector<51x128xf32>
    %cst_231 = arith.constant dense<0.000000e+00> : vector<128xf32>
    %584 = vector.multi_reduction <add>, %583, %cst_231 [0] : vector<51x128xf32> to vector<128xf32>
    %585 = vector.shape_cast %584 : vector<128xf32> to vector<1x128xf32>
    %c43 = arith.constant 43 : index
    %c0_232 = arith.constant 0 : index
    %586 = vector.load %arg1[%c43, %c0_232] : memref<51x128xf32, #tpu.memory_space<vmem>>, vector<1x128xf32>
    %587 = arith.mulf %586, %585 : vector<1x128xf32>
    %588 = arith.subf %575, %587 : vector<1x128xf32>
    %cst_233 = arith.constant 4.400000e+01 : f32
    %589 = vector.broadcast %cst_233 : f32 to vector<51x128xf32>
    %590 = arith.subf %15, %589 : vector<51x128xf32>
    %591 = math.absf %590 : vector<51x128xf32>
    %cst_234 = arith.constant 1.000000e+00 : f32
    %592 = vector.broadcast %cst_234 : f32 to vector<51x128xf32>
    %593 = arith.subf %592, %591 : vector<51x128xf32>
    %cst_235 = arith.constant 0.000000e+00 : f32
    %594 = vector.broadcast %cst_235 : f32 to vector<51x128xf32>
    %595 = arith.maximumf %593, %594 : vector<51x128xf32>
    %596 = arith.mulf %7, %595 : vector<51x128xf32>
    %cst_236 = arith.constant dense<0.000000e+00> : vector<128xf32>
    %597 = vector.multi_reduction <add>, %596, %cst_236 [0] : vector<51x128xf32> to vector<128xf32>
    %598 = vector.shape_cast %597 : vector<128xf32> to vector<1x128xf32>
    %c44 = arith.constant 44 : index
    %c0_237 = arith.constant 0 : index
    %599 = vector.load %arg1[%c44, %c0_237] : memref<51x128xf32, #tpu.memory_space<vmem>>, vector<1x128xf32>
    %600 = arith.mulf %599, %598 : vector<1x128xf32>
    %601 = arith.subf %588, %600 : vector<1x128xf32>
    %cst_238 = arith.constant 4.500000e+01 : f32
    %602 = vector.broadcast %cst_238 : f32 to vector<51x128xf32>
    %603 = arith.subf %15, %602 : vector<51x128xf32>
    %604 = math.absf %603 : vector<51x128xf32>
    %cst_239 = arith.constant 1.000000e+00 : f32
    %605 = vector.broadcast %cst_239 : f32 to vector<51x128xf32>
    %606 = arith.subf %605, %604 : vector<51x128xf32>
    %cst_240 = arith.constant 0.000000e+00 : f32
    %607 = vector.broadcast %cst_240 : f32 to vector<51x128xf32>
    %608 = arith.maximumf %606, %607 : vector<51x128xf32>
    %609 = arith.mulf %7, %608 : vector<51x128xf32>
    %cst_241 = arith.constant dense<0.000000e+00> : vector<128xf32>
    %610 = vector.multi_reduction <add>, %609, %cst_241 [0] : vector<51x128xf32> to vector<128xf32>
    %611 = vector.shape_cast %610 : vector<128xf32> to vector<1x128xf32>
    %c45 = arith.constant 45 : index
    %c0_242 = arith.constant 0 : index
    %612 = vector.load %arg1[%c45, %c0_242] : memref<51x128xf32, #tpu.memory_space<vmem>>, vector<1x128xf32>
    %613 = arith.mulf %612, %611 : vector<1x128xf32>
    %614 = arith.subf %601, %613 : vector<1x128xf32>
    %cst_243 = arith.constant 4.600000e+01 : f32
    %615 = vector.broadcast %cst_243 : f32 to vector<51x128xf32>
    %616 = arith.subf %15, %615 : vector<51x128xf32>
    %617 = math.absf %616 : vector<51x128xf32>
    %cst_244 = arith.constant 1.000000e+00 : f32
    %618 = vector.broadcast %cst_244 : f32 to vector<51x128xf32>
    %619 = arith.subf %618, %617 : vector<51x128xf32>
    %cst_245 = arith.constant 0.000000e+00 : f32
    %620 = vector.broadcast %cst_245 : f32 to vector<51x128xf32>
    %621 = arith.maximumf %619, %620 : vector<51x128xf32>
    %622 = arith.mulf %7, %621 : vector<51x128xf32>
    %cst_246 = arith.constant dense<0.000000e+00> : vector<128xf32>
    %623 = vector.multi_reduction <add>, %622, %cst_246 [0] : vector<51x128xf32> to vector<128xf32>
    %624 = vector.shape_cast %623 : vector<128xf32> to vector<1x128xf32>
    %c46 = arith.constant 46 : index
    %c0_247 = arith.constant 0 : index
    %625 = vector.load %arg1[%c46, %c0_247] : memref<51x128xf32, #tpu.memory_space<vmem>>, vector<1x128xf32>
    %626 = arith.mulf %625, %624 : vector<1x128xf32>
    %627 = arith.subf %614, %626 : vector<1x128xf32>
    %cst_248 = arith.constant 4.700000e+01 : f32
    %628 = vector.broadcast %cst_248 : f32 to vector<51x128xf32>
    %629 = arith.subf %15, %628 : vector<51x128xf32>
    %630 = math.absf %629 : vector<51x128xf32>
    %cst_249 = arith.constant 1.000000e+00 : f32
    %631 = vector.broadcast %cst_249 : f32 to vector<51x128xf32>
    %632 = arith.subf %631, %630 : vector<51x128xf32>
    %cst_250 = arith.constant 0.000000e+00 : f32
    %633 = vector.broadcast %cst_250 : f32 to vector<51x128xf32>
    %634 = arith.maximumf %632, %633 : vector<51x128xf32>
    %635 = arith.mulf %7, %634 : vector<51x128xf32>
    %cst_251 = arith.constant dense<0.000000e+00> : vector<128xf32>
    %636 = vector.multi_reduction <add>, %635, %cst_251 [0] : vector<51x128xf32> to vector<128xf32>
    %637 = vector.shape_cast %636 : vector<128xf32> to vector<1x128xf32>
    %c47 = arith.constant 47 : index
    %c0_252 = arith.constant 0 : index
    %638 = vector.load %arg1[%c47, %c0_252] : memref<51x128xf32, #tpu.memory_space<vmem>>, vector<1x128xf32>
    %639 = arith.mulf %638, %637 : vector<1x128xf32>
    %640 = arith.subf %627, %639 : vector<1x128xf32>
    %cst_253 = arith.constant 4.800000e+01 : f32
    %641 = vector.broadcast %cst_253 : f32 to vector<51x128xf32>
    %642 = arith.subf %15, %641 : vector<51x128xf32>
    %643 = math.absf %642 : vector<51x128xf32>
    %cst_254 = arith.constant 1.000000e+00 : f32
    %644 = vector.broadcast %cst_254 : f32 to vector<51x128xf32>
    %645 = arith.subf %644, %643 : vector<51x128xf32>
    %cst_255 = arith.constant 0.000000e+00 : f32
    %646 = vector.broadcast %cst_255 : f32 to vector<51x128xf32>
    %647 = arith.maximumf %645, %646 : vector<51x128xf32>
    %648 = arith.mulf %7, %647 : vector<51x128xf32>
    %cst_256 = arith.constant dense<0.000000e+00> : vector<128xf32>
    %649 = vector.multi_reduction <add>, %648, %cst_256 [0] : vector<51x128xf32> to vector<128xf32>
    %650 = vector.shape_cast %649 : vector<128xf32> to vector<1x128xf32>
    %c48 = arith.constant 48 : index
    %c0_257 = arith.constant 0 : index
    %651 = vector.load %arg1[%c48, %c0_257] : memref<51x128xf32, #tpu.memory_space<vmem>>, vector<1x128xf32>
    %652 = arith.mulf %651, %650 : vector<1x128xf32>
    %653 = arith.subf %640, %652 : vector<1x128xf32>
    %cst_258 = arith.constant 4.900000e+01 : f32
    %654 = vector.broadcast %cst_258 : f32 to vector<51x128xf32>
    %655 = arith.subf %15, %654 : vector<51x128xf32>
    %656 = math.absf %655 : vector<51x128xf32>
    %cst_259 = arith.constant 1.000000e+00 : f32
    %657 = vector.broadcast %cst_259 : f32 to vector<51x128xf32>
    %658 = arith.subf %657, %656 : vector<51x128xf32>
    %cst_260 = arith.constant 0.000000e+00 : f32
    %659 = vector.broadcast %cst_260 : f32 to vector<51x128xf32>
    %660 = arith.maximumf %658, %659 : vector<51x128xf32>
    %661 = arith.mulf %7, %660 : vector<51x128xf32>
    %cst_261 = arith.constant dense<0.000000e+00> : vector<128xf32>
    %662 = vector.multi_reduction <add>, %661, %cst_261 [0] : vector<51x128xf32> to vector<128xf32>
    %663 = vector.shape_cast %662 : vector<128xf32> to vector<1x128xf32>
    %c49 = arith.constant 49 : index
    %c0_262 = arith.constant 0 : index
    %664 = vector.load %arg1[%c49, %c0_262] : memref<51x128xf32, #tpu.memory_space<vmem>>, vector<1x128xf32>
    %665 = arith.mulf %664, %663 : vector<1x128xf32>
    %666 = arith.subf %653, %665 : vector<1x128xf32>
    %cst_263 = arith.constant 5.000000e+01 : f32
    %667 = vector.broadcast %cst_263 : f32 to vector<51x128xf32>
    %668 = arith.subf %15, %667 : vector<51x128xf32>
    %669 = math.absf %668 : vector<51x128xf32>
    %cst_264 = arith.constant 1.000000e+00 : f32
    %670 = vector.broadcast %cst_264 : f32 to vector<51x128xf32>
    %671 = arith.subf %670, %669 : vector<51x128xf32>
    %cst_265 = arith.constant 0.000000e+00 : f32
    %672 = vector.broadcast %cst_265 : f32 to vector<51x128xf32>
    %673 = arith.maximumf %671, %672 : vector<51x128xf32>
    %674 = arith.mulf %7, %673 : vector<51x128xf32>
    %cst_266 = arith.constant dense<0.000000e+00> : vector<128xf32>
    %675 = vector.multi_reduction <add>, %674, %cst_266 [0] : vector<51x128xf32> to vector<128xf32>
    %676 = vector.shape_cast %675 : vector<128xf32> to vector<1x128xf32>
    %c50 = arith.constant 50 : index
    %c0_267 = arith.constant 0 : index
    %677 = vector.load %arg1[%c50, %c0_267] : memref<51x128xf32, #tpu.memory_space<vmem>>, vector<1x128xf32>
    %678 = arith.mulf %677, %676 : vector<1x128xf32>
    %679 = arith.subf %666, %678 : vector<1x128xf32>
    %c0_268 = arith.constant 0 : index
    %c0_269 = arith.constant 0 : index
    %680 = vector.load %arg5[%c0_268, %c0_269] : memref<1x128xf32, #tpu.memory_space<vmem>>, vector<1x128xf32>
    tpu.vector_store %arg5[%c0_268, %c0_269], %679 {strides = array<i32>} : memref<1x128xf32, #tpu.memory_space<vmem>>, vector<1x128xf32>,
    %681 = arith.mulf %6, %679 : vector<1x128xf32>
    %682 = arith.addf %3, %681 : vector<1x128xf32>
    %683 = vector.shape_cast %682 : vector<1x128xf32> to vector<1x1x128xf32>
    %cst_270 = arith.constant dense<0.000000e+00> : vector<1xf32>
    %684 = vector.multi_reduction <add>, %683, %cst_270 [1, 2] : vector<1x1x128xf32> to vector<1xf32>
    %685 = vector.shape_cast %684 : vector<1xf32> to vector<1x1x1xf32>
    %686 = vector.extract %685[0, 0, 0] : f32 from vector<1x1x1xf32>
    %687 = vector.broadcast %686 : f32 to vector<1x1xf32>
    %c0_271 = arith.constant 0 : index
    %c0_272 = arith.constant 0 : index
    %c0_273 = arith.constant 0 : index
    %688 = vector.load %arg6[%c0_271, %c0_272, %c0_273] : memref<1x1x1xf32, #tpu.memory_space<vmem>>, vector<1x1x1xf32>
    %689 = vector.shape_cast %688 : vector<1x1x1xf32> to vector<1x1xf32>
    %690 = vector.shape_cast %687 : vector<1x1xf32> to vector<1x1x1xf32>
    tpu.vector_store %arg6[%c0_271, %c0_272, %c0_273], %690 {strides = array<i32>} : memref<1x1x1xf32, #tpu.memory_space<vmem>>, vector<1x1x1xf32>,
    return
  }
  func.func @transform_0(%arg0: i32) -> (i32, i32) {
    %c0_i32 = arith.constant 0 : i32
    %c0_i32_0 = arith.constant 0 : i32
    return %c0_i32, %arg0 : i32, i32
  }
  func.func @transform_1(%arg0: i32) -> (i32, i32) {
    %c0_i32 = arith.constant 0 : i32
    %c0_i32_0 = arith.constant 0 : i32
    return %c0_i32, %arg0 : i32, i32
  }
  func.func @transform_2(%arg0: i32) -> (i32, i32) {
    %c0_i32 = arith.constant 0 : i32
    %c0_i32_0 = arith.constant 0 : i32
    return %c0_i32, %arg0 : i32, i32
  }
  func.func @transform_3(%arg0: i32) -> (i32, i32) {
    %c0_i32 = arith.constant 0 : i32
    %c0_i32_0 = arith.constant 0 : i32
    %c0_i32_1 = arith.constant 0 : i32
    return %c0_i32, %c0_i32_0 : i32, i32
  }
  func.func @transform_4(%arg0: i32) -> (i32, i32) {
    %c0_i32 = arith.constant 0 : i32
    %c0_i32_0 = arith.constant 0 : i32
    return %c0_i32, %arg0 : i32, i32
  }
  func.func @transform_5(%arg0: i32) -> (i32, i32, i32) {
    %c0_i32 = arith.constant 0 : i32
    %c0_i32_0 = arith.constant 0 : i32
    %c0_i32_1 = arith.constant 0 : i32
    return %arg0, %c0_i32, %c0_i32_0 : i32, i32, i32
  }
}

</mosaic_0001>

<bundles_post_ra>
// kernel: tpu_custom_call.1
= control target key start
LH: loop header
LB: loop body
LE: loop exit
PB: predicated region body
PF: predicated region fallthrough
CT: control target
= control target key end

     0   :  { %11 = vsyncpa [#allocation3], 0  ;;  %s4888_s0 = inlined_call_operand.vmem [shape: f32[51,128], index: 0, kind: input, shape index: {}]   ;;  %s4889_s1 = inlined_call_operand.hbm [shape: f32[51,128], index: 1, kind: input, shape index: {}]   ;;  %s4890_s2 = inlined_call_operand.hbm [shape: f32[3,128], index: 2, kind: input, shape index: {}]   ;;  %s4891_s3 = inlined_call_operand.vmem [shape: f32[51,1], index: 3, kind: input, shape index: {}]   ;;  %s4892_s4 = inlined_call_operand.hbm [shape: f32[1,128], index: 4, kind: output, shape index: {0}]   ;;  %s4893_s5 = inlined_call_operand.hbm [shape: f32[1,1,1], index: 5, kind: output, shape index: {1}]  }
   0x1   :  { %12 = vsyncpa [#allocation6], 0 }
   0x2   :  { %13 = vsyncpa [#allocation4], 0 }
   0x3   :  { %14 = vsyncpa [#allocation9], 0  ;;  %s21_s20 = sshll.u32 %s4889_s1, 4  ;;  %s3275_s21 = smov [#allocation2]   ;;  %s22_s20 = int_to_ptr.hbm [resolvable:$true] %s21_s20 }
   0x4   :  { %s23_s22 = sshll.u32 %s3275_s21, 4  ;;  %s35_s25 = sshll.u32 %s4890_s2, 4  ;;  %s24_s22 = int_to_ptr.vmem [resolvable:$true] %s23_s22  ;;  %s36_s25 = int_to_ptr.hbm [resolvable:$true] %s35_s25 }
   0x5   :  { %s3276_s26 = smov 128   ;;  %s3277_s27 = smov 8  }
   0x6   :  { %29 = dma.hbm_to_vmem [thread:$0]  %s22_s20, 896, %s24_s22, [#allocation3], %s3276_s26, %s3276_s26, %s3277_s27  }
   0x7   :  { %s3278_s28 = smov [#allocation5]  }
   0x8   :  { %s37_s29 = sshll.u32 %s3278_s28, 4  ;;  %s38_s29 = int_to_ptr.vmem [resolvable:$true] %s37_s29 }
   0x9   :  { %40 = dma.hbm_to_vmem [thread:$0]  %s36_s25, 64, %s38_s29, [#allocation6]  }
   0xa   :  { %3267 = dma.done.wait [#allocation3], 896  }
   0xb   :  { %3268 = vsyncadd [#allocation3], 4294966400 }
   0xc   :  { %3269 = dma.done.wait [#allocation6], 64  }
   0xd   :  { %3270 = vsyncadd [#allocation6], 4294967232  ;;  %v3279_v0 = vmov 0   ;;  %v53_v1 = vld [vmem:[%s4891_s3 + $0x10] sm:$0xff]  ;;  %v51_v2 = vld [vmem:[%s4891_s3] sm:$0xff]  ;;  %vm166_vm0 = vcmask 1042432  }
   0xe   :  { %3139 = vset.pattern.permute.xlu1 %v3279_v0  ;;  %3138 = vset.pattern.permute.xlu0 %v3279_v0  ;;  %v55_v3 = vld [vmem:[%s4891_s3 + $0x20] sm:$0xff]  ;;  %v54_v4 = vld [vmem:[%s4891_s3 + $0x18] sm:$0xff]  ;;  %v52_v5 = vld [vmem:[%s4891_s3 + $0x8] sm:$0xff]  ;;  %vm2731_vm1 = vcmask 1040384   ;;  %s2752_s9 = sshll.u32 %s4892_s4, 4  ;;  %s3280_s10 = smov [#allocation7]   ;;  %s2753_s9 = int_to_ptr.hbm [resolvable:$true] %s2752_s9 }
   0xf   :  { %3140 = vset.pattern.permute.xlu2 %v3279_v0  ;;  %70 = vperm.xlu1 %3139, %v53_v1   ;;  %v56_v6 = vld [vmem:[%s4891_s3 + $0x28] sm:$0xff]  ;;  %v57_v7 = vld [vmem:[%s4891_s3 + $0x30] sm:$0x7]  ;;  %v3339_v8 = vld [vmem:[#allocation5 + $0x1] ss:$0 sm:$0xff]  ;;  %s2750_s11 = sshll.u32 %s3280_s10, 4  ;;  %s2751_s11 = int_to_ptr.vmem [resolvable:$true] %s2750_s11 }
  0x10   :  { %60 = vperm.xlu0 %3138, %v51_v2   ;;  %80 = vperm.xlu2 %3140, %v55_v3   ;;  %v3342_v11 = vld [vmem:[#allocation5] ss:$0 sm:$0xff]  ;;  %v3361_v41 = vld [vmem:[#allocation2 + $0x20] sm:$0xff]  ;;  %v3382_v58 = vld [vmem:[#allocation2 + $0x28] sm:$0xff]  ;;  %s2763_s15 = sshll.u32 %s4893_s5, 4  ;;  %vm2743_vm2 = vcmask 0   ;;  %s2764_s15 = int_to_ptr.hbm [resolvable:$true] %s2763_s15 }
  0x11   :  { %v3392_v3 = vld [vmem:[#allocation2] sm:$0xff] }
  0x17   :  { %75 = vperm.xlu1 %3139, %v54_v4   ;;  %v3394_v4 = vld [vmem:[#allocation2 + $0x10] sm:$0xff] }
  0x18   :  { %65 = vperm.xlu0 %3138, %v52_v5   ;;  %85 = vperm.xlu2 %3140, %v56_v6  }
  0x20   :  { %90 = vperm.xlu0 %3138, %v57_v7  }
  0x6a   :  { %v81_v9 = vpop.permute.xlu2 %80 }
  0x6b   :  { %v108_v10 = vmul.f32 %v3339_v8, %v81_v9 }
  0x6d   :  { %v116_v12 = vadd.f32 %v3342_v11, %v108_v10 }
  0x6f   :  { %v123_v13 = vmax.f32 %v116_v12, 0.0 }
  0x71   :  { %v3346_v16 = vmin.f32 %v123_v13, 50.0 }
  0x72   :  { %v86_v14 = vpop.permute.xlu2 %85 }
  0x73   :  { %v109_v15 = vmul.f32 %v3339_v8, %v86_v14  ;;  %v2783_v19 = vadd.f32 -1.0, %v3346_v16  ;;  %v2790_v20 = vadd.f32 -2.0, %v3346_v16  ;;  %v137_v22 = vand.u32 2147483647, %v3346_v16 }
  0x75   :  { %v117_v17 = vadd.f32 %v3342_v11, %v109_v15  ;;  %v189_v23 = vand.u32 2147483647, %v2783_v19  ;;  %v240_v24 = vand.u32 2147483647, %v2790_v20  ;;  %v144_v27 = vsub.f32 1.0, %v137_v22 }
  0x77   :  { %v124_v18 = vmax.f32 %v117_v17, 0.0  ;;  %v196_v28 = vsub.f32 1.0, %v189_v23  ;;  %v247_v29 = vsub.f32 1.0, %v240_v24  ;;  %v151_v39 = vmax.f32 %v144_v27, 0.0 }
  0x79   :  { %v3351_v21 = vmin.f32 %v124_v18, 50.0  ;;  %v203_v40 = vmax.f32 %v196_v28, 0.0  ;;  %v254_v45 = vmax.f32 %v247_v29, 0.0  ;;  %v3372_v50 = vmul.f32 %v151_v39, %v3361_v41 }
  0x7b   :  { %v2784_v25 = vadd.f32 -1.0, %v3351_v21  ;;  %v2791_v26 = vadd.f32 -2.0, %v3351_v21  ;;  %v138_v32 = vand.u32 2147483647, %v3351_v21  ;;  %v3375_v51 = vmul.f32 %v203_v40, %v3361_v41 }
  0x7c   :  { %v3380_v57 = vmul.f32 %v254_v45, %v3361_v41  ;;  %v3415_v45 = vld [vmem:[#allocation2 + $0x8] sm:$0xff] }
  0x7d   :  { %v190_v33 = vand.u32 2147483647, %v2784_v25  ;;  %v241_v34 = vand.u32 2147483647, %v2791_v26  ;;  %v145_v42 = vsub.f32 1.0, %v138_v32 }
  0x7f   :  { %v3363_v43 = vsub.f32 1.0, %v190_v33  ;;  %v3365_v44 = vsub.f32 1.0, %v241_v34  ;;  %v152_v54 = vmax.f32 %v145_v42, 0.0 }
  0x81   :  { %v71_v30 = vpop.permute.xlu1 %70  ;;  %v204_v55 = vmax.f32 %v3363_v43, 0.0  ;;  %v255_v56 = vmax.f32 %v3365_v44, 0.0  ;;  %v3399_v10 = vmul.f32 %v152_v54, %v3382_v58 }
  0x82   :  { %v61_v31 = vpop.permute.xlu0 %60  ;;  %v106_v36 = vmul.f32 %v3339_v8, %v71_v30 }
  0x83   :  { %v104_v35 = vmul.f32 %v3339_v8, %v61_v31 }
  0x84   :  { %v114_v38 = vadd.f32 %v3342_v11, %v106_v36 }
  0x85   :  { %v112_v37 = vadd.f32 %v3342_v11, %v104_v35 }
  0x86   :  { %v121_v47 = vmax.f32 %v114_v38, 0.0 }
  0x87   :  { %v119_v46 = vmax.f32 %v112_v37, 0.0 }
  0x88   :  { %v3369_v49 = vmin.f32 %v121_v47, 50.0 }
  0x89   :  { %v3367_v48 = vmin.f32 %v119_v46, 50.0  ;;  %v76_v52 = vpop.permute.xlu1 %75  ;;  %v3417_v46 = vld [vmem:[#allocation2 + $0x18] sm:$0xff] }
  0x8a   :  { %v66_v53 = vpop.permute.xlu0 %65  ;;  %v107_v60 = vmul.f32 %v3339_v8, %v76_v52  ;;  %v135_v62 = vand.u32 2147483647, %v3369_v49  ;;  %v2781_v0 = vadd.f32 -1.0, %v3369_v49  ;;  %v2788_v2 = vadd.f32 -2.0, %v3369_v49 }
  0x8b   :  { %v105_v59 = vmul.f32 %v3339_v8, %v66_v53  ;;  %v133_v61 = vand.u32 2147483647, %v3367_v48  ;;  %v2779_v63 = vadd.f32 -1.0, %v3367_v48  ;;  %v2786_v1 = vadd.f32 -2.0, %v3367_v48 }
  0x8c   :  { %v115_v6 = vadd.f32 %v3342_v11, %v107_v60  ;;  %v142_v9 = vsub.f32 1.0, %v135_v62  ;;  %v187_v13 = vand.u32 2147483647, %v2781_v0  ;;  %v238_v23 = vand.u32 2147483647, %v2788_v2 }
  0x8d   :  { %v113_v5 = vadd.f32 %v3342_v11, %v105_v59  ;;  %v140_v7 = vsub.f32 1.0, %v133_v61  ;;  %v185_v12 = vand.u32 2147483647, %v2779_v63  ;;  %v236_v14 = vand.u32 2147483647, %v2786_v1 }
  0x8e   :  { %v122_v17 = vmax.f32 %v115_v6, 0.0  ;;  %v149_v19 = vmax.f32 %v142_v9, 0.0  ;;  %v194_v22 = vsub.f32 1.0, %v187_v13  ;;  %v245_v32 = vsub.f32 1.0, %v238_v23 }
  0x8f   :  { %v120_v15 = vmax.f32 %v113_v5, 0.0  ;;  %v147_v18 = vmax.f32 %v140_v7, 0.0  ;;  %v192_v20 = vsub.f32 1.0, %v185_v12  ;;  %v243_v24 = vsub.f32 1.0, %v236_v14 }
  0x90   :  { %v3403_v26 = vmin.f32 %v122_v17, 50.0  ;;  %v156_v28 = vmul.f32 %v149_v19, %v3394_v4  ;;  %v201_v31 = vmax.f32 %v194_v22, 0.0  ;;  %v252_v61 = vmax.f32 %v245_v32, 0.0 }
  0x91   :  { %v3401_v25 = vmin.f32 %v120_v15, 50.0  ;;  %v154_v27 = vmul.f32 %v147_v18, %v3392_v3  ;;  %v199_v30 = vmax.f32 %v192_v20, 0.0  ;;  %v250_v33 = vmax.f32 %v243_v24, 0.0 }
  0x92   :  { %v91_v29 = vpop.permute.xlu0 %90  ;;  %v136_v36 = vand.u32 2147483647, %v3403_v26  ;;  %v2782_v38 = vadd.f32 -1.0, %v3403_v26  ;;  %v208_v40 = vmul.f32 %v201_v31, %v3394_v4  ;;  %v2789_v59 = vadd.f32 -2.0, %v3403_v26 }
  0x93   :  { %v110_v34 = vmul.f32 %v3339_v8, %v91_v29  ;;  %v134_v35 = vand.u32 2147483647, %v3401_v25  ;;  %v2780_v37 = vadd.f32 -1.0, %v3401_v25  ;;  %v206_v39 = vmul.f32 %v199_v30, %v3392_v3 }
  0x94   :  { %v2787_v42 = vadd.f32 -2.0, %v3401_v25  ;;  %v143_v52 = vsub.f32 1.0, %v136_v36  ;;  %v188_v54 = vand.u32 2147483647, %v2782_v38  ;;  %v239_v5 = vand.u32 2147483647, %v2789_v59 }
  0x95   :  { %v118_v8 = vadd.f32 %v3342_v11, %v110_v34  ;;  %v141_v47 = vsub.f32 1.0, %v134_v35  ;;  %v186_v53 = vand.u32 2147483647, %v2780_v37  ;;  %v257_v7 = vmul.f32 %v250_v33, %v3392_v3  ;;  %v3433_v36 = vld [vmem:[#allocation2 + $0x30] sm:$0x7] }
  0x96   :  { %v237_v60 = vand.u32 2147483647, %v2787_v42  ;;  %v150_v0 = vmax.f32 %v143_v52, 0.0  ;;  %v195_v2 = vsub.f32 1.0, %v188_v54  ;;  %v246_v15 = vsub.f32 1.0, %v239_v5 }
  0x97   :  { %v125_v62 = vmax.f32 %v118_v8, 0.0  ;;  %v148_v63 = vmax.f32 %v141_v47, 0.0  ;;  %v193_v1 = vsub.f32 1.0, %v186_v53  ;;  %v259_v18 = vmul.f32 %v252_v61, %v3394_v4 }
  0x98   :  { %v244_v6 = vsub.f32 1.0, %v237_v60  ;;  %v157_v12 = vmul.f32 %v150_v0, %v3417_v46  ;;  %v202_v14 = vmax.f32 %v195_v2, 0.0  ;;  %v253_v30 = vmax.f32 %v246_v15, 0.0 }
  0x99   :  { %v3422_v9 = vmin.f32 %v125_v62, 50.0  ;;  %v155_v11 = vmul.f32 %v148_v63, %v3415_v45  ;;  %v200_v13 = vmax.f32 %v193_v1, 0.0  ;;  %v2793_v42 = vadd.f32 -3.0, %v3367_v48 }
  0x9a   :  { %v251_v17 = vmax.f32 %v244_v6, 0.0  ;;  %v209_v24 = vmul.f32 %v202_v14, %v3417_v46  ;;  %v2794_v60 = vadd.f32 -3.0, %v3401_v25  ;;  %v2796_v2 = vadd.f32 -3.0, %v3403_v26 }
  0x9b   :  { %v139_v19 = vand.u32 2147483647, %v3422_v9  ;;  %v161_v20 = vadd.f32 %v155_v11, %v154_v27  ;;  %v2785_v22 = vadd.f32 -1.0, %v3422_v9  ;;  %v207_v23 = vmul.f32 %v200_v13, %v3415_v45 }
  0x9c   :  { %v2792_v29 = vadd.f32 -2.0, %v3422_v9  ;;  %v258_v31 = vmul.f32 %v251_v17, %v3415_v45  ;;  %v260_v27 = vmul.f32 %v253_v30, %v3417_v46  ;;  %v2799_v5 = vadd.f32 -3.0, %v3422_v9 }
  0x9d   :  { %v146_v32 = vsub.f32 1.0, %v139_v19  ;;  %v162_v33 = vadd.f32 %v161_v20, %v156_v28  ;;  %v191_v34 = vand.u32 2147483647, %v2785_v22  ;;  %v213_v35 = vadd.f32 %v207_v23, %v206_v39 }
  0x9e   :  { %v242_v37 = vand.u32 2147483647, %v2792_v29  ;;  %v264_v38 = vadd.f32 %v258_v31, %v257_v7  ;;  %v2795_v28 = vadd.f32 -3.0, %v3369_v49  ;;  %v287_v13 = vand.u32 2147483647, %v2793_v42 }
  0x9f   :  { %v153_v8 = vmax.f32 %v146_v32, 0.0  ;;  %v163_v47 = vadd.f32 %v162_v33, %v157_v12  ;;  %v198_v52 = vsub.f32 1.0, %v191_v34  ;;  %v214_v53 = vadd.f32 %v213_v35, %v208_v40 }
  0xa0   :  { %v249_v54 = vsub.f32 1.0, %v242_v37  ;;  %v265_v59 = vadd.f32 %v264_v38, %v259_v18  ;;  %v2797_v12 = vadd.f32 -3.0, %v3346_v16  ;;  %v211_v15 = vmul.f32 %v204_v55, %v3382_v58 }
  0xa1   :  { %v160_v39 = vmul.f32 %v153_v8, %v3433_v36  ;;  %v164_v61 = vadd.f32 %v163_v47, %v3372_v50  ;;  %v205_v62 = vmax.f32 %v198_v52, 0.0  ;;  %v215_v63 = vadd.f32 %v214_v53, %v209_v24 }
  0xa2   :  { %v256_v0 = vmax.f32 %v249_v54, 0.0  ;;  %v266_v1 = vadd.f32 %v265_v59, %v260_v27  ;;  %v288_v50 = vand.u32 2147483647, %v2794_v60  ;;  %v289_v18 = vand.u32 2147483647, %v2795_v28 }
  0xa3   :  { %v165_v40 = vadd.f32 %v164_v61, %v3399_v10  ;;  %v167_v6 = vsel %vm166_vm0, %v160_v39, 0.0  ;;  %v212_v7 = vmul.f32 %v205_v62, %v3433_v36  ;;  %v216_v11 = vadd.f32 %v215_v63, %v3375_v51 }
  0xa4   :  { %v267_v17 = vadd.f32 %v266_v1, %v3380_v57  ;;  %v263_v10 = vmul.f32 %v256_v0, %v3433_v36  ;;  %v2798_v19 = vadd.f32 -3.0, %v3351_v21  ;;  %v290_v20 = vand.u32 2147483647, %v2796_v2 }
  0xa5   :  { %v168_v14 = vadd.f32 %v167_v6, %v165_v40  ;;  %v217_v22 = vadd.f32 %v216_v11, %v211_v15  ;;  %v218_v51 = vsel %vm166_vm0, %v212_v7, 0.0  ;;  %v262_v23 = vmul.f32 %v255_v56, %v3382_v58 }
  0xa6   :  { %v293_v24 = vand.u32 2147483647, %v2799_v5  ;;  %v291_v29 = vand.u32 2147483647, %v2797_v12  ;;  %v294_v30 = vsub.f32 1.0, %v287_v13  ;;  %v295_v43 = vsub.f32 1.0, %v288_v50 }
  0xa7   :  { %v296_v55 = vsub.f32 1.0, %v289_v18  ;;  %v169_v31 = vrot.slane %v168_v14, 4  ;;  %v268_v57 = vadd.f32 %v267_v17, %v262_v23  ;;  %v269_v32 = vsel %vm166_vm0, %v263_v10, 0.0 }
  0xa8   :  { %v292_v33 = vand.u32 2147483647, %v2798_v19  ;;  %v297_v34 = vsub.f32 1.0, %v290_v20  ;;  %v301_v35 = vmax.f32 %v294_v30, 0.0  ;;  %v219_v37 = vadd.f32 %v218_v51, %v217_v22 }
  0xa9   :  { %v300_v27 = vsub.f32 1.0, %v293_v24  ;;  %v302_v38 = vmax.f32 %v295_v43, 0.0  ;;  %v298_v42 = vsub.f32 1.0, %v291_v29  ;;  %v303_v8 = vmax.f32 %v296_v55, 0.0 }
  0xaa   :  { %v170_v47 = vadd.f32 %v169_v31, %v168_v14  ;;  %v270_v44 = vadd.f32 %v269_v32, %v268_v57  ;;  %v299_v56 = vsub.f32 1.0, %v292_v33  ;;  %v304_v52 = vmax.f32 %v297_v34, 0.0 }
  0xab   :  { %v308_v53 = vmul.f32 %v301_v35, %v3392_v3  ;;  %v309_v54 = vmul.f32 %v302_v38, %v3415_v45  ;;  %v220_v59 = vrot.slane %v219_v37, 4  ;;  %v307_v60 = vmax.f32 %v300_v27, 0.0 }
  0xac   :  { %v305_v28 = vmax.f32 %v298_v42, 0.0  ;;  %v310_v39 = vmul.f32 %v303_v8, %v3394_v4  ;;  %v2800_v62 = vadd.f32 -4.0, %v3367_v48  ;;  %v171_v63 = vrot.slane %v170_v47, 2 }
  0xad   :  { %v315_v61 = vadd.f32 %v309_v54, %v308_v53  ;;  %v271_v0 = vrot.slane %v270_v44, 4  ;;  %v2801_v1 = vadd.f32 -4.0, %v3401_v25  ;;  %v2802_v2 = vadd.f32 -4.0, %v3369_v49 }
  0xae   :  { %v306_v5 = vmax.f32 %v299_v56, 0.0  ;;  %v311_v40 = vmul.f32 %v304_v52, %v3417_v46  ;;  %v2803_v7 = vadd.f32 -4.0, %v3403_v26  ;;  %v221_v11 = vadd.f32 %v220_v59, %v219_v37 }
  0xaf   :  { %v316_v6 = vadd.f32 %v315_v61, %v310_v39  ;;  %v314_v12 = vmul.f32 %v307_v60, %v3433_v36  ;;  %v2804_v13 = vadd.f32 -4.0, %v3346_v16  ;;  %v2805_v50 = vadd.f32 -4.0, %v3351_v21 }
  0xb0   :  { %v312_v14 = vmul.f32 %v305_v28, %v3361_v41  ;;  %v2806_v17 = vadd.f32 -4.0, %v3422_v9  ;;  %v338_v18 = vand.u32 2147483647, %v2800_v62  ;;  %v3472_v10 = vadd.f32 %v171_v63, %v170_v47 }
  0xb1   :  { %v317_v15 = vadd.f32 %v316_v6, %v311_v40  ;;  %v3474_v19 = vadd.f32 %v271_v0, %v270_v44  ;;  %v339_v20 = vand.u32 2147483647, %v2801_v1  ;;  %v340_v22 = vand.u32 2147483647, %v2802_v2 }
  0xb2   :  { %v313_v51 = vmul.f32 %v306_v5, %v3382_v58  ;;  %v341_v24 = vand.u32 2147483647, %v2803_v7  ;;  %v342_v29 = vand.u32 2147483647, %v2804_v13  ;;  %v320_v30 = vsel %vm166_vm0, %v314_v12, 0.0 }
  0xb3   :  { %v318_v23 = vadd.f32 %v317_v15, %v312_v14  ;;  %v343_v43 = vand.u32 2147483647, %v2805_v50  ;;  %v344_v55 = vand.u32 2147483647, %v2806_v17  ;;  %v345_v31 = vsub.f32 1.0, %v338_v18 }
  0xb4   :  { %v346_v32 = vsub.f32 1.0, %v339_v20  ;;  %v347_v33 = vsub.f32 1.0, %v340_v22  ;;  %v348_v34 = vsub.f32 1.0, %v341_v24  ;;  %v222_v35 = vrot.slane %v221_v11, 2 }
  0xb5   :  { %v319_v57 = vadd.f32 %v318_v23, %v313_v51  ;;  %v349_v37 = vsub.f32 1.0, %v342_v29  ;;  %v350_v27 = vsub.f32 1.0, %v343_v43  ;;  %v351_v38 = vsub.f32 1.0, %v344_v55 }
  0xb6   :  { %v352_v8 = vmax.f32 %v345_v31, 0.0  ;;  %v353_v47 = vmax.f32 %v346_v32, 0.0  ;;  %v354_v44 = vmax.f32 %v347_v33, 0.0  ;;  %v273_v56 = vrot.slane %v3474_v19, 2 }
  0xb7   :  { %v321_v42 = vadd.f32 %v320_v30, %v319_v57  ;;  %v355_v52 = vmax.f32 %v348_v34, 0.0  ;;  %v173_v53 = vrot.slane %v3472_v10, 1  ;;  %v356_v54 = vmax.f32 %v349_v37, 0.0 }
  0xb8   :  { %v359_v59 = vmul.f32 %v352_v8, %v3392_v3  ;;  %v360_v60 = vmul.f32 %v353_v47, %v3415_v45  ;;  %v3482_v28 = vadd.f32 %v222_v35, %v221_v11  ;;  %v357_v61 = vmax.f32 %v350_v27, 0.0 }
  0xb9   :  { %v322_v39 = vrot.slane %v321_v42, 4  ;;  %v358_v62 = vmax.f32 %v351_v38, 0.0  ;;  %v361_v63 = vmul.f32 %v354_v44, %v3394_v4  ;;  %v2807_v1 = vadd.f32 -5.0, %v3367_v48 }
  0xba   :  { %v366_v0 = vadd.f32 %v360_v60, %v359_v59  ;;  %v2808_v2 = vadd.f32 -5.0, %v3401_v25  ;;  %v362_v5 = vmul.f32 %v355_v52, %v3417_v46  ;;  %v2809_v40 = vadd.f32 -5.0, %v3369_v49 }
  0xbb   :  { %v2810_v6 = vadd.f32 -5.0, %v3403_v26  ;;  %v2811_v7 = vadd.f32 -5.0, %v3346_v16  ;;  %v363_v11 = vmul.f32 %v356_v54, %v3361_v41  ;;  %v2812_v13 = vadd.f32 -5.0, %v3351_v21 }
  0xbc   :  { %v367_v12 = vadd.f32 %v366_v0, %v361_v63  ;;  %v2813_v50 = vadd.f32 -5.0, %v3422_v9  ;;  %v365_v14 = vmul.f32 %v358_v62, %v3433_v36  ;;  %v389_v15 = vand.u32 2147483647, %v2807_v1 }
  0xbd   :  { %v390_v17 = vand.u32 2147483647, %v2808_v2  ;;  %v391_v18 = vand.u32 2147483647, %v2809_v40  ;;  %v364_v20 = vmul.f32 %v357_v61, %v3382_v58  ;;  %v392_v51 = vand.u32 2147483647, %v2810_v6 }
  0xbe   :  { %v368_v22 = vadd.f32 %v367_v12, %v362_v5  ;;  %v393_v23 = vand.u32 2147483647, %v2811_v7  ;;  %v394_v24 = vand.u32 2147483647, %v2812_v13  ;;  %v395_v29 = vand.u32 2147483647, %v2813_v50 }
  0xbf   :  { %v396_v30 = vsub.f32 1.0, %v389_v15  ;;  %v397_v43 = vsub.f32 1.0, %v390_v17  ;;  %v3496_v55 = vadd.f32 %v322_v39, %v321_v42  ;;  %v398_v57 = vsub.f32 1.0, %v391_v18 }
  0xc0   :  { %v369_v31 = vadd.f32 %v368_v22, %v363_v11  ;;  %v399_v32 = vsub.f32 1.0, %v392_v51  ;;  %v371_v33 = vsel %vm166_vm0, %v365_v14, 0.0  ;;  %v400_v34 = vsub.f32 1.0, %v393_v23 }
  0xc1   :  { %v402_v35 = vsub.f32 1.0, %v395_v29  ;;  %v403_v37 = vmax.f32 %v396_v30, 0.0  ;;  %v401_v38 = vsub.f32 1.0, %v394_v24  ;;  %v404_v8 = vmax.f32 %v397_v43, 0.0 }
  0xc2   :  { %v370_v27 = vadd.f32 %v369_v31, %v364_v20  ;;  %v405_v47 = vmax.f32 %v398_v57, 0.0  ;;  %v3500_v44 = vadd.f32 %v273_v56, %v3474_v19  ;;  %v406_v52 = vmax.f32 %v399_v32, 0.0  ;;  %v175_v57 = vld [vmem:[%s4888_s0] sm:$0x1] }
  0xc3   :  { %v409_v59 = vmax.f32 %v402_v35, 0.0  ;;  %v410_v42 = vmul.f32 %v403_v37, %v3392_v3  ;;  %v411_v60 = vmul.f32 %v404_v8, %v3415_v45  ;;  %v174_v39 = vadd.f32 %v173_v53, %v3472_v10 }
  0xc4   :  { %v372_v54 = vadd.f32 %v371_v33, %v370_v27  ;;  %v224_v61 = vrot.slane %v3482_v28, 1  ;;  %v324_v62 = vrot.slane %v3496_v55, 2  ;;  %v407_v63 = vmax.f32 %v400_v34, 0.0 }
  0xc5   :  { %v408_v0 = vmax.f32 %v401_v38, 0.0  ;;  %v412_v1 = vmul.f32 %v405_v47, %v3394_v4  ;;  %v413_v19 = vmul.f32 %v406_v52, %v3417_v46  ;;  %v417_v56 = vadd.f32 %v411_v60, %v410_v42 }
  0xc6   :  { %v2814_v2 = vadd.f32 -6.0, %v3367_v48  ;;  %v2815_v5 = vadd.f32 -6.0, %v3401_v25  ;;  %v2816_v40 = vadd.f32 -6.0, %v3369_v49  ;;  %v2817_v6 = vadd.f32 -6.0, %v3403_v26 }
  0xc7   :  { %v373_v10 = vrot.slane %v372_v54, 4  ;;  %v416_v53 = vmul.f32 %v409_v59, %v3433_v36  ;;  %v418_v7 = vadd.f32 %v417_v56, %v412_v1  ;;  %v2818_v11 = vadd.f32 -6.0, %v3346_v16 }
  0xc8   :  { %v2819_v12 = vadd.f32 -6.0, %v3351_v21  ;;  %v2820_v13 = vadd.f32 -6.0, %v3422_v9  ;;  %v440_v50 = vand.u32 2147483647, %v2814_v2  ;;  %v441_v14 = vand.u32 2147483647, %v2815_v5 }
  0xc9   :  { %v414_v15 = vmul.f32 %v407_v63, %v3361_v41  ;;  %v419_v17 = vadd.f32 %v418_v7, %v413_v19  ;;  %v442_v18 = vand.u32 2147483647, %v2816_v40  ;;  %v443_v20 = vand.u32 2147483647, %v2817_v6 }
  0xca   :  { %v415_v22 = vmul.f32 %v408_v0, %v3382_v58  ;;  %v444_v51 = vand.u32 2147483647, %v2818_v11  ;;  %v445_v23 = vand.u32 2147483647, %v2819_v12  ;;  %v446_v24 = vand.u32 2147483647, %v2820_v13 }
  0xcb   :  { %v3519_v29 = vadd.f32 %v373_v10, %v372_v54  ;;  %v420_v30 = vadd.f32 %v419_v17, %v414_v15  ;;  %v447_v43 = vsub.f32 1.0, %v440_v50  ;;  %v448_v31 = vsub.f32 1.0, %v441_v14 }
  0xcc   :  { %v422_v32 = vsel %vm166_vm0, %v416_v53, 0.0  ;;  %v449_v33 = vsub.f32 1.0, %v442_v18  ;;  %v450_v34 = vsub.f32 1.0, %v443_v20  ;;  %v451_v35 = vsub.f32 1.0, %v444_v51 }
  0xcd   :  { %v421_v37 = vadd.f32 %v420_v30, %v415_v22  ;;  %v452_v27 = vsub.f32 1.0, %v445_v23  ;;  %v453_v38 = vsub.f32 1.0, %v446_v24  ;;  %v454_v8 = vmax.f32 %v447_v43, 0.0 }
  0xce   :  { %v455_v47 = vmax.f32 %v448_v31, 0.0  ;;  %v456_v52 = vmax.f32 %v449_v33, 0.0  ;;  %v3525_v54 = vmul.f32 %v175_v57, %v174_v39  ;;  %v275_v59 = vrot.slane %v3500_v44, 1 }
  0xcf   :  { %v423_v42 = vadd.f32 %v422_v32, %v421_v37  ;;  %v457_v60 = vmax.f32 %v450_v34, 0.0  ;;  %v225_v63 = vadd.f32 %v224_v61, %v3482_v28  ;;  %v458_v0 = vmax.f32 %v451_v35, 0.0 }
  0xd0   :  { %v461_v1 = vmul.f32 %v454_v8, %v3392_v3  ;;  %v462_v19 = vmul.f32 %v455_v47, %v3415_v45  ;;  %v3532_v56 = vadd.f32 %v324_v62, %v3496_v55  ;;  %v375_v2 = vrot.slane %v3519_v29, 2 }
  0xd1   :  { %v459_v5 = vmax.f32 %v452_v27, 0.0  ;;  %v460_v40 = vmax.f32 %v453_v38, 0.0  ;;  %v463_v39 = vmul.f32 %v456_v52, %v3394_v4  ;;  %v2821_v10 = vadd.f32 -7.0, %v3367_v48  ;;  %v226_v38 = vld [vmem:[%s4888_s0 + $0x1] sm:$0x1] }
  0xd2   :  { %v468_v6 = vadd.f32 %v462_v19, %v461_v1  ;;  %v2822_v53 = vadd.f32 -7.0, %v3401_v25  ;;  %v424_v28 = vrot.slane %v423_v42, 4  ;;  %v464_v61 = vmul.f32 %v457_v60, %v3417_v46 }
  0xd3   :  { %v2823_v7 = vadd.f32 -7.0, %v3369_v49  ;;  %v2824_v11 = vadd.f32 -7.0, %v3403_v26  ;;  %v465_v55 = vmul.f32 %v458_v0, %v3361_v41  ;;  %v2825_v12 = vadd.f32 -7.0, %v3346_v16 }
  0xd4   :  { %v469_v62 = vadd.f32 %v468_v6, %v463_v39  ;;  %v2826_v13 = vadd.f32 -7.0, %v3351_v21  ;;  %v466_v50 = vmul.f32 %v459_v5, %v3382_v58  ;;  %v2827_v14 = vadd.f32 -7.0, %v3422_v9 }
  0xd5   :  { %v491_v15 = vand.u32 2147483647, %v2821_v10  ;;  %v492_v17 = vand.u32 2147483647, %v2822_v53  ;;  %v493_v20 = vand.u32 2147483647, %v2823_v7  ;;  %v467_v23 = vmul.f32 %v460_v40, %v3433_v36 }
  0xd6   :  { %v470_v18 = vadd.f32 %v469_v62, %v464_v61  ;;  %v494_v22 = vand.u32 2147483647, %v2824_v11  ;;  %v495_v51 = vand.u32 2147483647, %v2825_v12  ;;  %v496_v24 = vand.u32 2147483647, %v2826_v13 }
  0xd7   :  { %v497_v30 = vand.u32 2147483647, %v2827_v14  ;;  %v498_v43 = vsub.f32 1.0, %v491_v15  ;;  %v499_v57 = vsub.f32 1.0, %v492_v17  ;;  %v500_v32 = vsub.f32 1.0, %v493_v20 }
  0xd8   :  { %v471_v31 = vadd.f32 %v470_v18, %v465_v55  ;;  %v501_v33 = vsub.f32 1.0, %v494_v22  ;;  %v3547_v34 = vadd.f32 %v424_v28, %v423_v42  ;;  %v502_v35 = vsub.f32 1.0, %v495_v51 }
  0xd9   :  { %v503_v37 = vsub.f32 1.0, %v496_v24  ;;  %v504_v27 = vsub.f32 1.0, %v497_v30  ;;  %v505_v47 = vmax.f32 %v498_v43, 0.0  ;;  %v506_v52 = vmax.f32 %v499_v57, 0.0 }
  0xda   :  { %v472_v8 = vadd.f32 %v471_v31, %v466_v50  ;;  %v507_v60 = vmax.f32 %v500_v32, 0.0  ;;  %v177_v0 = vsub.f32 0.0, %v3525_v54  ;;  %v276_v1 = vadd.f32 %v275_v59, %v3500_v44  ;;  %v277_v31 = vld [vmem:[%s4888_s0 + $0x2] sm:$0x1] }
  0xdb   :  { %v473_v19 = vsel %vm166_vm0, %v467_v23, 0.0  ;;  %v508_v5 = vmax.f32 %v501_v33, 0.0  ;;  %v509_v42 = vmax.f32 %v502_v35, 0.0  ;;  %v511_v40 = vmax.f32 %v504_v27, 0.0 }
  0xdc   :  { %v512_v39 = vmul.f32 %v505_v47, %v3392_v3  ;;  %v513_v6 = vmul.f32 %v506_v52, %v3415_v45  ;;  %v227_v10 = vmul.f32 %v226_v38, %v225_v63  ;;  %v326_v53 = vrot.slane %v3532_v56, 1 }
  0xdd   :  { %v3559_v28 = vadd.f32 %v375_v2, %v3519_v29  ;;  %v426_v61 = vrot.slane %v3547_v34, 2  ;;  %v474_v54 = vadd.f32 %v473_v19, %v472_v8  ;;  %v510_v7 = vmax.f32 %v503_v37, 0.0 }
  0xde   :  { %v514_v44 = vmul.f32 %v507_v60, %v3394_v4  ;;  %v519_v59 = vadd.f32 %v513_v6, %v512_v39  ;;  %v515_v11 = vmul.f32 %v508_v5, %v3417_v46  ;;  %v2828_v55 = vadd.f32 -8.0, %v3367_v48 }
  0xdf   :  { %v2829_v62 = vadd.f32 -8.0, %v3401_v25  ;;  %v2830_v63 = vadd.f32 -8.0, %v3369_v49  ;;  %v516_v12 = vmul.f32 %v509_v42, %v3361_v41  ;;  %v518_v29 = vmul.f32 %v511_v40, %v3433_v36 }
  0xe0   :  { %v520_v2 = vadd.f32 %v519_v59, %v514_v44  ;;  %v2831_v13 = vadd.f32 -8.0, %v3403_v26  ;;  %v2832_v50 = vadd.f32 -8.0, %v3346_v16  ;;  %v2833_v14 = vadd.f32 -8.0, %v3351_v21 }
  0xe1   :  { %v2834_v15 = vadd.f32 -8.0, %v3422_v9  ;;  %v542_v17 = vand.u32 2147483647, %v2828_v55  ;;  %v475_v18 = vrot.slane %v474_v54, 4  ;;  %v543_v22 = vand.u32 2147483647, %v2829_v62 }
  0xe2   :  { %v521_v20 = vadd.f32 %v520_v2, %v515_v11  ;;  %v544_v51 = vand.u32 2147483647, %v2830_v63  ;;  %v517_v23 = vmul.f32 %v510_v7, %v3382_v58  ;;  %v545_v24 = vand.u32 2147483647, %v2831_v13 }
  0xe3   :  { %v546_v30 = vand.u32 2147483647, %v2832_v50  ;;  %v547_v43 = vand.u32 2147483647, %v2833_v14  ;;  %v524_v32 = vsel %vm166_vm0, %v518_v29, 0.0  ;;  %v549_v35 = vsub.f32 1.0, %v542_v17 }
  0xe4   :  { %v522_v57 = vadd.f32 %v521_v20, %v516_v12  ;;  %v548_v33 = vand.u32 2147483647, %v2834_v15  ;;  %v550_v37 = vsub.f32 1.0, %v543_v22  ;;  %v551_v27 = vsub.f32 1.0, %v544_v51 }
  0xe5   :  { %v552_v38 = vsub.f32 1.0, %v545_v24  ;;  %v553_v8 = vsub.f32 1.0, %v546_v30  ;;  %v3578_v47 = vadd.f32 %v475_v18, %v474_v54  ;;  %v554_v60 = vsub.f32 1.0, %v547_v43 }
  0xe6   :  { %v523_v52 = vadd.f32 %v522_v57, %v517_v23  ;;  %v555_v19 = vsub.f32 1.0, %v548_v33  ;;  %v3580_v5 = vmul.f32 %v277_v31, %v276_v1  ;;  %v556_v42 = vmax.f32 %v549_v35, 0.0 }
  0xe7   :  { %v557_v40 = vmax.f32 %v550_v37, 0.0  ;;  %v558_v39 = vmax.f32 %v551_v27, 0.0  ;;  %v3582_v6 = vsub.f32 %v177_v0, %v227_v10  ;;  %v559_v44 = vmax.f32 %v552_v38, 0.0 }
  0xe8   :  { %v525_v7 = vadd.f32 %v524_v32, %v523_v52  ;;  %v560_v59 = vmax.f32 %v553_v8, 0.0  ;;  %v327_v11 = vadd.f32 %v326_v53, %v3532_v56  ;;  %v561_v55 = vmax.f32 %v554_v60, 0.0  ;;  %v328_v8 = vld [vmem:[%s4888_s0 + $0x3] sm:$0x1] }
  0xe9   :  { %v563_v62 = vmul.f32 %v556_v42, %v3392_v3  ;;  %v564_v54 = vmul.f32 %v557_v40, %v3415_v45  ;;  %v377_v63 = vrot.slane %v3559_v28, 1  ;;  %v3589_v1 = vadd.f32 %v426_v61, %v3547_v34 }
  0xea   :  { %v477_v12 = vrot.slane %v3578_v47, 2  ;;  %v562_v29 = vmax.f32 %v555_v19, 0.0  ;;  %v526_v0 = vrot.slane %v525_v7, 4  ;;  %v565_v10 = vmul.f32 %v558_v39, %v3394_v4 }
  0xeb   :  { %v570_v2 = vadd.f32 %v564_v54, %v563_v62  ;;  %v2835_v13 = vadd.f32 -9.0, %v3367_v48  ;;  %v566_v56 = vmul.f32 %v559_v44, %v3417_v46  ;;  %v567_v53 = vmul.f32 %v560_v59, %v3361_v41 }
  0xec   :  { %v2836_v50 = vadd.f32 -9.0, %v3401_v25  ;;  %v2837_v14 = vadd.f32 -9.0, %v3369_v49  ;;  %v568_v34 = vmul.f32 %v561_v55, %v3382_v58  ;;  %v2838_v15 = vadd.f32 -9.0, %v3403_v26 }
  0xed   :  { %v571_v61 = vadd.f32 %v570_v2, %v565_v10  ;;  %v2839_v17 = vadd.f32 -9.0, %v3346_v16  ;;  %v569_v18 = vmul.f32 %v562_v29, %v3433_v36  ;;  %v2840_v20 = vadd.f32 -9.0, %v3351_v21 }
  0xee   :  { %v2841_v22 = vadd.f32 -9.0, %v3422_v9  ;;  %v593_v51 = vand.u32 2147483647, %v2835_v13  ;;  %v594_v24 = vand.u32 2147483647, %v2836_v50  ;;  %v3604_v31 = vadd.f32 %v526_v0, %v525_v7 }
  0xef   :  { %v572_v23 = vadd.f32 %v571_v61, %v566_v56  ;;  %v595_v30 = vand.u32 2147483647, %v2837_v14  ;;  %v596_v43 = vand.u32 2147483647, %v2838_v15  ;;  %v597_v57 = vand.u32 2147483647, %v2839_v17 }
  0xf0   :  { %v598_v32 = vand.u32 2147483647, %v2840_v20  ;;  %v599_v33 = vand.u32 2147483647, %v2841_v22  ;;  %v600_v37 = vsub.f32 1.0, %v593_v51  ;;  %v601_v27 = vsub.f32 1.0, %v594_v24 }
  0xf1   :  { %v573_v35 = vadd.f32 %v572_v23, %v567_v53  ;;  %v602_v38 = vsub.f32 1.0, %v595_v30  ;;  %v575_v52 = vsel %vm166_vm0, %v569_v18, 0.0  ;;  %v603_v60 = vsub.f32 1.0, %v596_v43 }
  0xf2   :  { %v604_v19 = vsub.f32 1.0, %v597_v57  ;;  %v605_v42 = vsub.f32 1.0, %v598_v32  ;;  %v606_v39 = vsub.f32 1.0, %v599_v33  ;;  %v607_v7 = vmax.f32 %v600_v37, 0.0 }
  0xf3   :  { %v574_v40 = vadd.f32 %v573_v35, %v568_v34  ;;  %v608_v44 = vmax.f32 %v601_v27, 0.0  ;;  %v279_v59 = vsub.f32 %v3582_v6, %v3580_v5  ;;  %v609_v55 = vmax.f32 %v602_v38, 0.0  ;;  %v379_v38 = vld [vmem:[%s4888_s0 + $0x4] sm:$0x1] }
  0xf4   :  { %v610_v62 = vmax.f32 %v603_v60, 0.0  ;;  %v329_v54 = vmul.f32 %v328_v8, %v327_v11  ;;  %v378_v29 = vadd.f32 %v377_v63, %v3559_v28  ;;  %v611_v10 = vmax.f32 %v604_v19, 0.0 }
  0xf5   :  { %v576_v0 = vadd.f32 %v575_v52, %v574_v40  ;;  %v428_v2 = vrot.slane %v3589_v1, 1  ;;  %v3615_v13 = vadd.f32 %v477_v12, %v3578_v47  ;;  %v614_v56 = vmul.f32 %v607_v7, %v3392_v3 }
  0xf6   :  { %v615_v53 = vmul.f32 %v608_v44, %v3415_v45  ;;  %v528_v50 = vrot.slane %v3604_v31, 2  ;;  %v612_v14 = vmax.f32 %v605_v42, 0.0  ;;  %v613_v5 = vmax.f32 %v606_v39, 0.0 }
  0xf7   :  { %v616_v6 = vmul.f32 %v609_v55, %v3394_v4  ;;  %v617_v11 = vmul.f32 %v610_v62, %v3417_v46  ;;  %v2842_v63 = vadd.f32 -10.0, %v3367_v48  ;;  %v2843_v34 = vadd.f32 -10.0, %v3401_v25 }
  0xf8   :  { %v621_v28 = vadd.f32 %v615_v53, %v614_v56  ;;  %v577_v61 = vrot.slane %v576_v0, 4  ;;  %v618_v47 = vmul.f32 %v611_v10, %v3361_v41  ;;  %v2844_v12 = vadd.f32 -10.0, %v3369_v49 }
  0xf9   :  { %v2845_v15 = vadd.f32 -10.0, %v3403_v26  ;;  %v2846_v18 = vadd.f32 -10.0, %v3346_v16  ;;  %v2847_v20 = vadd.f32 -10.0, %v3351_v21  ;;  %v2848_v22 = vadd.f32 -10.0, %v3422_v9 }
  0xfa   :  { %v622_v17 = vadd.f32 %v621_v28, %v616_v6  ;;  %v619_v51 = vmul.f32 %v612_v14, %v3382_v58  ;;  %v620_v23 = vmul.f32 %v613_v5, %v3433_v36  ;;  %v644_v24 = vand.u32 2147483647, %v2842_v63 }
  0xfb   :  { %v645_v30 = vand.u32 2147483647, %v2843_v34  ;;  %v646_v57 = vand.u32 2147483647, %v2844_v12  ;;  %v647_v41 = vand.u32 2147483647, %v2845_v15  ;;  %v3632_v33 = vadd.f32 %v577_v61, %v576_v0 }
  0xfc   :  { %v623_v43 = vadd.f32 %v622_v17, %v617_v11  ;;  %v648_v32 = vand.u32 2147483647, %v2846_v18  ;;  %v649_v35 = vand.u32 2147483647, %v2847_v20  ;;  %v650_v37 = vand.u32 2147483647, %v2848_v22 }
  0xfd   :  { %v651_v27 = vsub.f32 1.0, %v644_v24  ;;  %v652_v52 = vsub.f32 1.0, %v645_v30  ;;  %v653_v58 = vsub.f32 1.0, %v646_v57  ;;  %v654_v60 = vsub.f32 1.0, %v647_v41  ;;  %v3663_v57 = vld [vmem:[#allocation2 + $0x28] sm:$0xff] }
  0xfe   :  { %v624_v8 = vadd.f32 %v623_v43, %v618_v47  ;;  %v626_v19 = vsel %vm166_vm0, %v620_v23, 0.0  ;;  %v655_v42 = vsub.f32 1.0, %v648_v32  ;;  %v656_v40 = vsub.f32 1.0, %v649_v35 }
  0xff   :  { %v657_v39 = vsub.f32 1.0, %v650_v37  ;;  %v658_v44 = vmax.f32 %v651_v27, 0.0  ;;  %v659_v55 = vmax.f32 %v652_v52, 0.0  ;;  %v660_v62 = vmax.f32 %v653_v58, 0.0  ;;  %v430_v58 = vld [vmem:[%s4888_s0 + $0x5] sm:$0x1] }
 0x100   :  { %v625_v7 = vadd.f32 %v624_v8, %v619_v51  ;;  %v3638_v0 = vsub.f32 %v279_v59, %v329_v54  ;;  %v3640_v10 = vmul.f32 %v379_v38, %v378_v29  ;;  %v429_v56 = vadd.f32 %v428_v2, %v3589_v1  ;;  %v3660_v51 = vld [vmem:[#allocation2 + $0x20] sm:$0xff] }
 0x101   :  { %v661_v53 = vmax.f32 %v654_v60, 0.0  ;;  %v664_v5 = vmax.f32 %v657_v39, 0.0  ;;  %v665_v6 = vmul.f32 %v658_v44, %v3392_v3  ;;  %v666_v11 = vmul.f32 %v659_v55, %v3415_v45 }
 0x102   :  { %v627_v14 = vadd.f32 %v626_v19, %v625_v7  ;;  %v479_v28 = vrot.slane %v3615_v13, 1  ;;  %v3647_v63 = vadd.f32 %v528_v50, %v3604_v31  ;;  %v579_v34 = vrot.slane %v3632_v33, 2 }
 0x103   :  { %v2849_v59 = vadd.f32 -11.0, %v3367_v48  ;;  %v662_v54 = vmax.f32 %v655_v42, 0.0  ;;  %v663_v29 = vmax.f32 %v656_v40, 0.0  ;;  %v667_v1 = vmul.f32 %v660_v62, %v3394_v4 }
 0x104   :  { %v672_v2 = vadd.f32 %v666_v11, %v665_v6  ;;  %v668_v61 = vmul.f32 %v661_v53, %v3417_v46  ;;  %v2850_v3 = vadd.f32 -11.0, %v3401_v25  ;;  %v2851_v47 = vadd.f32 -11.0, %v3369_v49 }
 0x105   :  { %v2852_v12 = vadd.f32 -11.0, %v3403_v26  ;;  %v628_v15 = vrot.slane %v627_v14, 4  ;;  %v671_v31 = vmul.f32 %v664_v5, %v3433_v36  ;;  %v2853_v17 = vadd.f32 -11.0, %v3346_v16 }
 0x106   :  { %v673_v50 = vadd.f32 %v672_v2, %v667_v1  ;;  %v2854_v18 = vadd.f32 -11.0, %v3351_v21  ;;  %v2855_v20 = vadd.f32 -11.0, %v3422_v9  ;;  %v695_v4 = vand.u32 2147483647, %v2849_v59  ;;  %v3676_v1 = vld [vmem:[#allocation2] sm:$0xff] }
 0x107   :  { %v696_v22 = vand.u32 2147483647, %v2850_v3  ;;  %v669_v23 = vmul.f32 %v3660_v51, %v662_v54  ;;  %v697_v30 = vand.u32 2147483647, %v2851_v47  ;;  %v698_v43 = vand.u32 2147483647, %v2852_v12 }
 0x108   :  { %v674_v24 = vadd.f32 %v673_v50, %v668_v61  ;;  %v670_v41 = vmul.f32 %v3663_v57, %v663_v29  ;;  %v699_v32 = vand.u32 2147483647, %v2853_v17  ;;  %v700_v35 = vand.u32 2147483647, %v2854_v18  ;;  %v3684_v47 = vld [vmem:[#allocation2 + $0x10] sm:$0xff] }
 0x109   :  { %v701_v37 = vand.u32 2147483647, %v2855_v20  ;;  %v3666_v27 = vadd.f32 %v628_v15, %v627_v14  ;;  %v702_v8 = vsub.f32 1.0, %v695_v4  ;;  %v703_v52 = vsub.f32 1.0, %v696_v22 }
 0x10a   :  { %v675_v38 = vadd.f32 %v674_v24, %v669_v23  ;;  %v677_v60 = vsel %vm166_vm0, %v671_v31, 0.0  ;;  %v704_v19 = vsub.f32 1.0, %v697_v30  ;;  %v705_v42 = vsub.f32 1.0, %v698_v43 }
 0x10b   :  { %v706_v40 = vsub.f32 1.0, %v699_v32  ;;  %v707_v7 = vsub.f32 1.0, %v700_v35  ;;  %v708_v44 = vsub.f32 1.0, %v701_v37  ;;  %v709_v55 = vmax.f32 %v702_v8, 0.0  ;;  %v481_v8 = vld [vmem:[%s4888_s0 + $0x6] sm:$0x1] }
 0x10c   :  { %v676_v39 = vadd.f32 %v675_v38, %v670_v41  ;;  %v381_v62 = vsub.f32 %v3638_v0, %v3640_v10  ;;  %v710_v53 = vmax.f32 %v703_v52, 0.0  ;;  %v711_v14 = vmax.f32 %v704_v19, 0.0 }
 0x10d   :  { %v431_v5 = vmul.f32 %v430_v58, %v429_v56  ;;  %v480_v6 = vadd.f32 %v479_v28, %v3615_v13  ;;  %v712_v59 = vmax.f32 %v705_v42, 0.0  ;;  %v530_v54 = vrot.slane %v3647_v63, 1 }
 0x10e   :  { %v678_v11 = vadd.f32 %v677_v60, %v676_v39  ;;  %v713_v29 = vmax.f32 %v706_v40, 0.0  ;;  %v716_v2 = vmul.f32 %v3676_v1, %v709_v55  ;;  %v717_v61 = vmul.f32 %v710_v53, %v3415_v45 }
 0x10f   :  { %v3681_v3 = vadd.f32 %v579_v34, %v3632_v33  ;;  %v630_v0 = vrot.slane %v3666_v27, 2  ;;  %v714_v10 = vmax.f32 %v707_v7, 0.0  ;;  %v715_v56 = vmax.f32 %v708_v44, 0.0 }
 0x110   :  { %v718_v13 = vmul.f32 %v3684_v47, %v711_v14  ;;  %v723_v28 = vadd.f32 %v717_v61, %v716_v2  ;;  %v2856_v12 = vadd.f32 -12.0, %v3367_v48  ;;  %v2857_v15 = vadd.f32 -12.0, %v3401_v25 }
 0x111   :  { %v679_v31 = vrot.slane %v678_v11, 4  ;;  %v719_v50 = vmul.f32 %v712_v59, %v3417_v46  ;;  %v2858_v45 = vadd.f32 -12.0, %v3369_v49  ;;  %v2859_v33 = vadd.f32 -12.0, %v3403_v26 }
 0x112   :  { %v720_v34 = vmul.f32 %v3660_v51, %v713_v29  ;;  %v724_v17 = vadd.f32 %v723_v28, %v718_v13  ;;  %v2860_v18 = vadd.f32 -12.0, %v3346_v16  ;;  %v2861_v20 = vadd.f32 -12.0, %v3351_v21 }
 0x113   :  { %v721_v4 = vmul.f32 %v3663_v57, %v714_v10  ;;  %v2862_v22 = vadd.f32 -12.0, %v3422_v9  ;;  %v746_v23 = vand.u32 2147483647, %v2856_v12  ;;  %v747_v24 = vand.u32 2147483647, %v2857_v15 }
 0x114   :  { %v725_v30 = vadd.f32 %v724_v17, %v719_v50  ;;  %v748_v43 = vand.u32 2147483647, %v2858_v45  ;;  %v749_v46 = vand.u32 2147483647, %v2859_v33  ;;  %v750_v41 = vand.u32 2147483647, %v2860_v18 }
 0x115   :  { %v722_v32 = vmul.f32 %v715_v56, %v3433_v36  ;;  %v751_v35 = vand.u32 2147483647, %v2861_v20  ;;  %v752_v37 = vand.u32 2147483647, %v2862_v22  ;;  %v753_v38 = vsub.f32 1.0, %v746_v23  ;;  %v3719_v45 = vld [vmem:[#allocation2 + $0x18] sm:$0xff] }
 0x116   :  { %v726_v52 = vadd.f32 %v725_v30, %v720_v34  ;;  %v754_v58 = vsub.f32 1.0, %v747_v24  ;;  %v755_v60 = vsub.f32 1.0, %v748_v43  ;;  %v756_v19 = vsub.f32 1.0, %v749_v46 }
 0x117   :  { %v3701_v42 = vadd.f32 %v679_v31, %v678_v11  ;;  %v757_v40 = vsub.f32 1.0, %v750_v41  ;;  %v758_v39 = vsub.f32 1.0, %v751_v35  ;;  %v759_v7 = vsub.f32 1.0, %v752_v37  ;;  %v3709_v11 = vld [vmem:[#allocation2 + $0x8] sm:$0xff] }
 0x118   :  { %v727_v44 = vadd.f32 %v726_v52, %v721_v4  ;;  %v760_v55 = vmax.f32 %v753_v38, 0.0  ;;  %v761_v53 = vmax.f32 %v754_v58, 0.0  ;;  %v762_v36 = vmax.f32 %v755_v60, 0.0 }
 0x119   :  { %v3703_v14 = vsub.f32 %v381_v62, %v431_v5  ;;  %v3705_v59 = vmul.f32 %v481_v8, %v480_v6  ;;  %v728_v29 = vsel %vm166_vm0, %v722_v32, 0.0  ;;  %v763_v2 = vmax.f32 %v756_v19, 0.0  ;;  %v532_v19 = vld [vmem:[%s4888_s0 + $0x7] sm:$0x1] }
 0x11a   :  { %v764_v61 = vmax.f32 %v757_v40, 0.0  ;;  %v766_v10 = vmax.f32 %v759_v7, 0.0  ;;  %v767_v56 = vmul.f32 %v3676_v1, %v760_v55  ;;  %v768_v13 = vmul.f32 %v3709_v11, %v761_v53 }
 0x11b   :  { %v531_v28 = vadd.f32 %v530_v54, %v3647_v63  ;;  %v581_v12 = vrot.slane %v3681_v3, 1  ;;  %v3715_v62 = vadd.f32 %v630_v0, %v3666_v27  ;;  %v681_v5 = vrot.slane %v3701_v42, 2  ;;  %v3726_v0 = vld [vmem:[#allocation2 + $0x30] sm:$0x7] }
 0x11c   :  { %v729_v6 = vadd.f32 %v728_v29, %v727_v44  ;;  %v765_v15 = vmax.f32 %v758_v39, 0.0  ;;  %v769_v31 = vmul.f32 %v3684_v47, %v762_v36  ;;  %v774_v50 = vadd.f32 %v768_v13, %v767_v56 }
 0x11d   :  { %v770_v33 = vmul.f32 %v3719_v45, %v763_v2  ;;  %v2863_v34 = vadd.f32 -13.0, %v3367_v48  ;;  %v2864_v63 = vadd.f32 -13.0, %v3401_v25  ;;  %v2865_v54 = vadd.f32 -13.0, %v3369_v49 }
 0x11e   :  { %v771_v27 = vmul.f32 %v3660_v51, %v764_v61  ;;  %v773_v17 = vmul.f32 %v3726_v0, %v766_v10  ;;  %v775_v18 = vadd.f32 %v774_v50, %v769_v31  ;;  %v2866_v20 = vadd.f32 -13.0, %v3403_v26 }
 0x11f   :  { %v2867_v4 = vadd.f32 -13.0, %v3346_v16  ;;  %v2868_v22 = vadd.f32 -13.0, %v3351_v21  ;;  %v2869_v23 = vadd.f32 -13.0, %v3422_v9  ;;  %v797_v24 = vand.u32 2147483647, %v2863_v34 }
 0x120   :  { %v730_v30 = vrot.slane %v729_v6, 4  ;;  %v776_v43 = vadd.f32 %v775_v18, %v770_v33  ;;  %v798_v46 = vand.u32 2147483647, %v2864_v63  ;;  %v799_v41 = vand.u32 2147483647, %v2865_v54 }
 0x121   :  { %v772_v32 = vmul.f32 %v3663_v57, %v765_v15  ;;  %v800_v35 = vand.u32 2147483647, %v2866_v20  ;;  %v801_v37 = vand.u32 2147483647, %v2867_v4  ;;  %v802_v38 = vand.u32 2147483647, %v2868_v22 }
 0x122   :  { %v777_v8 = vadd.f32 %v776_v43, %v771_v27  ;;  %v779_v52 = vsel %vm166_vm0, %v773_v17, 0.0  ;;  %v803_v58 = vand.u32 2147483647, %v2869_v23  ;;  %v804_v60 = vsub.f32 1.0, %v797_v24 }
 0x123   :  { %v805_v40 = vsub.f32 1.0, %v798_v46  ;;  %v806_v39 = vsub.f32 1.0, %v799_v41  ;;  %v807_v7 = vsub.f32 1.0, %v800_v35  ;;  %v808_v44 = vsub.f32 1.0, %v801_v37 }
 0x124   :  { %v3738_v55 = vadd.f32 %v730_v30, %v729_v6  ;;  %v778_v53 = vadd.f32 %v777_v8, %v772_v32  ;;  %v809_v36 = vsub.f32 1.0, %v802_v38  ;;  %v810_v29 = vsub.f32 1.0, %v803_v58 }
 0x125   :  { %v483_v2 = vsub.f32 %v3703_v14, %v3705_v59  ;;  %v811_v61 = vmax.f32 %v804_v60, 0.0  ;;  %v812_v10 = vmax.f32 %v805_v40, 0.0  ;;  %v813_v56 = vmax.f32 %v806_v39, 0.0 }
 0x126   :  { %v533_v13 = vmul.f32 %v532_v19, %v531_v28  ;;  %v780_v15 = vadd.f32 %v779_v52, %v778_v53  ;;  %v814_v31 = vmax.f32 %v807_v7, 0.0  ;;  %v815_v50 = vmax.f32 %v808_v44, 0.0  ;;  %v583_v44 = vld [vmem:[%s4888_s0 + $0x8] sm:$0x1] }
 0x127   :  { %v582_v33 = vadd.f32 %v581_v12, %v3681_v3  ;;  %v816_v34 = vmax.f32 %v809_v36, 0.0  ;;  %v818_v63 = vmul.f32 %v3676_v1, %v811_v61  ;;  %v819_v6 = vmul.f32 %v3709_v11, %v812_v10 }
 0x128   :  { %v632_v54 = vrot.slane %v3715_v62, 1  ;;  %v3747_v27 = vadd.f32 %v681_v5, %v3701_v42  ;;  %v732_v14 = vrot.slane %v3738_v55, 2  ;;  %v817_v59 = vmax.f32 %v810_v29, 0.0 }
 0x129   :  { %v781_v17 = vrot.slane %v780_v15, 4  ;;  %v820_v28 = vmul.f32 %v3684_v47, %v813_v56  ;;  %v825_v18 = vadd.f32 %v819_v6, %v818_v63  ;;  %v2870_v20 = vadd.f32 -14.0, %v3367_v48 }
 0x12a   :  { %v821_v3 = vmul.f32 %v3719_v45, %v814_v31  ;;  %v822_v12 = vmul.f32 %v3660_v51, %v815_v50  ;;  %v2871_v4 = vadd.f32 -14.0, %v3401_v25  ;;  %v2872_v22 = vadd.f32 -14.0, %v3369_v49 }
 0x12b   :  { %v823_v42 = vmul.f32 %v3663_v57, %v816_v34  ;;  %v826_v5 = vadd.f32 %v825_v18, %v820_v28  ;;  %v2873_v23 = vadd.f32 -14.0, %v3403_v26  ;;  %v2874_v24 = vadd.f32 -14.0, %v3346_v16 }
 0x12c   :  { %v824_v30 = vmul.f32 %v3726_v0, %v817_v59  ;;  %v2875_v43 = vadd.f32 -14.0, %v3351_v21  ;;  %v2876_v46 = vadd.f32 -14.0, %v3422_v9  ;;  %v848_v41 = vand.u32 2147483647, %v2870_v20 }
 0x12d   :  { %v827_v32 = vadd.f32 %v826_v5, %v821_v3  ;;  %v849_v35 = vand.u32 2147483647, %v2871_v4  ;;  %v850_v37 = vand.u32 2147483647, %v2872_v22  ;;  %v851_v38 = vand.u32 2147483647, %v2873_v23 }
 0x12e   :  { %v3762_v8 = vadd.f32 %v781_v17, %v780_v15  ;;  %v852_v52 = vand.u32 2147483647, %v2874_v24  ;;  %v853_v58 = vand.u32 2147483647, %v2875_v43  ;;  %v854_v60 = vand.u32 2147483647, %v2876_v46 }
 0x12f   :  { %v828_v19 = vadd.f32 %v827_v32, %v822_v12  ;;  %v855_v40 = vsub.f32 1.0, %v848_v41  ;;  %v856_v39 = vsub.f32 1.0, %v849_v35  ;;  %v857_v7 = vsub.f32 1.0, %v850_v37 }
 0x130   :  { %v830_v53 = vsel %vm166_vm0, %v824_v30, 0.0  ;;  %v858_v36 = vsub.f32 1.0, %v851_v38  ;;  %v859_v29 = vsub.f32 1.0, %v852_v52  ;;  %v860_v61 = vsub.f32 1.0, %v853_v58 }
 0x131   :  { %v829_v10 = vadd.f32 %v828_v19, %v823_v42  ;;  %v861_v56 = vsub.f32 1.0, %v854_v60  ;;  %v862_v15 = vmax.f32 %v855_v40, 0.0  ;;  %v863_v31 = vmax.f32 %v856_v39, 0.0 }
 0x132   :  { %v3768_v50 = vsub.f32 %v483_v2, %v533_v13  ;;  %v864_v34 = vmax.f32 %v857_v7, 0.0  ;;  %v865_v63 = vmax.f32 %v858_v36, 0.0  ;;  %v3770_v6 = vmul.f32 %v583_v44, %v582_v33  ;;  %v634_v44 = vld [vmem:[%s4888_s0 + $0x9] sm:$0x1] }
 0x133   :  { %v633_v59 = vadd.f32 %v632_v54, %v3715_v62  ;;  %v831_v17 = vadd.f32 %v830_v53, %v829_v10  ;;  %v866_v28 = vmax.f32 %v859_v29, 0.0  ;;  %v683_v18 = vrot.slane %v3747_v27, 1 }
 0x134   :  { %v3775_v20 = vadd.f32 %v732_v14, %v3738_v55  ;;  %v869_v3 = vmul.f32 %v3676_v1, %v862_v15  ;;  %v870_v12 = vmul.f32 %v3709_v11, %v863_v31  ;;  %v783_v2 = vrot.slane %v3762_v8, 2 }
 0x135   :  { %v867_v13 = vmax.f32 %v860_v61, 0.0  ;;  %v868_v4 = vmax.f32 %v861_v56, 0.0  ;;  %v871_v33 = vmul.f32 %v3684_v47, %v864_v34  ;;  %v872_v22 = vmul.f32 %v3719_v45, %v865_v63 }
 0x136   :  { %v876_v62 = vadd.f32 %v870_v12, %v869_v3  ;;  %v2877_v54 = vadd.f32 -15.0, %v3367_v48  ;;  %v2878_v42 = vadd.f32 -15.0, %v3401_v25  ;;  %v832_v5 = vrot.slane %v831_v17, 4 }
 0x137   :  { %v873_v55 = vmul.f32 %v3660_v51, %v866_v28  ;;  %v2879_v14 = vadd.f32 -15.0, %v3369_v49  ;;  %v2880_v23 = vadd.f32 -15.0, %v3403_v26  ;;  %v2881_v30 = vadd.f32 -15.0, %v3346_v16 }
 0x138   :  { %v877_v24 = vadd.f32 %v876_v62, %v871_v33  ;;  %v2882_v43 = vadd.f32 -15.0, %v3351_v21  ;;  %v2883_v46 = vadd.f32 -15.0, %v3422_v9  ;;  %v874_v41 = vmul.f32 %v3663_v57, %v867_v13 }
 0x139   :  { %v875_v32 = vmul.f32 %v3726_v0, %v868_v4  ;;  %v899_v35 = vand.u32 2147483647, %v2877_v54  ;;  %v900_v37 = vand.u32 2147483647, %v2878_v42  ;;  %v901_v52 = vand.u32 2147483647, %v2879_v14 }
 0x13a   :  { %v878_v38 = vadd.f32 %v877_v24, %v872_v22  ;;  %v902_v58 = vand.u32 2147483647, %v2880_v23  ;;  %v903_v60 = vand.u32 2147483647, %v2881_v30  ;;  %v3792_v19 = vadd.f32 %v832_v5, %v831_v17 }
 0x13b   :  { %v904_v40 = vand.u32 2147483647, %v2882_v43  ;;  %v905_v39 = vand.u32 2147483647, %v2883_v46  ;;  %v906_v7 = vsub.f32 1.0, %v899_v35  ;;  %v907_v36 = vsub.f32 1.0, %v900_v37 }
 0x13c   :  { %v879_v53 = vadd.f32 %v878_v38, %v873_v55  ;;  %v908_v29 = vsub.f32 1.0, %v901_v52  ;;  %v909_v61 = vsub.f32 1.0, %v902_v58  ;;  %v881_v10 = vsel %vm166_vm0, %v875_v32, 0.0 }
 0x13d   :  { %v910_v56 = vsub.f32 1.0, %v903_v60  ;;  %v911_v15 = vsub.f32 1.0, %v904_v40  ;;  %v912_v31 = vsub.f32 1.0, %v905_v39  ;;  %v913_v63 = vmax.f32 %v906_v7, 0.0 }
 0x13e   :  { %v880_v34 = vadd.f32 %v879_v53, %v874_v41  ;;  %v914_v17 = vmax.f32 %v907_v36, 0.0  ;;  %v915_v28 = vmax.f32 %v908_v29, 0.0  ;;  %v585_v3 = vsub.f32 %v3768_v50, %v3770_v6 }
 0x13f   :  { %v635_v12 = vmul.f32 %v634_v44, %v633_v59  ;;  %v684_v13 = vadd.f32 %v683_v18, %v3747_v27  ;;  %v916_v4 = vmax.f32 %v909_v61, 0.0  ;;  %v919_v22 = vmax.f32 %v912_v31, 0.0 }
 0x140   :  { %v882_v33 = vadd.f32 %v881_v10, %v880_v34  ;;  %v920_v62 = vmul.f32 %v3676_v1, %v913_v63  ;;  %v921_v54 = vmul.f32 %v3709_v11, %v914_v17  ;;  %v734_v42 = vrot.slane %v3775_v20, 1  ;;  %v685_v10 = vld [vmem:[%s4888_s0 + $0xa] sm:$0x1] }
 0x141   :  { %v3805_v5 = vadd.f32 %v783_v2, %v3762_v8  ;;  %v834_v55 = vrot.slane %v3792_v19, 2  ;;  %v2884_v14 = vadd.f32 -16.0, %v3367_v48  ;;  %v917_v50 = vmax.f32 %v910_v56, 0.0 }
 0x142   :  { %v918_v6 = vmax.f32 %v911_v15, 0.0  ;;  %v922_v27 = vmul.f32 %v3684_v47, %v915_v28  ;;  %v927_v59 = vadd.f32 %v921_v54, %v920_v62  ;;  %v923_v18 = vmul.f32 %v3719_v45, %v916_v4 }
 0x143   :  { %v2885_v23 = vadd.f32 -16.0, %v3401_v25  ;;  %v2886_v24 = vadd.f32 -16.0, %v3369_v49  ;;  %v2887_v30 = vadd.f32 -16.0, %v3403_v26  ;;  %v883_v43 = vrot.slane %v882_v33, 4 }
 0x144   :  { %v926_v8 = vmul.f32 %v3726_v0, %v919_v22  ;;  %v928_v2 = vadd.f32 %v927_v59, %v922_v27  ;;  %v2888_v46 = vadd.f32 -16.0, %v3346_v16  ;;  %v2889_v41 = vadd.f32 -16.0, %v3351_v21 }
 0x145   :  { %v2890_v32 = vadd.f32 -16.0, %v3422_v9  ;;  %v950_v35 = vand.u32 2147483647, %v2884_v14  ;;  %v951_v37 = vand.u32 2147483647, %v2885_v23  ;;  %v924_v38 = vmul.f32 %v3660_v51, %v917_v50 }
 0x146   :  { %v929_v52 = vadd.f32 %v928_v2, %v923_v18  ;;  %v952_v58 = vand.u32 2147483647, %v2886_v24  ;;  %v953_v60 = vand.u32 2147483647, %v2887_v30  ;;  %v925_v40 = vmul.f32 %v3663_v57, %v918_v6 }
 0x147   :  { %v954_v39 = vand.u32 2147483647, %v2888_v46  ;;  %v955_v7 = vand.u32 2147483647, %v2889_v41  ;;  %v956_v44 = vand.u32 2147483647, %v2890_v32  ;;  %v3820_v53 = vadd.f32 %v883_v43, %v882_v33 }
 0x148   :  { %v930_v36 = vadd.f32 %v929_v52, %v924_v38  ;;  %v957_v29 = vsub.f32 1.0, %v950_v35  ;;  %v958_v61 = vsub.f32 1.0, %v951_v37  ;;  %v932_v56 = vsel %vm166_vm0, %v926_v8, 0.0 }
 0x149   :  { %v959_v15 = vsub.f32 1.0, %v952_v58  ;;  %v960_v31 = vsub.f32 1.0, %v953_v60  ;;  %v961_v34 = vsub.f32 1.0, %v954_v39  ;;  %v962_v17 = vsub.f32 1.0, %v955_v7 }
 0x14a   :  { %v931_v63 = vadd.f32 %v930_v36, %v925_v40  ;;  %v963_v28 = vsub.f32 1.0, %v956_v44  ;;  %v964_v4 = vmax.f32 %v957_v29, 0.0  ;;  %v3826_v22 = vsub.f32 %v585_v3, %v635_v12 }
 0x14b   :  { %v965_v33 = vmax.f32 %v958_v61, 0.0  ;;  %v966_v62 = vmax.f32 %v959_v15, 0.0  ;;  %v3828_v54 = vmul.f32 %v685_v10, %v684_v13  ;;  %v735_v14 = vadd.f32 %v734_v42, %v3775_v20  ;;  %v736_v10 = vld [vmem:[%s4888_s0 + $0xb] sm:$0x1] }
 0x14c   :  { %v933_v50 = vadd.f32 %v932_v56, %v931_v63  ;;  %v967_v6 = vmax.f32 %v960_v31, 0.0  ;;  %v785_v27 = vrot.slane %v3805_v5, 1  ;;  %v968_v59 = vmax.f32 %v961_v34, 0.0 }
 0x14d   :  { %v971_v18 = vmul.f32 %v3676_v1, %v964_v4  ;;  %v972_v23 = vmul.f32 %v3709_v11, %v965_v33  ;;  %v3835_v24 = vadd.f32 %v834_v55, %v3792_v19  ;;  %v885_v3 = vrot.slane %v3820_v53, 2 }
 0x14e   :  { %v969_v12 = vmax.f32 %v962_v17, 0.0  ;;  %v970_v30 = vmax.f32 %v963_v28, 0.0  ;;  %v973_v13 = vmul.f32 %v3684_v47, %v966_v62  ;;  %v2891_v20 = vadd.f32 -17.0, %v3367_v48 }
 0x14f   :  { %v978_v43 = vadd.f32 %v972_v23, %v971_v18  ;;  %v2892_v42 = vadd.f32 -17.0, %v3401_v25  ;;  %v934_v8 = vrot.slane %v933_v50, 4  ;;  %v974_v2 = vmul.f32 %v3719_v45, %v967_v6 }
 0x150   :  { %v2893_v46 = vadd.f32 -17.0, %v3369_v49  ;;  %v2894_v41 = vadd.f32 -17.0, %v3403_v26  ;;  %v975_v19 = vmul.f32 %v3660_v51, %v968_v59  ;;  %v2895_v32 = vadd.f32 -17.0, %v3346_v16 }
 0x151   :  { %v979_v55 = vadd.f32 %v978_v43, %v973_v13  ;;  %v2896_v35 = vadd.f32 -17.0, %v3351_v21  ;;  %v976_v37 = vmul.f32 %v3663_v57, %v969_v12  ;;  %v2897_v38 = vadd.f32 -17.0, %v3422_v9 }
 0x152   :  { %v1001_v52 = vand.u32 2147483647, %v2891_v20  ;;  %v1002_v58 = vand.u32 2147483647, %v2892_v42  ;;  %v1003_v40 = vand.u32 2147483647, %v2893_v46  ;;  %v977_v44 = vmul.f32 %v3726_v0, %v970_v30 }
 0x153   :  { %v980_v60 = vadd.f32 %v979_v55, %v974_v2  ;;  %v1004_v39 = vand.u32 2147483647, %v2894_v41  ;;  %v1005_v7 = vand.u32 2147483647, %v2895_v32  ;;  %v1006_v36 = vand.u32 2147483647, %v2896_v35 }
 0x154   :  { %v1007_v29 = vand.u32 2147483647, %v2897_v38  ;;  %v1008_v61 = vsub.f32 1.0, %v1001_v52  ;;  %v1009_v15 = vsub.f32 1.0, %v1002_v58  ;;  %v1010_v31 = vsub.f32 1.0, %v1003_v40 }
 0x155   :  { %v981_v56 = vadd.f32 %v980_v60, %v975_v19  ;;  %v1011_v34 = vsub.f32 1.0, %v1004_v39  ;;  %v3853_v63 = vadd.f32 %v934_v8, %v933_v50  ;;  %v1012_v17 = vsub.f32 1.0, %v1005_v7 }
 0x156   :  { %v1013_v28 = vsub.f32 1.0, %v1006_v36  ;;  %v1014_v4 = vsub.f32 1.0, %v1007_v29  ;;  %v1015_v62 = vmax.f32 %v1008_v61, 0.0  ;;  %v1016_v6 = vmax.f32 %v1009_v15, 0.0 }
 0x157   :  { %v982_v33 = vadd.f32 %v981_v56, %v976_v37  ;;  %v1017_v59 = vmax.f32 %v1010_v31, 0.0  ;;  %v687_v18 = vsub.f32 %v3826_v22, %v3828_v54  ;;  %v737_v23 = vmul.f32 %v736_v10, %v735_v14 }
 0x158   :  { %v983_v12 = vsel %vm166_vm0, %v977_v44, 0.0  ;;  %v1018_v30 = vmax.f32 %v1011_v34, 0.0  ;;  %v1019_v13 = vmax.f32 %v1012_v17, 0.0  ;;  %v1021_v43 = vmax.f32 %v1014_v4, 0.0  ;;  %v787_v34 = vld [vmem:[%s4888_s0 + $0xc] sm:$0x1] }
 0x159   :  { %v1022_v20 = vmul.f32 %v3676_v1, %v1015_v62  ;;  %v1023_v50 = vmul.f32 %v3709_v11, %v1016_v6  ;;  %v786_v42 = vadd.f32 %v785_v27, %v3805_v5  ;;  %v836_v8 = vrot.slane %v3835_v24, 1 }
 0x15a   :  { %v3863_v2 = vadd.f32 %v885_v3, %v3820_v53  ;;  %v936_v46 = vrot.slane %v3853_v63, 2  ;;  %v984_v22 = vadd.f32 %v983_v12, %v982_v33  ;;  %v1020_v54 = vmax.f32 %v1013_v28, 0.0 }
 0x15b   :  { %v1024_v14 = vmul.f32 %v3684_v47, %v1017_v59  ;;  %v1029_v41 = vadd.f32 %v1023_v50, %v1022_v20  ;;  %v1025_v19 = vmul.f32 %v3719_v45, %v1018_v30  ;;  %v2898_v55 = vadd.f32 -18.0, %v3367_v48 }
 0x15c   :  { %v2899_v32 = vadd.f32 -18.0, %v3401_v25  ;;  %v2900_v5 = vadd.f32 -18.0, %v3369_v49  ;;  %v1026_v27 = vmul.f32 %v3660_v51, %v1019_v13  ;;  %v1028_v53 = vmul.f32 %v3726_v0, %v1021_v43 }
 0x15d   :  { %v1030_v3 = vadd.f32 %v1029_v41, %v1024_v14  ;;  %v2901_v35 = vadd.f32 -18.0, %v3403_v26  ;;  %v2902_v37 = vadd.f32 -18.0, %v3346_v16  ;;  %v2903_v38 = vadd.f32 -18.0, %v3351_v21 }
 0x15e   :  { %v2904_v52 = vadd.f32 -18.0, %v3422_v9  ;;  %v1052_v58 = vand.u32 2147483647, %v2898_v55  ;;  %v985_v60 = vrot.slane %v984_v22, 4  ;;  %v1053_v39 = vand.u32 2147483647, %v2899_v32 }
 0x15f   :  { %v1031_v40 = vadd.f32 %v1030_v3, %v1025_v19  ;;  %v1054_v7 = vand.u32 2147483647, %v2900_v5  ;;  %v1027_v44 = vmul.f32 %v3663_v57, %v1020_v54  ;;  %v1055_v36 = vand.u32 2147483647, %v2901_v35 }
 0x160   :  { %v1056_v29 = vand.u32 2147483647, %v2902_v37  ;;  %v1057_v61 = vand.u32 2147483647, %v2903_v38  ;;  %v1034_v56 = vsel %vm166_vm0, %v1028_v53, 0.0  ;;  %v1059_v31 = vsub.f32 1.0, %v1052_v58 }
 0x161   :  { %v1032_v10 = vadd.f32 %v1031_v40, %v1026_v27  ;;  %v1058_v15 = vand.u32 2147483647, %v2904_v52  ;;  %v1060_v17 = vsub.f32 1.0, %v1053_v39  ;;  %v1061_v28 = vsub.f32 1.0, %v1054_v7 }
 0x162   :  { %v1062_v4 = vsub.f32 1.0, %v1055_v36  ;;  %v1063_v33 = vsub.f32 1.0, %v1056_v29  ;;  %v3882_v62 = vadd.f32 %v985_v60, %v984_v22  ;;  %v1064_v59 = vsub.f32 1.0, %v1057_v61 }
 0x163   :  { %v1033_v6 = vadd.f32 %v1032_v10, %v1027_v44  ;;  %v1065_v12 = vsub.f32 1.0, %v1058_v15  ;;  %v3884_v30 = vsub.f32 %v687_v18, %v737_v23  ;;  %v1066_v13 = vmax.f32 %v1059_v31, 0.0 }
 0x164   :  { %v1067_v43 = vmax.f32 %v1060_v17, 0.0  ;;  %v1068_v20 = vmax.f32 %v1061_v28, 0.0  ;;  %v3886_v50 = vmul.f32 %v787_v34, %v786_v42  ;;  %v1069_v14 = vmax.f32 %v1062_v4, 0.0 }
 0x165   :  { %v1035_v54 = vadd.f32 %v1034_v56, %v1033_v6  ;;  %v1070_v41 = vmax.f32 %v1063_v33, 0.0  ;;  %v837_v19 = vadd.f32 %v836_v8, %v3835_v24  ;;  %v1071_v55 = vmax.f32 %v1064_v59, 0.0  ;;  %v838_v33 = vld [vmem:[%s4888_s0 + $0xd] sm:$0x1] }
 0x166   :  { %v1073_v32 = vmul.f32 %v3676_v1, %v1066_v13  ;;  %v1074_v22 = vmul.f32 %v3709_v11, %v1067_v43  ;;  %v887_v5 = vrot.slane %v3863_v2, 1  ;;  %v3893_v18 = vadd.f32 %v936_v46, %v3853_v63 }
 0x167   :  { %v987_v23 = vrot.slane %v3882_v62, 2  ;;  %v1072_v27 = vmax.f32 %v1065_v12, 0.0  ;;  %v1036_v42 = vrot.slane %v1035_v54, 4  ;;  %v1075_v53 = vmul.f32 %v3684_v47, %v1068_v20 }
 0x168   :  { %v1080_v3 = vadd.f32 %v1074_v22, %v1073_v32  ;;  %v2905_v35 = vadd.f32 -19.0, %v3367_v48  ;;  %v1076_v24 = vmul.f32 %v3719_v45, %v1069_v14  ;;  %v1077_v8 = vmul.f32 %v3660_v51, %v1070_v41 }
 0x169   :  { %v2906_v37 = vadd.f32 -19.0, %v3401_v25  ;;  %v2907_v38 = vadd.f32 -19.0, %v3369_v49  ;;  %v1078_v63 = vmul.f32 %v3663_v57, %v1071_v55  ;;  %v2908_v52 = vadd.f32 -19.0, %v3403_v26 }
 0x16a   :  { %v1081_v46 = vadd.f32 %v1080_v3, %v1075_v53  ;;  %v2909_v58 = vadd.f32 -19.0, %v3346_v16  ;;  %v1079_v60 = vmul.f32 %v3726_v0, %v1072_v27  ;;  %v2910_v40 = vadd.f32 -19.0, %v3351_v21 }
 0x16b   :  { %v2911_v39 = vadd.f32 -19.0, %v3422_v9  ;;  %v1103_v7 = vand.u32 2147483647, %v2905_v35  ;;  %v1104_v36 = vand.u32 2147483647, %v2906_v37  ;;  %v3908_v10 = vadd.f32 %v1036_v42, %v1035_v54 }
 0x16c   :  { %v1082_v44 = vadd.f32 %v1081_v46, %v1076_v24  ;;  %v1105_v29 = vand.u32 2147483647, %v2907_v38  ;;  %v1106_v61 = vand.u32 2147483647, %v2908_v52  ;;  %v1107_v56 = vand.u32 2147483647, %v2909_v58 }
 0x16d   :  { %v1108_v15 = vand.u32 2147483647, %v2910_v40  ;;  %v1109_v31 = vand.u32 2147483647, %v2911_v39  ;;  %v1110_v17 = vsub.f32 1.0, %v1103_v7  ;;  %v1111_v28 = vsub.f32 1.0, %v1104_v36 }
 0x16e   :  { %v1083_v34 = vadd.f32 %v1082_v44, %v1077_v8  ;;  %v1112_v4 = vsub.f32 1.0, %v1105_v29  ;;  %v1085_v6 = vsel %vm166_vm0, %v1079_v60, 0.0  ;;  %v1113_v59 = vsub.f32 1.0, %v1106_v61 }
 0x16f   :  { %v1114_v12 = vsub.f32 1.0, %v1107_v56  ;;  %v1115_v13 = vsub.f32 1.0, %v1108_v15  ;;  %v1116_v20 = vsub.f32 1.0, %v1109_v31  ;;  %v1117_v54 = vmax.f32 %v1110_v17, 0.0 }
 0x170   :  { %v1084_v43 = vadd.f32 %v1083_v34, %v1078_v63  ;;  %v1118_v14 = vmax.f32 %v1111_v28, 0.0  ;;  %v789_v41 = vsub.f32 %v3884_v30, %v3886_v50  ;;  %v1119_v55 = vmax.f32 %v1112_v4, 0.0 }
 0x171   :  { %v1120_v32 = vmax.f32 %v1113_v59, 0.0  ;;  %v839_v22 = vmul.f32 %v838_v33, %v837_v19  ;;  %v888_v27 = vadd.f32 %v887_v5, %v3863_v2  ;;  %v1121_v53 = vmax.f32 %v1114_v12, 0.0  ;;  %v889_v33 = vld [vmem:[%s4888_s0 + $0xe] sm:$0x1] }
 0x172   :  { %v1086_v42 = vadd.f32 %v1085_v6, %v1084_v43  ;;  %v938_v3 = vrot.slane %v3893_v18, 1  ;;  %v3919_v35 = vadd.f32 %v987_v23, %v3882_v62  ;;  %v1124_v24 = vmul.f32 %v3676_v1, %v1117_v54 }
 0x173   :  { %v1125_v8 = vmul.f32 %v3709_v11, %v1118_v14  ;;  %v1038_v37 = vrot.slane %v3908_v10, 2  ;;  %v1122_v38 = vmax.f32 %v1115_v13, 0.0  ;;  %v1123_v30 = vmax.f32 %v1116_v20, 0.0 }
 0x174   :  { %v1126_v50 = vmul.f32 %v3684_v47, %v1119_v55  ;;  %v1127_v19 = vmul.f32 %v3719_v45, %v1120_v32  ;;  %v2912_v5 = vadd.f32 -20.0, %v3367_v48  ;;  %v2913_v63 = vadd.f32 -20.0, %v3401_v25 }
 0x175   :  { %v1131_v2 = vadd.f32 %v1125_v8, %v1124_v24  ;;  %v1087_v46 = vrot.slane %v1086_v42, 4  ;;  %v1128_v62 = vmul.f32 %v3660_v51, %v1121_v53  ;;  %v2914_v23 = vadd.f32 -20.0, %v3369_v49 }
 0x176   :  { %v2915_v52 = vadd.f32 -20.0, %v3403_v26  ;;  %v2916_v60 = vadd.f32 -20.0, %v3346_v16  ;;  %v2917_v40 = vadd.f32 -20.0, %v3351_v21  ;;  %v2918_v39 = vadd.f32 -20.0, %v3422_v9 }
 0x177   :  { %v1132_v58 = vadd.f32 %v1131_v2, %v1126_v50  ;;  %v1129_v7 = vmul.f32 %v3663_v57, %v1122_v38  ;;  %v1130_v44 = vmul.f32 %v3726_v0, %v1123_v30  ;;  %v1154_v36 = vand.u32 2147483647, %v2912_v5 }
 0x178   :  { %v1155_v29 = vand.u32 2147483647, %v2913_v63  ;;  %v1156_v56 = vand.u32 2147483647, %v2914_v23  ;;  %v1157_v15 = vand.u32 2147483647, %v2915_v52  ;;  %v3936_v34 = vadd.f32 %v1087_v46, %v1086_v42 }
 0x179   :  { %v1133_v61 = vadd.f32 %v1132_v58, %v1127_v19  ;;  %v1158_v31 = vand.u32 2147483647, %v2916_v60  ;;  %v1159_v17 = vand.u32 2147483647, %v2917_v40  ;;  %v1160_v28 = vand.u32 2147483647, %v2918_v39 }
 0x17a   :  { %v1161_v4 = vsub.f32 1.0, %v1154_v36  ;;  %v1162_v59 = vsub.f32 1.0, %v1155_v29  ;;  %v1163_v12 = vsub.f32 1.0, %v1156_v56  ;;  %v1164_v13 = vsub.f32 1.0, %v1157_v15 }
 0x17b   :  { %v1134_v6 = vadd.f32 %v1133_v61, %v1128_v62  ;;  %v1136_v43 = vsel %vm166_vm0, %v1130_v44, 0.0  ;;  %v1165_v20 = vsub.f32 1.0, %v1158_v31  ;;  %v1166_v54 = vsub.f32 1.0, %v1159_v17 }
 0x17c   :  { %v1167_v14 = vsub.f32 1.0, %v1160_v28  ;;  %v1168_v32 = vmax.f32 %v1161_v4, 0.0  ;;  %v1169_v42 = vmax.f32 %v1162_v59, 0.0  ;;  %v1170_v53 = vmax.f32 %v1163_v12, 0.0 }
 0x17d   :  { %v1135_v55 = vadd.f32 %v1134_v6, %v1129_v7  ;;  %v3942_v24 = vsub.f32 %v789_v41, %v839_v22  ;;  %v3944_v8 = vmul.f32 %v889_v33, %v888_v27  ;;  %v939_v38 = vadd.f32 %v938_v3, %v3893_v18 }
 0x17e   :  { %v1171_v30 = vmax.f32 %v1164_v13, 0.0  ;;  %v1174_v19 = vmax.f32 %v1167_v14, 0.0  ;;  %v1175_v2 = vmul.f32 %v3676_v1, %v1168_v32  ;;  %v1176_v5 = vmul.f32 %v3709_v11, %v1169_v42 }
 0x17f   :  { %v1137_v50 = vadd.f32 %v1136_v43, %v1135_v55  ;;  %v989_v63 = vrot.slane %v3919_v35, 1  ;;  %v3951_v46 = vadd.f32 %v1038_v37, %v3908_v10  ;;  %v1089_v62 = vrot.slane %v3936_v34, 2  ;;  %v940_v43 = vld [vmem:[%s4888_s0 + $0xf] sm:$0x1] }
 0x180   :  { %v2919_v41 = vadd.f32 -21.0, %v3367_v48  ;;  %v1172_v22 = vmax.f32 %v1165_v20, 0.0  ;;  %v1173_v27 = vmax.f32 %v1166_v54, 0.0  ;;  %v1177_v18 = vmul.f32 %v3684_v47, %v1170_v53 }
 0x181   :  { %v1182_v3 = vadd.f32 %v1176_v5, %v1175_v2  ;;  %v1178_v23 = vmul.f32 %v3719_v45, %v1171_v30  ;;  %v2920_v52 = vadd.f32 -21.0, %v3401_v25  ;;  %v2921_v58 = vadd.f32 -21.0, %v3369_v49 }
 0x182   :  { %v2922_v60 = vadd.f32 -21.0, %v3403_v26  ;;  %v1138_v40 = vrot.slane %v1137_v50, 4  ;;  %v1181_v10 = vmul.f32 %v3726_v0, %v1174_v19  ;;  %v2923_v39 = vadd.f32 -21.0, %v3346_v16 }
 0x183   :  { %v1183_v37 = vadd.f32 %v1182_v3, %v1177_v18  ;;  %v2924_v7 = vadd.f32 -21.0, %v3351_v21  ;;  %v2925_v44 = vadd.f32 -21.0, %v3422_v9  ;;  %v1205_v36 = vand.u32 2147483647, %v2919_v41 }
 0x184   :  { %v1206_v29 = vand.u32 2147483647, %v2920_v52  ;;  %v1179_v61 = vmul.f32 %v3660_v51, %v1172_v22  ;;  %v1207_v15 = vand.u32 2147483647, %v2921_v58  ;;  %v1208_v31 = vand.u32 2147483647, %v2922_v60 }
 0x185   :  { %v1184_v56 = vadd.f32 %v1183_v37, %v1178_v23  ;;  %v1180_v17 = vmul.f32 %v3663_v57, %v1173_v27  ;;  %v1209_v28 = vand.u32 2147483647, %v2923_v39  ;;  %v1210_v4 = vand.u32 2147483647, %v2924_v7  ;;  %v3993_v7 = vld [vmem:[#allocation2 + $0x28] sm:$0xff] }
 0x186   :  { %v1211_v33 = vand.u32 2147483647, %v2925_v44  ;;  %v3966_v6 = vadd.f32 %v1138_v40, %v1137_v50  ;;  %v1212_v12 = vsub.f32 1.0, %v1205_v36  ;;  %v1213_v13 = vsub.f32 1.0, %v1206_v29 }
 0x187   :  { %v1185_v59 = vadd.f32 %v1184_v56, %v1179_v61  ;;  %v1187_v20 = vsel %vm166_vm0, %v1181_v10, 0.0  ;;  %v1214_v51 = vsub.f32 1.0, %v1207_v15  ;;  %v1215_v54 = vsub.f32 1.0, %v1208_v31 }
 0x188   :  { %v1216_v14 = vsub.f32 1.0, %v1209_v28  ;;  %v1217_v32 = vsub.f32 1.0, %v1210_v4  ;;  %v1218_v57 = vsub.f32 1.0, %v1211_v33  ;;  %v1219_v42 = vmax.f32 %v1212_v12, 0.0  ;;  %v991_v12 = vld [vmem:[%s4888_s0 + $0x10] sm:$0x1] }
 0x189   :  { %v1186_v55 = vadd.f32 %v1185_v59, %v1180_v17  ;;  %v891_v53 = vsub.f32 %v3942_v24, %v3944_v8  ;;  %v1220_v30 = vmax.f32 %v1213_v13, 0.0  ;;  %v1221_v50 = vmax.f32 %v1214_v51, 0.0 }
 0x18a   :  { %v941_v19 = vmul.f32 %v940_v43, %v939_v38  ;;  %v990_v2 = vadd.f32 %v989_v63, %v3919_v35  ;;  %v1222_v41 = vmax.f32 %v1215_v54, 0.0  ;;  %v1040_v22 = vrot.slane %v3951_v46, 1 }
 0x18b   :  { %v1188_v5 = vadd.f32 %v1187_v20, %v1186_v55  ;;  %v1223_v27 = vmax.f32 %v1216_v14, 0.0  ;;  %v1226_v18 = vmul.f32 %v3676_v1, %v1219_v42  ;;  %v1227_v3 = vmul.f32 %v3709_v11, %v1220_v30 }
 0x18c   :  { %v3979_v23 = vadd.f32 %v1089_v62, %v3936_v34  ;;  %v1140_v52 = vrot.slane %v3966_v6, 2  ;;  %v1224_v24 = vmax.f32 %v1217_v32, 0.0  ;;  %v1225_v8 = vmax.f32 %v1218_v57, 0.0  ;;  %v3988_v34 = vld [vmem:[#allocation2 + $0x20] sm:$0xff] }
 0x18d   :  { %v1228_v38 = vmul.f32 %v3684_v47, %v1221_v50  ;;  %v1233_v58 = vadd.f32 %v1227_v3, %v1226_v18  ;;  %v2926_v35 = vadd.f32 -22.0, %v3367_v48  ;;  %v2927_v63 = vadd.f32 -22.0, %v3401_v25 }
 0x18e   :  { %v1189_v60 = vrot.slane %v1188_v5, 4  ;;  %v1229_v40 = vmul.f32 %v3719_v45, %v1222_v41  ;;  %v2928_v1 = vadd.f32 -22.0, %v3369_v49  ;;  %v2929_v10 = vadd.f32 -22.0, %v3403_v26 }
 0x18f   :  { %v1230_v62 = vmul.f32 %v3988_v34, %v1223_v27  ;;  %v1234_v37 = vadd.f32 %v1233_v58, %v1228_v38  ;;  %v2930_v39 = vadd.f32 -22.0, %v3346_v16  ;;  %v2931_v47 = vadd.f32 -22.0, %v3351_v21  ;;  %v4008_v38 = vld [vmem:[#allocation2] sm:$0xff] }
 0x190   :  { %v1231_v44 = vmul.f32 %v3993_v7, %v1224_v24  ;;  %v2932_v36 = vadd.f32 -22.0, %v3422_v9  ;;  %v1256_v29 = vand.u32 2147483647, %v2926_v35  ;;  %v1257_v61 = vand.u32 2147483647, %v2927_v63 }
 0x191   :  { %v1235_v56 = vadd.f32 %v1234_v37, %v1229_v40  ;;  %v1258_v15 = vand.u32 2147483647, %v2928_v1  ;;  %v1259_v31 = vand.u32 2147483647, %v2929_v10  ;;  %v1260_v17 = vand.u32 2147483647, %v2930_v39 }
 0x192   :  { %v1232_v28 = vmul.f32 %v3726_v0, %v1225_v8  ;;  %v1261_v4 = vand.u32 2147483647, %v2931_v47  ;;  %v1262_v33 = vand.u32 2147483647, %v2932_v36  ;;  %v1263_v59 = vsub.f32 1.0, %v1256_v29  ;;  %v4018_v40 = vld [vmem:[#allocation2 + $0x10] sm:$0xff] }
 0x193   :  { %v1236_v13 = vadd.f32 %v1235_v56, %v1230_v62  ;;  %v1264_v43 = vsub.f32 1.0, %v1257_v61  ;;  %v1265_v20 = vsub.f32 1.0, %v1258_v15  ;;  %v1266_v51 = vsub.f32 1.0, %v1259_v31 }
 0x194   :  { %v4001_v54 = vadd.f32 %v1189_v60, %v1188_v5  ;;  %v1267_v14 = vsub.f32 1.0, %v1260_v17  ;;  %v1268_v55 = vsub.f32 1.0, %v1261_v4  ;;  %v1269_v32 = vsub.f32 1.0, %v1262_v33 }
 0x195   :  { %v1237_v57 = vadd.f32 %v1236_v13, %v1231_v44  ;;  %v1270_v42 = vmax.f32 %v1263_v59, 0.0  ;;  %v1271_v30 = vmax.f32 %v1264_v43, 0.0  ;;  %v1272_v50 = vmax.f32 %v1265_v20, 0.0  ;;  %v1042_v13 = vld [vmem:[%s4888_s0 + $0x11] sm:$0x1] }
 0x196   :  { %v4003_v41 = vsub.f32 %v891_v53, %v941_v19  ;;  %v4005_v27 = vmul.f32 %v991_v12, %v990_v2  ;;  %v1238_v18 = vsel %vm166_vm0, %v1232_v28, 0.0  ;;  %v1273_v3 = vmax.f32 %v1266_v51, 0.0 }
 0x197   :  { %v1274_v24 = vmax.f32 %v1267_v14, 0.0  ;;  %v1276_v8 = vmax.f32 %v1269_v32, 0.0  ;;  %v1277_v5 = vmul.f32 %v4008_v38, %v1270_v42  ;;  %v1278_v58 = vmul.f32 %v3709_v11, %v1271_v30 }
 0x198   :  { %v1041_v35 = vadd.f32 %v1040_v22, %v3951_v46  ;;  %v1091_v63 = vrot.slane %v3979_v23, 1  ;;  %v4015_v53 = vadd.f32 %v1140_v52, %v3966_v6  ;;  %v1191_v19 = vrot.slane %v4001_v54, 2 }
 0x199   :  { %v1239_v2 = vadd.f32 %v1238_v18, %v1237_v57  ;;  %v1275_v60 = vmax.f32 %v1268_v55, 0.0  ;;  %v1279_v1 = vmul.f32 %v4018_v40, %v1272_v50  ;;  %v1284_v10 = vadd.f32 %v1278_v58, %v1277_v5 }
 0x19a   :  { %v1280_v62 = vmul.f32 %v3719_v45, %v1273_v3  ;;  %v2933_v11 = vadd.f32 -23.0, %v3367_v48  ;;  %v2934_v46 = vadd.f32 -23.0, %v3401_v25  ;;  %v2935_v22 = vadd.f32 -23.0, %v3369_v49 }
 0x19b   :  { %v1281_v6 = vmul.f32 %v3988_v34, %v1274_v24  ;;  %v1283_v52 = vmul.f32 %v3726_v0, %v1276_v8  ;;  %v1285_v37 = vadd.f32 %v1284_v10, %v1279_v1  ;;  %v2936_v39 = vadd.f32 -23.0, %v3403_v26 }
 0x19c   :  { %v2937_v47 = vadd.f32 -23.0, %v3346_v16  ;;  %v2938_v44 = vadd.f32 -23.0, %v3351_v21  ;;  %v2939_v36 = vadd.f32 -23.0, %v3422_v9  ;;  %v1307_v45 = vand.u32 2147483647, %v2933_v11 }
 0x19d   :  { %v1240_v29 = vrot.slane %v1239_v2, 4  ;;  %v1286_v61 = vadd.f32 %v1285_v37, %v1280_v62  ;;  %v1308_v56 = vand.u32 2147483647, %v2934_v46  ;;  %v1309_v15 = vand.u32 2147483647, %v2935_v22 }
 0x19e   :  { %v1282_v31 = vmul.f32 %v3993_v7, %v1275_v60  ;;  %v1310_v17 = vand.u32 2147483647, %v2936_v39  ;;  %v1311_v28 = vand.u32 2147483647, %v2937_v47  ;;  %v1312_v4 = vand.u32 2147483647, %v2938_v44 }
 0x19f   :  { %v1287_v0 = vadd.f32 %v1286_v61, %v1281_v6  ;;  %v1289_v33 = vsel %vm166_vm0, %v1283_v52, 0.0  ;;  %v1313_v59 = vand.u32 2147483647, %v2939_v36  ;;  %v1314_v12 = vsub.f32 1.0, %v1307_v45  ;;  %v4061_v45 = vld [vmem:[#allocation2 + $0x30] sm:$0x7] }
 0x1a0   :  { %v1315_v43 = vsub.f32 1.0, %v1308_v56  ;;  %v1316_v20 = vsub.f32 1.0, %v1309_v15  ;;  %v1317_v51 = vsub.f32 1.0, %v1310_v17  ;;  %v1318_v14 = vsub.f32 1.0, %v1311_v28 }
 0x1a1   :  { %v4036_v55 = vadd.f32 %v1240_v29, %v1239_v2  ;;  %v1288_v32 = vadd.f32 %v1287_v0, %v1282_v31  ;;  %v1319_v57 = vsub.f32 1.0, %v1312_v4  ;;  %v1320_v42 = vsub.f32 1.0, %v1313_v59  ;;  %v4042_v2 = vld [vmem:[#allocation2 + $0x8] sm:$0xff] }
 0x1a2   :  { %v993_v30 = vsub.f32 %v4003_v41, %v4005_v27  ;;  %v1321_v50 = vmax.f32 %v1314_v12, 0.0  ;;  %v1322_v18 = vmax.f32 %v1315_v43, 0.0  ;;  %v1323_v3 = vmax.f32 %v1316_v20, 0.0 }
 0x1a3   :  { %v1043_v24 = vmul.f32 %v1042_v13, %v1041_v35  ;;  %v1290_v8 = vadd.f32 %v1289_v33, %v1288_v32  ;;  %v1324_v5 = vmax.f32 %v1317_v51, 0.0  ;;  %v1325_v58 = vmax.f32 %v1318_v14, 0.0  ;;  %v1093_v14 = vld [vmem:[%s4888_s0 + $0x12] sm:$0x1] }
 0x1a4   :  { %v1092_v60 = vadd.f32 %v1091_v63, %v3979_v23  ;;  %v1326_v1 = vmax.f32 %v1319_v57, 0.0  ;;  %v1328_v10 = vmul.f32 %v4008_v38, %v1321_v50  ;;  %v1329_v62 = vmul.f32 %v4042_v2, %v1322_v18  ;;  %v4052_v63 = vld [vmem:[#allocation2 + $0x18] sm:$0xff] }
 0x1a5   :  { %v1142_v11 = vrot.slane %v4015_v53, 1  ;;  %v4047_v41 = vadd.f32 %v1191_v19, %v4001_v54  ;;  %v1242_v27 = vrot.slane %v4036_v55, 2  ;;  %v1327_v35 = vmax.f32 %v1320_v42, 0.0 }
 0x1a6   :  { %v1291_v46 = vrot.slane %v1290_v8, 4  ;;  %v1330_v22 = vmul.f32 %v4018_v40, %v1323_v3  ;;  %v1335_v6 = vadd.f32 %v1329_v62, %v1328_v10  ;;  %v2940_v23 = vadd.f32 -24.0, %v3367_v48 }
 0x1a7   :  { %v1331_v52 = vmul.f32 %v4052_v63, %v1324_v5  ;;  %v1332_v37 = vmul.f32 %v3988_v34, %v1325_v58  ;;  %v2941_v39 = vadd.f32 -24.0, %v3401_v25  ;;  %v2942_v54 = vadd.f32 -24.0, %v3369_v49 }
 0x1a8   :  { %v1333_v19 = vmul.f32 %v3993_v7, %v1326_v1  ;;  %v1336_v47 = vadd.f32 %v1335_v6, %v1330_v22  ;;  %v2943_v44 = vadd.f32 -24.0, %v3403_v26  ;;  %v2944_v36 = vadd.f32 -24.0, %v3346_v16 }
 0x1a9   :  { %v1334_v29 = vmul.f32 %v4061_v45, %v1327_v35  ;;  %v2945_v61 = vadd.f32 -24.0, %v3351_v21  ;;  %v2946_v56 = vadd.f32 -24.0, %v3422_v9  ;;  %v1358_v15 = vand.u32 2147483647, %v2940_v23 }
 0x1aa   :  { %v1337_v31 = vadd.f32 %v1336_v47, %v1331_v52  ;;  %v1359_v17 = vand.u32 2147483647, %v2941_v39  ;;  %v1360_v28 = vand.u32 2147483647, %v2942_v54  ;;  %v1361_v4 = vand.u32 2147483647, %v2943_v44 }
 0x1ab   :  { %v4066_v0 = vadd.f32 %v1291_v46, %v1290_v8  ;;  %v1362_v33 = vand.u32 2147483647, %v2944_v36  ;;  %v1363_v59 = vand.u32 2147483647, %v2945_v61  ;;  %v1364_v12 = vand.u32 2147483647, %v2946_v56 }
 0x1ac   :  { %v1338_v13 = vadd.f32 %v1337_v31, %v1332_v37  ;;  %v1365_v43 = vsub.f32 1.0, %v1358_v15  ;;  %v1366_v20 = vsub.f32 1.0, %v1359_v17  ;;  %v1367_v51 = vsub.f32 1.0, %v1360_v28 }
 0x1ad   :  { %v1340_v32 = vsel %vm166_vm0, %v1334_v29, 0.0  ;;  %v1368_v57 = vsub.f32 1.0, %v1361_v4  ;;  %v1369_v42 = vsub.f32 1.0, %v1362_v33  ;;  %v1370_v50 = vsub.f32 1.0, %v1363_v59 }
 0x1ae   :  { %v1339_v18 = vadd.f32 %v1338_v13, %v1333_v19  ;;  %v1371_v3 = vsub.f32 1.0, %v1364_v12  ;;  %v1372_v8 = vmax.f32 %v1365_v43, 0.0  ;;  %v1373_v5 = vmax.f32 %v1366_v20, 0.0 }
 0x1af   :  { %v4072_v58 = vsub.f32 %v993_v30, %v1043_v24  ;;  %v1374_v1 = vmax.f32 %v1367_v51, 0.0  ;;  %v1375_v10 = vmax.f32 %v1368_v57, 0.0  ;;  %v4074_v62 = vmul.f32 %v1093_v14, %v1092_v60  ;;  %v1144_v14 = vld [vmem:[%s4888_s0 + $0x13] sm:$0x1] }
 0x1b0   :  { %v1143_v35 = vadd.f32 %v1142_v11, %v4015_v53  ;;  %v1341_v46 = vadd.f32 %v1340_v32, %v1339_v18  ;;  %v1376_v22 = vmax.f32 %v1369_v42, 0.0  ;;  %v1193_v6 = vrot.slane %v4047_v41, 1 }
 0x1b1   :  { %v4079_v23 = vadd.f32 %v1242_v27, %v4036_v55  ;;  %v1379_v52 = vmul.f32 %v4008_v38, %v1372_v8  ;;  %v1380_v37 = vmul.f32 %v4042_v2, %v1373_v5  ;;  %v1293_v30 = vrot.slane %v4066_v0, 2 }
 0x1b2   :  { %v1377_v24 = vmax.f32 %v1370_v50, 0.0  ;;  %v1378_v39 = vmax.f32 %v1371_v3, 0.0  ;;  %v1381_v60 = vmul.f32 %v4018_v40, %v1374_v1  ;;  %v1382_v54 = vmul.f32 %v4052_v63, %v1375_v10 }
 0x1b3   :  { %v1386_v53 = vadd.f32 %v1380_v37, %v1379_v52  ;;  %v2947_v11 = vadd.f32 -25.0, %v3367_v48  ;;  %v2948_v19 = vadd.f32 -25.0, %v3401_v25  ;;  %v1342_v47 = vrot.slane %v1341_v46, 4 }
 0x1b4   :  { %v1383_v55 = vmul.f32 %v3988_v34, %v1376_v22  ;;  %v2949_v27 = vadd.f32 -25.0, %v3369_v49  ;;  %v2950_v44 = vadd.f32 -25.0, %v3403_v26  ;;  %v2951_v29 = vadd.f32 -25.0, %v3346_v16 }
 0x1b5   :  { %v1387_v36 = vadd.f32 %v1386_v53, %v1381_v60  ;;  %v2952_v61 = vadd.f32 -25.0, %v3351_v21  ;;  %v2953_v56 = vadd.f32 -25.0, %v3422_v9  ;;  %v1384_v15 = vmul.f32 %v3993_v7, %v1377_v24 }
 0x1b6   :  { %v1385_v31 = vmul.f32 %v4061_v45, %v1378_v39  ;;  %v1409_v17 = vand.u32 2147483647, %v2947_v11  ;;  %v1410_v28 = vand.u32 2147483647, %v2948_v19  ;;  %v1411_v33 = vand.u32 2147483647, %v2949_v27 }
 0x1b7   :  { %v1388_v4 = vadd.f32 %v1387_v36, %v1382_v54  ;;  %v1412_v59 = vand.u32 2147483647, %v2950_v44  ;;  %v1413_v12 = vand.u32 2147483647, %v2951_v29  ;;  %v4096_v13 = vadd.f32 %v1342_v47, %v1341_v46 }
 0x1b8   :  { %v1414_v43 = vand.u32 2147483647, %v2952_v61  ;;  %v1415_v20 = vand.u32 2147483647, %v2953_v56  ;;  %v1416_v51 = vsub.f32 1.0, %v1409_v17  ;;  %v1417_v57 = vsub.f32 1.0, %v1410_v28 }
 0x1b9   :  { %v1389_v32 = vadd.f32 %v1388_v4, %v1383_v55  ;;  %v1418_v42 = vsub.f32 1.0, %v1411_v33  ;;  %v1419_v50 = vsub.f32 1.0, %v1412_v59  ;;  %v1391_v18 = vsel %vm166_vm0, %v1385_v31, 0.0 }
 0x1ba   :  { %v1420_v3 = vsub.f32 1.0, %v1413_v12  ;;  %v1421_v8 = vsub.f32 1.0, %v1414_v43  ;;  %v1422_v5 = vsub.f32 1.0, %v1415_v20  ;;  %v1423_v10 = vmax.f32 %v1416_v51, 0.0 }
 0x1bb   :  { %v1390_v1 = vadd.f32 %v1389_v32, %v1384_v15  ;;  %v1424_v46 = vmax.f32 %v1417_v57, 0.0  ;;  %v1425_v22 = vmax.f32 %v1418_v42, 0.0  ;;  %v1095_v52 = vsub.f32 %v4072_v58, %v4074_v62 }
 0x1bc   :  { %v1145_v37 = vmul.f32 %v1144_v14, %v1143_v35  ;;  %v1194_v24 = vadd.f32 %v1193_v6, %v4047_v41  ;;  %v1426_v39 = vmax.f32 %v1419_v50, 0.0  ;;  %v1429_v54 = vmax.f32 %v1422_v5, 0.0 }
 0x1bd   :  { %v1392_v60 = vadd.f32 %v1391_v18, %v1390_v1  ;;  %v1430_v53 = vmul.f32 %v4008_v38, %v1423_v10  ;;  %v1431_v11 = vmul.f32 %v4042_v2, %v1424_v46  ;;  %v1244_v19 = vrot.slane %v4079_v23, 1  ;;  %v1195_v18 = vld [vmem:[%s4888_s0 + $0x14] sm:$0x1] }
 0x1be   :  { %v4109_v47 = vadd.f32 %v1293_v30, %v4066_v0  ;;  %v1344_v55 = vrot.slane %v4096_v13, 2  ;;  %v2954_v27 = vadd.f32 -26.0, %v3367_v48  ;;  %v1427_v58 = vmax.f32 %v1420_v3, 0.0 }
 0x1bf   :  { %v1428_v62 = vmax.f32 %v1421_v8, 0.0  ;;  %v1432_v41 = vmul.f32 %v4018_v40, %v1425_v22  ;;  %v1437_v35 = vadd.f32 %v1431_v11, %v1430_v53  ;;  %v1433_v6 = vmul.f32 %v4052_v63, %v1426_v39 }
 0x1c0   :  { %v2955_v44 = vadd.f32 -26.0, %v3401_v25  ;;  %v2956_v36 = vadd.f32 -26.0, %v3369_v49  ;;  %v2957_v29 = vadd.f32 -26.0, %v3403_v26  ;;  %v1393_v61 = vrot.slane %v1392_v60, 4 }
 0x1c1   :  { %v1436_v0 = vmul.f32 %v4061_v45, %v1429_v54  ;;  %v1438_v30 = vadd.f32 %v1437_v35, %v1432_v41  ;;  %v2958_v56 = vadd.f32 -26.0, %v3346_v16  ;;  %v2959_v15 = vadd.f32 -26.0, %v3351_v21 }
 0x1c2   :  { %v2960_v31 = vadd.f32 -26.0, %v3422_v9  ;;  %v1460_v17 = vand.u32 2147483647, %v2954_v27  ;;  %v1461_v28 = vand.u32 2147483647, %v2955_v44  ;;  %v1434_v4 = vmul.f32 %v3988_v34, %v1427_v58 }
 0x1c3   :  { %v1439_v33 = vadd.f32 %v1438_v30, %v1433_v6  ;;  %v1462_v59 = vand.u32 2147483647, %v2956_v36  ;;  %v1463_v12 = vand.u32 2147483647, %v2957_v29  ;;  %v1435_v43 = vmul.f32 %v3993_v7, %v1428_v62 }
 0x1c4   :  { %v1464_v20 = vand.u32 2147483647, %v2958_v56  ;;  %v1465_v51 = vand.u32 2147483647, %v2959_v15  ;;  %v1466_v14 = vand.u32 2147483647, %v2960_v31  ;;  %v4124_v32 = vadd.f32 %v1393_v61, %v1392_v60 }
 0x1c5   :  { %v1440_v57 = vadd.f32 %v1439_v33, %v1434_v4  ;;  %v1467_v42 = vsub.f32 1.0, %v1460_v17  ;;  %v1468_v50 = vsub.f32 1.0, %v1461_v28  ;;  %v1442_v3 = vsel %vm166_vm0, %v1436_v0, 0.0 }
 0x1c6   :  { %v1469_v8 = vsub.f32 1.0, %v1462_v59  ;;  %v1470_v5 = vsub.f32 1.0, %v1463_v12  ;;  %v1471_v1 = vsub.f32 1.0, %v1464_v20  ;;  %v1472_v46 = vsub.f32 1.0, %v1465_v51 }
 0x1c7   :  { %v1441_v10 = vadd.f32 %v1440_v57, %v1435_v43  ;;  %v1473_v22 = vsub.f32 1.0, %v1466_v14  ;;  %v1474_v39 = vmax.f32 %v1467_v42, 0.0  ;;  %v4130_v54 = vsub.f32 %v1095_v52, %v1145_v37 }
 0x1c8   :  { %v1475_v60 = vmax.f32 %v1468_v50, 0.0  ;;  %v1476_v53 = vmax.f32 %v1469_v8, 0.0  ;;  %v4132_v11 = vmul.f32 %v1195_v18, %v1194_v24  ;;  %v1245_v27 = vadd.f32 %v1244_v19, %v4079_v23  ;;  %v1246_v18 = vld [vmem:[%s4888_s0 + $0x15] sm:$0x1] }
 0x1c9   :  { %v1443_v58 = vadd.f32 %v1442_v3, %v1441_v10  ;;  %v1477_v62 = vmax.f32 %v1470_v5, 0.0  ;;  %v1295_v41 = vrot.slane %v4109_v47, 1  ;;  %v1478_v35 = vmax.f32 %v1471_v1, 0.0 }
 0x1ca   :  { %v1481_v6 = vmul.f32 %v4008_v38, %v1474_v39  ;;  %v1482_v44 = vmul.f32 %v4042_v2, %v1475_v60  ;;  %v4139_v36 = vadd.f32 %v1344_v55, %v4096_v13  ;;  %v1395_v52 = vrot.slane %v4124_v32, 2 }
 0x1cb   :  { %v1479_v37 = vmax.f32 %v1472_v46, 0.0  ;;  %v1480_v29 = vmax.f32 %v1473_v22, 0.0  ;;  %v1483_v24 = vmul.f32 %v4018_v40, %v1476_v53  ;;  %v2961_v23 = vadd.f32 -27.0, %v3367_v48 }
 0x1cc   :  { %v1488_v61 = vadd.f32 %v1482_v44, %v1481_v6  ;;  %v2962_v19 = vadd.f32 -27.0, %v3401_v25  ;;  %v1444_v0 = vrot.slane %v1443_v58, 4  ;;  %v1484_v30 = vmul.f32 %v4052_v63, %v1477_v62 }
 0x1cd   :  { %v2963_v56 = vadd.f32 -27.0, %v3369_v49  ;;  %v2964_v15 = vadd.f32 -27.0, %v3403_v26  ;;  %v1485_v13 = vmul.f32 %v3988_v34, %v1478_v35  ;;  %v2965_v31 = vadd.f32 -27.0, %v3346_v16 }
 0x1ce   :  { %v1489_v55 = vadd.f32 %v1488_v61, %v1483_v24  ;;  %v2966_v17 = vadd.f32 -27.0, %v3351_v21  ;;  %v1486_v28 = vmul.f32 %v3993_v7, %v1479_v37  ;;  %v2967_v4 = vadd.f32 -27.0, %v3422_v9 }
 0x1cf   :  { %v1511_v33 = vand.u32 2147483647, %v2961_v23  ;;  %v1512_v59 = vand.u32 2147483647, %v2962_v19  ;;  %v1513_v43 = vand.u32 2147483647, %v2963_v56  ;;  %v1487_v14 = vmul.f32 %v4061_v45, %v1480_v29 }
 0x1d0   :  { %v1490_v12 = vadd.f32 %v1489_v55, %v1484_v30  ;;  %v1514_v20 = vand.u32 2147483647, %v2964_v15  ;;  %v1515_v51 = vand.u32 2147483647, %v2965_v31  ;;  %v1516_v57 = vand.u32 2147483647, %v2966_v17 }
 0x1d1   :  { %v1517_v42 = vand.u32 2147483647, %v2967_v4  ;;  %v1518_v50 = vsub.f32 1.0, %v1511_v33  ;;  %v1519_v8 = vsub.f32 1.0, %v1512_v59  ;;  %v1520_v5 = vsub.f32 1.0, %v1513_v43 }
 0x1d2   :  { %v1491_v3 = vadd.f32 %v1490_v12, %v1485_v13  ;;  %v1521_v1 = vsub.f32 1.0, %v1514_v20  ;;  %v4157_v10 = vadd.f32 %v1444_v0, %v1443_v58  ;;  %v1522_v46 = vsub.f32 1.0, %v1515_v51 }
 0x1d3   :  { %v1523_v22 = vsub.f32 1.0, %v1516_v57  ;;  %v1524_v39 = vsub.f32 1.0, %v1517_v42  ;;  %v1525_v53 = vmax.f32 %v1518_v50, 0.0  ;;  %v1526_v62 = vmax.f32 %v1519_v8, 0.0 }
 0x1d4   :  { %v1492_v60 = vadd.f32 %v1491_v3, %v1486_v28  ;;  %v1527_v35 = vmax.f32 %v1520_v5, 0.0  ;;  %v1197_v6 = vsub.f32 %v4130_v54, %v4132_v11  ;;  %v1247_v44 = vmul.f32 %v1246_v18, %v1245_v27 }
 0x1d5   :  { %v1493_v37 = vsel %vm166_vm0, %v1487_v14, 0.0  ;;  %v1528_v29 = vmax.f32 %v1521_v1, 0.0  ;;  %v1529_v24 = vmax.f32 %v1522_v46, 0.0  ;;  %v1531_v61 = vmax.f32 %v1524_v39, 0.0  ;;  %v1297_v1 = vld [vmem:[%s4888_s0 + $0x16] sm:$0x1] }
 0x1d6   :  { %v1532_v23 = vmul.f32 %v4008_v38, %v1525_v53  ;;  %v1533_v58 = vmul.f32 %v4042_v2, %v1526_v62  ;;  %v1296_v19 = vadd.f32 %v1295_v41, %v4109_v47  ;;  %v1346_v0 = vrot.slane %v4139_v36, 1 }
 0x1d7   :  { %v4167_v30 = vadd.f32 %v1395_v52, %v4124_v32  ;;  %v1446_v56 = vrot.slane %v4157_v10, 2  ;;  %v1494_v54 = vadd.f32 %v1493_v37, %v1492_v60  ;;  %v1530_v11 = vmax.f32 %v1523_v22, 0.0 }
 0x1d8   :  { %v1534_v27 = vmul.f32 %v4018_v40, %v1527_v35  ;;  %v1539_v15 = vadd.f32 %v1533_v58, %v1532_v23  ;;  %v1535_v13 = vmul.f32 %v4052_v63, %v1528_v29  ;;  %v2968_v55 = vadd.f32 -28.0, %v3367_v48 }
 0x1d9   :  { %v2969_v31 = vadd.f32 -28.0, %v3401_v25  ;;  %v2970_v47 = vadd.f32 -28.0, %v3369_v49  ;;  %v1536_v41 = vmul.f32 %v3988_v34, %v1529_v24  ;;  %v1538_v32 = vmul.f32 %v4061_v45, %v1531_v61 }
 0x1da   :  { %v1540_v52 = vadd.f32 %v1539_v15, %v1534_v27  ;;  %v2971_v17 = vadd.f32 -28.0, %v3403_v26  ;;  %v2972_v28 = vadd.f32 -28.0, %v3346_v16  ;;  %v2973_v4 = vadd.f32 -28.0, %v3351_v21 }
 0x1db   :  { %v2974_v33 = vadd.f32 -28.0, %v3422_v9  ;;  %v1562_v59 = vand.u32 2147483647, %v2968_v55  ;;  %v1495_v12 = vrot.slane %v1494_v54, 4  ;;  %v1563_v20 = vand.u32 2147483647, %v2969_v31 }
 0x1dc   :  { %v1541_v43 = vadd.f32 %v1540_v52, %v1535_v13  ;;  %v1564_v51 = vand.u32 2147483647, %v2970_v47  ;;  %v1537_v14 = vmul.f32 %v3993_v7, %v1530_v11  ;;  %v1565_v57 = vand.u32 2147483647, %v2971_v17 }
 0x1dd   :  { %v1566_v42 = vand.u32 2147483647, %v2972_v28  ;;  %v1567_v50 = vand.u32 2147483647, %v2973_v4  ;;  %v1544_v3 = vsel %vm166_vm0, %v1538_v32, 0.0  ;;  %v1569_v5 = vsub.f32 1.0, %v1562_v59 }
 0x1de   :  { %v1542_v18 = vadd.f32 %v1541_v43, %v1536_v41  ;;  %v1568_v8 = vand.u32 2147483647, %v2974_v33  ;;  %v1570_v46 = vsub.f32 1.0, %v1563_v20  ;;  %v1571_v22 = vsub.f32 1.0, %v1564_v51 }
 0x1df   :  { %v1572_v39 = vsub.f32 1.0, %v1565_v57  ;;  %v1573_v60 = vsub.f32 1.0, %v1566_v42  ;;  %v4186_v53 = vadd.f32 %v1495_v12, %v1494_v54  ;;  %v1574_v35 = vsub.f32 1.0, %v1567_v50 }
 0x1e0   :  { %v1543_v62 = vadd.f32 %v1542_v18, %v1537_v14  ;;  %v1575_v37 = vsub.f32 1.0, %v1568_v8  ;;  %v4188_v29 = vsub.f32 %v1197_v6, %v1247_v44  ;;  %v1576_v24 = vmax.f32 %v1569_v5, 0.0 }
 0x1e1   :  { %v1577_v61 = vmax.f32 %v1570_v46, 0.0  ;;  %v1578_v23 = vmax.f32 %v1571_v22, 0.0  ;;  %v4190_v58 = vmul.f32 %v1297_v1, %v1296_v19  ;;  %v1579_v27 = vmax.f32 %v1572_v39, 0.0 }
 0x1e2   :  { %v1545_v11 = vadd.f32 %v1544_v3, %v1543_v62  ;;  %v1580_v15 = vmax.f32 %v1573_v60, 0.0  ;;  %v1347_v13 = vadd.f32 %v1346_v0, %v4139_v36  ;;  %v1581_v55 = vmax.f32 %v1574_v35, 0.0  ;;  %v1348_v60 = vld [vmem:[%s4888_s0 + $0x17] sm:$0x1] }
 0x1e3   :  { %v1583_v31 = vmul.f32 %v4008_v38, %v1576_v24  ;;  %v1584_v54 = vmul.f32 %v4042_v2, %v1577_v61  ;;  %v1397_v47 = vrot.slane %v4167_v30, 1  ;;  %v4197_v6 = vadd.f32 %v1446_v56, %v4157_v10 }
 0x1e4   :  { %v1497_v44 = vrot.slane %v4186_v53, 2  ;;  %v1582_v41 = vmax.f32 %v1575_v37, 0.0  ;;  %v1546_v19 = vrot.slane %v1545_v11, 4  ;;  %v1585_v32 = vmul.f32 %v4018_v40, %v1578_v23 }
 0x1e5   :  { %v1590_v52 = vadd.f32 %v1584_v54, %v1583_v31  ;;  %v2975_v17 = vadd.f32 -29.0, %v3367_v48  ;;  %v1586_v36 = vmul.f32 %v4052_v63, %v1579_v27  ;;  %v1587_v0 = vmul.f32 %v3988_v34, %v1580_v15 }
 0x1e6   :  { %v2976_v28 = vadd.f32 -29.0, %v3401_v25  ;;  %v2977_v4 = vadd.f32 -29.0, %v3369_v49  ;;  %v1588_v10 = vmul.f32 %v3993_v7, %v1581_v55  ;;  %v2978_v33 = vadd.f32 -29.0, %v3403_v26 }
 0x1e7   :  { %v1591_v56 = vadd.f32 %v1590_v52, %v1585_v32  ;;  %v2979_v59 = vadd.f32 -29.0, %v3346_v16  ;;  %v1589_v12 = vmul.f32 %v4061_v45, %v1582_v41  ;;  %v2980_v43 = vadd.f32 -29.0, %v3351_v21 }
 0x1e8   :  { %v2981_v20 = vadd.f32 -29.0, %v3422_v9  ;;  %v1613_v51 = vand.u32 2147483647, %v2975_v17  ;;  %v1614_v57 = vand.u32 2147483647, %v2976_v28  ;;  %v4212_v18 = vadd.f32 %v1546_v19, %v1545_v11 }
 0x1e9   :  { %v1592_v14 = vadd.f32 %v1591_v56, %v1586_v36  ;;  %v1615_v42 = vand.u32 2147483647, %v2977_v4  ;;  %v1616_v50 = vand.u32 2147483647, %v2978_v33  ;;  %v1617_v3 = vand.u32 2147483647, %v2979_v59 }
 0x1ea   :  { %v1618_v8 = vand.u32 2147483647, %v2980_v43  ;;  %v1619_v5 = vand.u32 2147483647, %v2981_v20  ;;  %v1620_v46 = vsub.f32 1.0, %v1613_v51  ;;  %v1621_v22 = vsub.f32 1.0, %v1614_v57 }
 0x1eb   :  { %v1593_v1 = vadd.f32 %v1592_v14, %v1587_v0  ;;  %v1622_v39 = vsub.f32 1.0, %v1615_v42  ;;  %v1595_v62 = vsel %vm166_vm0, %v1589_v12, 0.0  ;;  %v1623_v35 = vsub.f32 1.0, %v1616_v50 }
 0x1ec   :  { %v1624_v37 = vsub.f32 1.0, %v1617_v3  ;;  %v1625_v24 = vsub.f32 1.0, %v1618_v8  ;;  %v1626_v23 = vsub.f32 1.0, %v1619_v5  ;;  %v1627_v11 = vmax.f32 %v1620_v46, 0.0 }
 0x1ed   :  { %v1594_v61 = vadd.f32 %v1593_v1, %v1588_v10  ;;  %v1628_v27 = vmax.f32 %v1621_v22, 0.0  ;;  %v1299_v15 = vsub.f32 %v4188_v29, %v4190_v58  ;;  %v1629_v55 = vmax.f32 %v1622_v39, 0.0 }
 0x1ee   :  { %v1630_v31 = vmax.f32 %v1623_v35, 0.0  ;;  %v1349_v54 = vmul.f32 %v1348_v60, %v1347_v13  ;;  %v1398_v41 = vadd.f32 %v1397_v47, %v4167_v30  ;;  %v1631_v32 = vmax.f32 %v1624_v37, 0.0  ;;  %v1399_v60 = vld [vmem:[%s4888_s0 + $0x18] sm:$0x1] }
 0x1ef   :  { %v1596_v19 = vadd.f32 %v1595_v62, %v1594_v61  ;;  %v1448_v52 = vrot.slane %v4197_v6, 1  ;;  %v4223_v17 = vadd.f32 %v1497_v44, %v4186_v53  ;;  %v1634_v36 = vmul.f32 %v4008_v38, %v1627_v11 }
 0x1f0   :  { %v1635_v0 = vmul.f32 %v4042_v2, %v1628_v27  ;;  %v1548_v28 = vrot.slane %v4212_v18, 2  ;;  %v1632_v4 = vmax.f32 %v1625_v24, 0.0  ;;  %v1633_v29 = vmax.f32 %v1626_v23, 0.0 }
 0x1f1   :  { %v1636_v58 = vmul.f32 %v4018_v40, %v1629_v55  ;;  %v1637_v13 = vmul.f32 %v4052_v63, %v1630_v31  ;;  %v2982_v47 = vadd.f32 -30.0, %v3367_v48  ;;  %v2983_v10 = vadd.f32 -30.0, %v3401_v25 }
 0x1f2   :  { %v1641_v30 = vadd.f32 %v1635_v0, %v1634_v36  ;;  %v1597_v56 = vrot.slane %v1596_v19, 4  ;;  %v1638_v53 = vmul.f32 %v3988_v34, %v1631_v32  ;;  %v2984_v44 = vadd.f32 -30.0, %v3369_v49 }
 0x1f3   :  { %v2985_v33 = vadd.f32 -30.0, %v3403_v26  ;;  %v2986_v12 = vadd.f32 -30.0, %v3346_v16  ;;  %v2987_v43 = vadd.f32 -30.0, %v3351_v21  ;;  %v2988_v20 = vadd.f32 -30.0, %v3422_v9 }
 0x1f4   :  { %v1642_v59 = vadd.f32 %v1641_v30, %v1636_v58  ;;  %v1639_v51 = vmul.f32 %v3993_v7, %v1632_v4  ;;  %v1640_v14 = vmul.f32 %v4061_v45, %v1633_v29  ;;  %v1664_v57 = vand.u32 2147483647, %v2982_v47 }
 0x1f5   :  { %v1665_v42 = vand.u32 2147483647, %v2983_v10  ;;  %v1666_v3 = vand.u32 2147483647, %v2984_v44  ;;  %v1667_v8 = vand.u32 2147483647, %v2985_v33  ;;  %v4240_v1 = vadd.f32 %v1597_v56, %v1596_v19 }
 0x1f6   :  { %v1643_v50 = vadd.f32 %v1642_v59, %v1637_v13  ;;  %v1668_v5 = vand.u32 2147483647, %v2986_v12  ;;  %v1669_v46 = vand.u32 2147483647, %v2987_v43  ;;  %v1670_v22 = vand.u32 2147483647, %v2988_v20 }
 0x1f7   :  { %v1671_v39 = vsub.f32 1.0, %v1664_v57  ;;  %v1672_v35 = vsub.f32 1.0, %v1665_v42  ;;  %v1673_v37 = vsub.f32 1.0, %v1666_v3  ;;  %v1674_v24 = vsub.f32 1.0, %v1667_v8 }
 0x1f8   :  { %v1644_v62 = vadd.f32 %v1643_v50, %v1638_v53  ;;  %v1646_v61 = vsel %vm166_vm0, %v1640_v14, 0.0  ;;  %v1675_v23 = vsub.f32 1.0, %v1668_v5  ;;  %v1676_v11 = vsub.f32 1.0, %v1669_v46 }
 0x1f9   :  { %v1677_v27 = vsub.f32 1.0, %v1670_v22  ;;  %v1678_v31 = vmax.f32 %v1671_v39, 0.0  ;;  %v1679_v19 = vmax.f32 %v1672_v35, 0.0  ;;  %v1680_v32 = vmax.f32 %v1673_v37, 0.0 }
 0x1fa   :  { %v1645_v55 = vadd.f32 %v1644_v62, %v1639_v51  ;;  %v4246_v36 = vsub.f32 %v1299_v15, %v1349_v54  ;;  %v4248_v0 = vmul.f32 %v1399_v60, %v1398_v41  ;;  %v1449_v4 = vadd.f32 %v1448_v52, %v4197_v6 }
 0x1fb   :  { %v1681_v29 = vmax.f32 %v1674_v24, 0.0  ;;  %v1684_v13 = vmax.f32 %v1677_v27, 0.0  ;;  %v1685_v30 = vmul.f32 %v4008_v38, %v1678_v31  ;;  %v1686_v47 = vmul.f32 %v4042_v2, %v1679_v19 }
 0x1fc   :  { %v1647_v58 = vadd.f32 %v1646_v61, %v1645_v55  ;;  %v1499_v10 = vrot.slane %v4223_v17, 1  ;;  %v4255_v56 = vadd.f32 %v1548_v28, %v4212_v18  ;;  %v1599_v53 = vrot.slane %v4240_v1, 2  ;;  %v1450_v61 = vld [vmem:[%s4888_s0 + $0x19] sm:$0x1] }
 0x1fd   :  { %v2989_v15 = vadd.f32 -31.0, %v3367_v48  ;;  %v1682_v54 = vmax.f32 %v1675_v23, 0.0  ;;  %v1683_v41 = vmax.f32 %v1676_v11, 0.0  ;;  %v1687_v6 = vmul.f32 %v4018_v40, %v1680_v32 }
 0x1fe   :  { %v1692_v52 = vadd.f32 %v1686_v47, %v1685_v30  ;;  %v1688_v44 = vmul.f32 %v4052_v63, %v1681_v29  ;;  %v2990_v33 = vadd.f32 -31.0, %v3401_v25  ;;  %v2991_v59 = vadd.f32 -31.0, %v3369_v49 }
 0x1ff   :  { %v2992_v12 = vadd.f32 -31.0, %v3403_v26  ;;  %v1648_v43 = vrot.slane %v1647_v58, 4  ;;  %v1691_v18 = vmul.f32 %v4061_v45, %v1684_v13  ;;  %v2993_v20 = vadd.f32 -31.0, %v3346_v16 }
 0x200   :  { %v1693_v28 = vadd.f32 %v1692_v52, %v1687_v6  ;;  %v2994_v51 = vadd.f32 -31.0, %v3351_v21  ;;  %v2995_v14 = vadd.f32 -31.0, %v3422_v9  ;;  %v1715_v57 = vand.u32 2147483647, %v2989_v15 }
 0x201   :  { %v1716_v42 = vand.u32 2147483647, %v2990_v33  ;;  %v1689_v50 = vmul.f32 %v3988_v34, %v1682_v54  ;;  %v1717_v8 = vand.u32 2147483647, %v2991_v59  ;;  %v1718_v5 = vand.u32 2147483647, %v2992_v12 }
 0x202   :  { %v1694_v3 = vadd.f32 %v1693_v28, %v1688_v44  ;;  %v1690_v46 = vmul.f32 %v3993_v7, %v1683_v41  ;;  %v1719_v22 = vand.u32 2147483647, %v2993_v20  ;;  %v1720_v39 = vand.u32 2147483647, %v2994_v51 }
 0x203   :  { %v1721_v60 = vand.u32 2147483647, %v2995_v14  ;;  %v4270_v62 = vadd.f32 %v1648_v43, %v1647_v58  ;;  %v1722_v37 = vsub.f32 1.0, %v1715_v57  ;;  %v1723_v24 = vsub.f32 1.0, %v1716_v42 }
 0x204   :  { %v1695_v35 = vadd.f32 %v1694_v3, %v1689_v50  ;;  %v1697_v23 = vsel %vm166_vm0, %v1691_v18, 0.0  ;;  %v1724_v11 = vsub.f32 1.0, %v1717_v8  ;;  %v1725_v27 = vsub.f32 1.0, %v1718_v5 }
 0x205   :  { %v1726_v55 = vsub.f32 1.0, %v1719_v22  ;;  %v1727_v19 = vsub.f32 1.0, %v1720_v39  ;;  %v1728_v32 = vsub.f32 1.0, %v1721_v60  ;;  %v1729_v29 = vmax.f32 %v1722_v37, 0.0 }
 0x206   :  { %v1696_v31 = vadd.f32 %v1695_v35, %v1690_v46  ;;  %v1401_v58 = vsub.f32 %v4246_v36, %v4248_v0  ;;  %v1730_v13 = vmax.f32 %v1723_v24, 0.0  ;;  %v1731_v30 = vmax.f32 %v1724_v11, 0.0  ;;  %v1501_v24 = vld [vmem:[%s4888_s0 + $0x1a] sm:$0x1] }
 0x207   :  { %v1451_v47 = vmul.f32 %v1450_v61, %v1449_v4  ;;  %v1500_v15 = vadd.f32 %v1499_v10, %v4223_v17  ;;  %v1732_v41 = vmax.f32 %v1725_v27, 0.0  ;;  %v1550_v6 = vrot.slane %v4255_v56, 1 }
 0x208   :  { %v1698_v54 = vadd.f32 %v1697_v23, %v1696_v31  ;;  %v1733_v52 = vmax.f32 %v1726_v55, 0.0  ;;  %v1736_v44 = vmul.f32 %v4008_v38, %v1729_v29  ;;  %v1737_v33 = vmul.f32 %v4042_v2, %v1730_v13 }
 0x209   :  { %v4283_v59 = vadd.f32 %v1599_v53, %v4240_v1  ;;  %v1650_v12 = vrot.slane %v4270_v62, 2  ;;  %v1734_v36 = vmax.f32 %v1727_v19, 0.0  ;;  %v1735_v0 = vmax.f32 %v1728_v32, 0.0 }
 0x20a   :  { %v1738_v4 = vmul.f32 %v4018_v40, %v1731_v30  ;;  %v1743_v43 = vadd.f32 %v1737_v33, %v1736_v44  ;;  %v2996_v17 = vadd.f32 -32.0, %v3367_v48  ;;  %v2997_v10 = vadd.f32 -32.0, %v3401_v25 }
 0x20b   :  { %v1699_v18 = vrot.slane %v1698_v54, 4  ;;  %v1739_v28 = vmul.f32 %v4052_v63, %v1732_v41  ;;  %v2998_v20 = vadd.f32 -32.0, %v3369_v49  ;;  %v2999_v51 = vadd.f32 -32.0, %v3403_v26 }
 0x20c   :  { %v1740_v1 = vmul.f32 %v3988_v34, %v1733_v52  ;;  %v1744_v53 = vadd.f32 %v1743_v43, %v1738_v4  ;;  %v3000_v14 = vadd.f32 -32.0, %v3346_v16  ;;  %v3001_v57 = vadd.f32 -32.0, %v3351_v21 }
 0x20d   :  { %v1741_v42 = vmul.f32 %v3993_v7, %v1734_v36  ;;  %v3002_v50 = vadd.f32 -32.0, %v3422_v9  ;;  %v1766_v3 = vand.u32 2147483647, %v2996_v17  ;;  %v1767_v8 = vand.u32 2147483647, %v2997_v10 }
 0x20e   :  { %v1745_v5 = vadd.f32 %v1744_v53, %v1739_v28  ;;  %v1768_v46 = vand.u32 2147483647, %v2998_v20  ;;  %v1769_v22 = vand.u32 2147483647, %v2999_v51  ;;  %v1770_v39 = vand.u32 2147483647, %v3000_v14 }
 0x20f   :  { %v1742_v60 = vmul.f32 %v4061_v45, %v1735_v0  ;;  %v1771_v35 = vand.u32 2147483647, %v3001_v57  ;;  %v1772_v37 = vand.u32 2147483647, %v3002_v50  ;;  %v1773_v34 = vsub.f32 1.0, %v1766_v3 }
 0x210   :  { %v1746_v61 = vadd.f32 %v1745_v5, %v1740_v1  ;;  %v1774_v23 = vsub.f32 1.0, %v1767_v8  ;;  %v1775_v7 = vsub.f32 1.0, %v1768_v46  ;;  %v1776_v11 = vsub.f32 1.0, %v1769_v22  ;;  %v4329_v46 = vld [vmem:[#allocation2 + $0x28] sm:$0xff] }
 0x211   :  { %v4301_v27 = vadd.f32 %v1699_v18, %v1698_v54  ;;  %v1777_v55 = vsub.f32 1.0, %v1770_v39  ;;  %v1778_v31 = vsub.f32 1.0, %v1771_v35  ;;  %v1779_v19 = vsub.f32 1.0, %v1772_v37 }
 0x212   :  { %v1747_v32 = vadd.f32 %v1746_v61, %v1741_v42  ;;  %v1780_v29 = vmax.f32 %v1773_v34, 0.0  ;;  %v1781_v13 = vmax.f32 %v1774_v23, 0.0  ;;  %v1782_v30 = vmax.f32 %v1775_v7, 0.0  ;;  %v1552_v23 = vld [vmem:[%s4888_s0 + $0x1b] sm:$0x1] }
 0x213   :  { %v4303_v41 = vsub.f32 %v1401_v58, %v1451_v47  ;;  %v4305_v52 = vmul.f32 %v1501_v24, %v1500_v15  ;;  %v1748_v44 = vsel %vm166_vm0, %v1742_v60, 0.0  ;;  %v1783_v33 = vmax.f32 %v1776_v11, 0.0 }
 0x214   :  { %v1784_v36 = vmax.f32 %v1777_v55, 0.0  ;;  %v1786_v0 = vmax.f32 %v1779_v19, 0.0  ;;  %v1787_v4 = vmul.f32 %v4008_v38, %v1780_v29  ;;  %v1788_v54 = vmul.f32 %v4042_v2, %v1781_v13 }
 0x215   :  { %v1551_v43 = vadd.f32 %v1550_v6, %v4255_v56  ;;  %v1601_v17 = vrot.slane %v4283_v59, 1  ;;  %v4313_v10 = vadd.f32 %v1650_v12, %v4270_v62  ;;  %v1701_v58 = vrot.slane %v4301_v27, 2  ;;  %v4321_v6 = vld [vmem:[#allocation2 + $0x20] sm:$0xff] }
 0x216   :  { %v1749_v47 = vadd.f32 %v1748_v44, %v1747_v32  ;;  %v1785_v15 = vmax.f32 %v1778_v31, 0.0  ;;  %v1789_v18 = vmul.f32 %v4018_v40, %v1782_v30  ;;  %v1794_v28 = vadd.f32 %v1788_v54, %v1787_v4 }
 0x217   :  { %v1790_v20 = vmul.f32 %v4052_v63, %v1783_v33  ;;  %v3003_v38 = vadd.f32 -33.0, %v3367_v48  ;;  %v3004_v51 = vadd.f32 -33.0, %v3401_v25  ;;  %v3005_v56 = vadd.f32 -33.0, %v3369_v49 }
 0x218   :  { %v1791_v62 = vmul.f32 %v4321_v6, %v1784_v36  ;;  %v1793_v12 = vmul.f32 %v4061_v45, %v1786_v0  ;;  %v1795_v1 = vadd.f32 %v1794_v28, %v1789_v18  ;;  %v3006_v53 = vadd.f32 -33.0, %v3403_v26 }
 0x219   :  { %v3007_v40 = vadd.f32 -33.0, %v3346_v16  ;;  %v3008_v14 = vadd.f32 -33.0, %v3351_v21  ;;  %v3009_v57 = vadd.f32 -33.0, %v3422_v9  ;;  %v1817_v42 = vand.u32 2147483647, %v3003_v38 }
 0x21a   :  { %v1750_v50 = vrot.slane %v1749_v47, 4  ;;  %v1796_v3 = vadd.f32 %v1795_v1, %v1790_v20  ;;  %v1818_v8 = vand.u32 2147483647, %v3004_v51  ;;  %v1819_v5 = vand.u32 2147483647, %v3005_v56  ;;  %v4341_v20 = vld [vmem:[#allocation2] sm:$0xff] }
 0x21b   :  { %v1792_v22 = vmul.f32 %v4329_v46, %v1785_v15  ;;  %v1820_v39 = vand.u32 2147483647, %v3006_v53  ;;  %v1821_v60 = vand.u32 2147483647, %v3007_v40  ;;  %v1822_v35 = vand.u32 2147483647, %v3008_v14 }
 0x21c   :  { %v1797_v37 = vadd.f32 %v1796_v3, %v1791_v62  ;;  %v1799_v34 = vsel %vm166_vm0, %v1793_v12, 0.0  ;;  %v1823_v24 = vand.u32 2147483647, %v3009_v57  ;;  %v1824_v61 = vsub.f32 1.0, %v1817_v42  ;;  %v4350_v62 = vld [vmem:[#allocation2 + $0x10] sm:$0xff] }
 0x21d   :  { %v1825_v7 = vsub.f32 1.0, %v1818_v8  ;;  %v1826_v11 = vsub.f32 1.0, %v1819_v5  ;;  %v1827_v55 = vsub.f32 1.0, %v1820_v39  ;;  %v1828_v31 = vsub.f32 1.0, %v1821_v60 }
 0x21e   :  { %v4336_v19 = vadd.f32 %v1750_v50, %v1749_v47  ;;  %v1798_v32 = vadd.f32 %v1797_v37, %v1792_v22  ;;  %v1829_v29 = vsub.f32 1.0, %v1822_v35  ;;  %v1830_v13 = vsub.f32 1.0, %v1823_v24 }
 0x21f   :  { %v1503_v30 = vsub.f32 %v4303_v41, %v4305_v52  ;;  %v1831_v44 = vmax.f32 %v1824_v61, 0.0  ;;  %v1832_v33 = vmax.f32 %v1825_v7, 0.0  ;;  %v1833_v36 = vmax.f32 %v1826_v11, 0.0 }
 0x220   :  { %v1553_v0 = vmul.f32 %v1552_v23, %v1551_v43  ;;  %v1800_v4 = vadd.f32 %v1799_v34, %v1798_v32  ;;  %v1834_v54 = vmax.f32 %v1827_v55, 0.0  ;;  %v1835_v15 = vmax.f32 %v1828_v31, 0.0 }
 0x221   :  { %v1602_v18 = vadd.f32 %v1601_v17, %v4283_v59  ;;  %v1836_v28 = vmax.f32 %v1829_v29, 0.0  ;;  %v1838_v47 = vmul.f32 %v4341_v20, %v1831_v44  ;;  %v1839_v38 = vmul.f32 %v4042_v2, %v1832_v33 }
 0x222   :  { %v1652_v51 = vrot.slane %v4313_v10, 1  ;;  %v4347_v41 = vadd.f32 %v1701_v58, %v4301_v27  ;;  %v1752_v52 = vrot.slane %v4336_v19, 2  ;;  %v1837_v43 = vmax.f32 %v1830_v13, 0.0 }
 0x223   :  { %v1801_v56 = vrot.slane %v1800_v4, 4  ;;  %v1840_v59 = vmul.f32 %v4350_v62, %v1833_v36  ;;  %v1845_v17 = vadd.f32 %v1839_v38, %v1838_v47  ;;  %v3010_v12 = vadd.f32 -34.0, %v3367_v48 }
 0x224   :  { %v1841_v1 = vmul.f32 %v4052_v63, %v1834_v54  ;;  %v1842_v2 = vmul.f32 %v4321_v6, %v1835_v15  ;;  %v3011_v53 = vadd.f32 -34.0, %v3401_v25  ;;  %v3012_v27 = vadd.f32 -34.0, %v3369_v49 }
 0x225   :  { %v1843_v58 = vmul.f32 %v4329_v46, %v1836_v28  ;;  %v1846_v40 = vadd.f32 %v1845_v17, %v1840_v59  ;;  %v3013_v14 = vadd.f32 -34.0, %v3403_v26  ;;  %v3014_v57 = vadd.f32 -34.0, %v3346_v16  ;;  %v4380_v17 = vld [vmem:[#allocation2 + $0x8] sm:$0xff] }
 0x226   :  { %v1844_v42 = vmul.f32 %v4061_v45, %v1837_v43  ;;  %v3015_v50 = vadd.f32 -34.0, %v3351_v21  ;;  %v3016_v3 = vadd.f32 -34.0, %v3422_v9  ;;  %v1868_v63 = vand.u32 2147483647, %v3010_v12  ;;  %v1603_v45 = vld [vmem:[%s4888_s0 + $0x1c] sm:$0x1] }
 0x227   :  { %v1847_v8 = vadd.f32 %v1846_v40, %v1841_v1  ;;  %v1869_v5 = vand.u32 2147483647, %v3011_v53  ;;  %v1870_v22 = vand.u32 2147483647, %v3012_v27  ;;  %v1871_v39 = vand.u32 2147483647, %v3013_v14 }
 0x228   :  { %v4364_v60 = vadd.f32 %v1801_v56, %v1800_v4  ;;  %v1872_v35 = vand.u32 2147483647, %v3014_v57  ;;  %v1873_v37 = vand.u32 2147483647, %v3015_v50  ;;  %v1874_v34 = vand.u32 2147483647, %v3016_v3 }
 0x229   :  { %v1848_v24 = vadd.f32 %v1847_v8, %v1842_v2  ;;  %v1875_v61 = vsub.f32 1.0, %v1868_v63  ;;  %v1876_v23 = vsub.f32 1.0, %v1869_v5  ;;  %v1877_v7 = vsub.f32 1.0, %v1870_v22  ;;  %v4397_v63 = vld [vmem:[#allocation2 + $0x30] sm:$0x7] }
 0x22a   :  { %v1850_v11 = vsel %vm166_vm0, %v1844_v42, 0.0  ;;  %v1878_v55 = vsub.f32 1.0, %v1871_v39  ;;  %v1879_v31 = vsub.f32 1.0, %v1872_v35  ;;  %v1880_v32 = vsub.f32 1.0, %v1873_v37 }
 0x22b   :  { %v1849_v29 = vadd.f32 %v1848_v24, %v1843_v58  ;;  %v1881_v13 = vsub.f32 1.0, %v1874_v34  ;;  %v1882_v44 = vmax.f32 %v1875_v61, 0.0  ;;  %v1883_v33 = vmax.f32 %v1876_v23, 0.0 }
 0x22c   :  { %v4370_v36 = vsub.f32 %v1503_v30, %v1553_v0  ;;  %v1884_v4 = vmax.f32 %v1877_v7, 0.0  ;;  %v1885_v54 = vmax.f32 %v1878_v55, 0.0  ;;  %v4372_v15 = vmul.f32 %v1603_v45, %v1602_v18  ;;  %v1654_v45 = vld [vmem:[%s4888_s0 + $0x1d] sm:$0x1] }
 0x22d   :  { %v1653_v28 = vadd.f32 %v1652_v51, %v4313_v10  ;;  %v1851_v47 = vadd.f32 %v1850_v11, %v1849_v29  ;;  %v1886_v38 = vmax.f32 %v1879_v31, 0.0  ;;  %v1703_v43 = vrot.slane %v4347_v41, 1  ;;  %v4385_v10 = vld [vmem:[#allocation2 + $0x18] sm:$0xff] }
 0x22e   :  { %v4377_v56 = vadd.f32 %v1752_v52, %v4336_v19  ;;  %v1889_v59 = vmul.f32 %v4341_v20, %v1882_v44  ;;  %v1890_v30 = vmul.f32 %v4380_v17, %v1883_v33  ;;  %v1803_v0 = vrot.slane %v4364_v60, 2 }
 0x22f   :  { %v1887_v12 = vmax.f32 %v1880_v32, 0.0  ;;  %v1888_v18 = vmax.f32 %v1881_v13, 0.0  ;;  %v1891_v1 = vmul.f32 %v4350_v62, %v1884_v4  ;;  %v1892_v51 = vmul.f32 %v4385_v10, %v1885_v54 }
 0x230   :  { %v1896_v2 = vadd.f32 %v1890_v30, %v1889_v59  ;;  %v3017_v19 = vadd.f32 -35.0, %v3367_v48  ;;  %v3018_v52 = vadd.f32 -35.0, %v3401_v25  ;;  %v1852_v53 = vrot.slane %v1851_v47, 4 }
 0x231   :  { %v1893_v27 = vmul.f32 %v4321_v6, %v1886_v38  ;;  %v3019_v58 = vadd.f32 -35.0, %v3369_v49  ;;  %v3020_v40 = vadd.f32 -35.0, %v3403_v26  ;;  %v3021_v57 = vadd.f32 -35.0, %v3346_v16 }
 0x232   :  { %v1897_v14 = vadd.f32 %v1896_v2, %v1891_v1  ;;  %v3022_v42 = vadd.f32 -35.0, %v3351_v21  ;;  %v3023_v50 = vadd.f32 -35.0, %v3422_v9  ;;  %v1894_v3 = vmul.f32 %v4329_v46, %v1887_v12 }
 0x233   :  { %v1895_v8 = vmul.f32 %v4397_v63, %v1888_v18  ;;  %v1919_v5 = vand.u32 2147483647, %v3017_v19  ;;  %v1920_v22 = vand.u32 2147483647, %v3018_v52  ;;  %v1921_v35 = vand.u32 2147483647, %v3019_v58 }
 0x234   :  { %v1898_v39 = vadd.f32 %v1897_v14, %v1892_v51  ;;  %v1922_v37 = vand.u32 2147483647, %v3020_v40  ;;  %v1923_v34 = vand.u32 2147483647, %v3021_v57  ;;  %v4400_v24 = vadd.f32 %v1852_v53, %v1851_v47 }
 0x235   :  { %v1924_v61 = vand.u32 2147483647, %v3022_v42  ;;  %v1925_v23 = vand.u32 2147483647, %v3023_v50  ;;  %v1926_v7 = vsub.f32 1.0, %v1919_v5  ;;  %v1927_v55 = vsub.f32 1.0, %v1920_v22 }
 0x236   :  { %v1899_v11 = vadd.f32 %v1898_v39, %v1893_v27  ;;  %v1928_v31 = vsub.f32 1.0, %v1921_v35  ;;  %v1929_v32 = vsub.f32 1.0, %v1922_v37  ;;  %v1901_v29 = vsel %vm166_vm0, %v1895_v8, 0.0 }
 0x237   :  { %v1930_v13 = vsub.f32 1.0, %v1923_v34  ;;  %v1931_v44 = vsub.f32 1.0, %v1924_v61  ;;  %v1932_v33 = vsub.f32 1.0, %v1925_v23  ;;  %v1933_v54 = vmax.f32 %v1926_v7, 0.0 }
 0x238   :  { %v1900_v4 = vadd.f32 %v1899_v11, %v1894_v3  ;;  %v1934_v47 = vmax.f32 %v1927_v55, 0.0  ;;  %v1935_v38 = vmax.f32 %v1928_v31, 0.0  ;;  %v1605_v59 = vsub.f32 %v4370_v36, %v4372_v15 }
 0x239   :  { %v1655_v30 = vmul.f32 %v1654_v45, %v1653_v28  ;;  %v1704_v12 = vadd.f32 %v1703_v43, %v4347_v41  ;;  %v1936_v18 = vmax.f32 %v1929_v32, 0.0  ;;  %v1939_v51 = vmax.f32 %v1932_v33, 0.0 }
 0x23a   :  { %v1902_v1 = vadd.f32 %v1901_v29, %v1900_v4  ;;  %v1940_v2 = vmul.f32 %v4341_v20, %v1933_v54  ;;  %v1941_v19 = vmul.f32 %v4380_v17, %v1934_v47  ;;  %v1754_v52 = vrot.slane %v4377_v56, 1  ;;  %v1705_v29 = vld [vmem:[%s4888_s0 + $0x1e] sm:$0x1] }
 0x23b   :  { %v4413_v53 = vadd.f32 %v1803_v0, %v4364_v60  ;;  %v1854_v27 = vrot.slane %v4400_v24, 2  ;;  %v3024_v58 = vadd.f32 -36.0, %v3367_v48  ;;  %v1937_v36 = vmax.f32 %v1930_v13, 0.0 }
 0x23c   :  { %v1938_v15 = vmax.f32 %v1931_v44, 0.0  ;;  %v1942_v41 = vmul.f32 %v4350_v62, %v1935_v38  ;;  %v1947_v28 = vadd.f32 %v1941_v19, %v1940_v2  ;;  %v1943_v43 = vmul.f32 %v4385_v10, %v1936_v18 }
 0x23d   :  { %v3025_v40 = vadd.f32 -36.0, %v3401_v25  ;;  %v3026_v14 = vadd.f32 -36.0, %v3369_v49  ;;  %v3027_v57 = vadd.f32 -36.0, %v3403_v26  ;;  %v1903_v42 = vrot.slane %v1902_v1, 4 }
 0x23e   :  { %v1946_v60 = vmul.f32 %v4397_v63, %v1939_v51  ;;  %v1948_v0 = vadd.f32 %v1947_v28, %v1942_v41  ;;  %v3028_v50 = vadd.f32 -36.0, %v3346_v16  ;;  %v3029_v3 = vadd.f32 -36.0, %v3351_v21 }
 0x23f   :  { %v3030_v8 = vadd.f32 -36.0, %v3422_v9  ;;  %v1970_v5 = vand.u32 2147483647, %v3024_v58  ;;  %v1971_v22 = vand.u32 2147483647, %v3025_v40  ;;  %v1944_v39 = vmul.f32 %v4321_v6, %v1937_v36 }
 0x240   :  { %v1949_v35 = vadd.f32 %v1948_v0, %v1943_v43  ;;  %v1972_v37 = vand.u32 2147483647, %v3026_v14  ;;  %v1973_v34 = vand.u32 2147483647, %v3027_v57  ;;  %v1945_v61 = vmul.f32 %v4329_v46, %v1938_v15 }
 0x241   :  { %v1974_v23 = vand.u32 2147483647, %v3028_v50  ;;  %v1975_v7 = vand.u32 2147483647, %v3029_v3  ;;  %v1976_v45 = vand.u32 2147483647, %v3030_v8  ;;  %v4428_v11 = vadd.f32 %v1903_v42, %v1902_v1 }
 0x242   :  { %v1950_v55 = vadd.f32 %v1949_v35, %v1944_v39  ;;  %v1977_v31 = vsub.f32 1.0, %v1970_v5  ;;  %v1978_v32 = vsub.f32 1.0, %v1971_v22  ;;  %v1952_v13 = vsel %vm166_vm0, %v1946_v60, 0.0 }
 0x243   :  { %v1979_v44 = vsub.f32 1.0, %v1972_v37  ;;  %v1980_v33 = vsub.f32 1.0, %v1973_v34  ;;  %v1981_v4 = vsub.f32 1.0, %v1974_v23  ;;  %v1982_v47 = vsub.f32 1.0, %v1975_v7 }
 0x244   :  { %v1951_v54 = vadd.f32 %v1950_v55, %v1945_v61  ;;  %v1983_v38 = vsub.f32 1.0, %v1976_v45  ;;  %v1984_v18 = vmax.f32 %v1977_v31, 0.0  ;;  %v4434_v51 = vsub.f32 %v1605_v59, %v1655_v30 }
 0x245   :  { %v1985_v1 = vmax.f32 %v1978_v32, 0.0  ;;  %v1986_v2 = vmax.f32 %v1979_v44, 0.0  ;;  %v4436_v19 = vmul.f32 %v1705_v29, %v1704_v12  ;;  %v1755_v58 = vadd.f32 %v1754_v52, %v4377_v56  ;;  %v1756_v29 = vld [vmem:[%s4888_s0 + $0x1f] sm:$0x1] }
 0x246   :  { %v1953_v36 = vadd.f32 %v1952_v13, %v1951_v54  ;;  %v1987_v15 = vmax.f32 %v1980_v33, 0.0  ;;  %v1805_v41 = vrot.slane %v4413_v53, 1  ;;  %v1988_v28 = vmax.f32 %v1981_v4, 0.0 }
 0x247   :  { %v1991_v43 = vmul.f32 %v4341_v20, %v1984_v18  ;;  %v1992_v40 = vmul.f32 %v4380_v17, %v1985_v1  ;;  %v4443_v14 = vadd.f32 %v1854_v27, %v4400_v24  ;;  %v1905_v59 = vrot.slane %v4428_v11, 2 }
 0x248   :  { %v1989_v30 = vmax.f32 %v1982_v47, 0.0  ;;  %v1990_v57 = vmax.f32 %v1983_v38, 0.0  ;;  %v1993_v12 = vmul.f32 %v4350_v62, %v1986_v2  ;;  %v3031_v56 = vadd.f32 -37.0, %v3367_v48 }
 0x249   :  { %v1998_v42 = vadd.f32 %v1992_v40, %v1991_v43  ;;  %v3032_v52 = vadd.f32 -37.0, %v3401_v25  ;;  %v1954_v60 = vrot.slane %v1953_v36, 4  ;;  %v1994_v0 = vmul.f32 %v4385_v10, %v1987_v15 }
 0x24a   :  { %v3033_v50 = vadd.f32 -37.0, %v3369_v49  ;;  %v3034_v3 = vadd.f32 -37.0, %v3403_v26  ;;  %v1995_v24 = vmul.f32 %v4321_v6, %v1988_v28  ;;  %v3035_v8 = vadd.f32 -37.0, %v3346_v16 }
 0x24b   :  { %v1999_v27 = vadd.f32 %v1998_v42, %v1993_v12  ;;  %v3036_v5 = vadd.f32 -37.0, %v3351_v21  ;;  %v1996_v22 = vmul.f32 %v4329_v46, %v1989_v30  ;;  %v3037_v39 = vadd.f32 -37.0, %v3422_v9 }
 0x24c   :  { %v2021_v35 = vand.u32 2147483647, %v3031_v56  ;;  %v2022_v37 = vand.u32 2147483647, %v3032_v52  ;;  %v2023_v61 = vand.u32 2147483647, %v3033_v50  ;;  %v1997_v45 = vmul.f32 %v4397_v63, %v1990_v57 }
 0x24d   :  { %v2000_v34 = vadd.f32 %v1999_v27, %v1994_v0  ;;  %v2024_v23 = vand.u32 2147483647, %v3034_v3  ;;  %v2025_v7 = vand.u32 2147483647, %v3035_v8  ;;  %v2026_v55 = vand.u32 2147483647, %v3036_v5 }
 0x24e   :  { %v2027_v31 = vand.u32 2147483647, %v3037_v39  ;;  %v2028_v32 = vsub.f32 1.0, %v2021_v35  ;;  %v2029_v44 = vsub.f32 1.0, %v2022_v37  ;;  %v2030_v33 = vsub.f32 1.0, %v2023_v61 }
 0x24f   :  { %v2001_v13 = vadd.f32 %v2000_v34, %v1995_v24  ;;  %v2031_v4 = vsub.f32 1.0, %v2024_v23  ;;  %v4461_v54 = vadd.f32 %v1954_v60, %v1953_v36  ;;  %v2032_v47 = vsub.f32 1.0, %v2025_v7 }
 0x250   :  { %v2033_v38 = vsub.f32 1.0, %v2026_v55  ;;  %v2034_v18 = vsub.f32 1.0, %v2027_v31  ;;  %v2035_v2 = vmax.f32 %v2028_v32, 0.0  ;;  %v2036_v15 = vmax.f32 %v2029_v44, 0.0 }
 0x251   :  { %v2002_v1 = vadd.f32 %v2001_v13, %v1996_v22  ;;  %v2037_v28 = vmax.f32 %v2030_v33, 0.0  ;;  %v1707_v43 = vsub.f32 %v4434_v51, %v4436_v19  ;;  %v1757_v40 = vmul.f32 %v1756_v29, %v1755_v58 }
 0x252   :  { %v2003_v30 = vsel %vm166_vm0, %v1997_v45, 0.0  ;;  %v2038_v57 = vmax.f32 %v2031_v4, 0.0  ;;  %v2039_v12 = vmax.f32 %v2032_v47, 0.0  ;;  %v2041_v42 = vmax.f32 %v2034_v18, 0.0  ;;  %v1807_v4 = vld [vmem:[%s4888_s0 + $0x20] sm:$0x1] }
 0x253   :  { %v2042_v56 = vmul.f32 %v4341_v20, %v2035_v2  ;;  %v2043_v36 = vmul.f32 %v4380_v17, %v2036_v15  ;;  %v1806_v52 = vadd.f32 %v1805_v41, %v4413_v53  ;;  %v1856_v60 = vrot.slane %v4443_v14, 1 }
 0x254   :  { %v4471_v0 = vadd.f32 %v1905_v59, %v4428_v11  ;;  %v1956_v50 = vrot.slane %v4461_v54, 2  ;;  %v2004_v51 = vadd.f32 %v2003_v30, %v2002_v1  ;;  %v2040_v19 = vmax.f32 %v2033_v38, 0.0 }
 0x255   :  { %v2044_v58 = vmul.f32 %v4350_v62, %v2037_v28  ;;  %v2049_v3 = vadd.f32 %v2043_v36, %v2042_v56  ;;  %v2045_v24 = vmul.f32 %v4385_v10, %v2038_v57  ;;  %v3038_v27 = vadd.f32 -38.0, %v3367_v48 }
 0x256   :  { %v3039_v8 = vadd.f32 -38.0, %v3401_v25  ;;  %v3040_v53 = vadd.f32 -38.0, %v3369_v49  ;;  %v2046_v41 = vmul.f32 %v4321_v6, %v2039_v12  ;;  %v2048_v11 = vmul.f32 %v4397_v63, %v2041_v42 }
 0x257   :  { %v2050_v59 = vadd.f32 %v2049_v3, %v2044_v58  ;;  %v3041_v5 = vadd.f32 -38.0, %v3403_v26  ;;  %v3042_v22 = vadd.f32 -38.0, %v3346_v16  ;;  %v3043_v39 = vadd.f32 -38.0, %v3351_v21 }
 0x258   :  { %v3044_v35 = vadd.f32 -38.0, %v3422_v9  ;;  %v2072_v37 = vand.u32 2147483647, %v3038_v27  ;;  %v2005_v34 = vrot.slane %v2004_v51, 4  ;;  %v2073_v23 = vand.u32 2147483647, %v3039_v8 }
 0x259   :  { %v2051_v61 = vadd.f32 %v2050_v59, %v2045_v24  ;;  %v2074_v7 = vand.u32 2147483647, %v3040_v53  ;;  %v2047_v45 = vmul.f32 %v4329_v46, %v2040_v19  ;;  %v2075_v55 = vand.u32 2147483647, %v3041_v5 }
 0x25a   :  { %v2076_v31 = vand.u32 2147483647, %v3042_v22  ;;  %v2077_v32 = vand.u32 2147483647, %v3043_v39  ;;  %v2054_v13 = vsel %vm166_vm0, %v2048_v11, 0.0  ;;  %v2079_v33 = vsub.f32 1.0, %v2072_v37 }
 0x25b   :  { %v2052_v29 = vadd.f32 %v2051_v61, %v2046_v41  ;;  %v2078_v44 = vand.u32 2147483647, %v3044_v35  ;;  %v2080_v47 = vsub.f32 1.0, %v2073_v23  ;;  %v2081_v38 = vsub.f32 1.0, %v2074_v7 }
 0x25c   :  { %v2082_v18 = vsub.f32 1.0, %v2075_v55  ;;  %v2083_v1 = vsub.f32 1.0, %v2076_v31  ;;  %v4490_v2 = vadd.f32 %v2005_v34, %v2004_v51  ;;  %v2084_v28 = vsub.f32 1.0, %v2077_v32 }
 0x25d   :  { %v2053_v15 = vadd.f32 %v2052_v29, %v2047_v45  ;;  %v2085_v30 = vsub.f32 1.0, %v2078_v44  ;;  %v4492_v57 = vsub.f32 %v1707_v43, %v1757_v40  ;;  %v2086_v12 = vmax.f32 %v2079_v33, 0.0 }
 0x25e   :  { %v2087_v42 = vmax.f32 %v2080_v47, 0.0  ;;  %v2088_v56 = vmax.f32 %v2081_v38, 0.0  ;;  %v4494_v36 = vmul.f32 %v1807_v4, %v1806_v52  ;;  %v2089_v58 = vmax.f32 %v2082_v18, 0.0 }
 0x25f   :  { %v2055_v19 = vadd.f32 %v2054_v13, %v2053_v15  ;;  %v2090_v3 = vmax.f32 %v2083_v1, 0.0  ;;  %v1857_v24 = vadd.f32 %v1856_v60, %v4443_v14  ;;  %v2091_v27 = vmax.f32 %v2084_v28, 0.0  ;;  %v1858_v1 = vld [vmem:[%s4888_s0 + $0x21] sm:$0x1] }
 0x260   :  { %v2093_v8 = vmul.f32 %v4341_v20, %v2086_v12  ;;  %v2094_v51 = vmul.f32 %v4380_v17, %v2087_v42  ;;  %v1907_v53 = vrot.slane %v4471_v0, 1  ;;  %v4501_v43 = vadd.f32 %v1956_v50, %v4461_v54 }
 0x261   :  { %v2007_v40 = vrot.slane %v4490_v2, 2  ;;  %v2092_v41 = vmax.f32 %v2085_v30, 0.0  ;;  %v2056_v52 = vrot.slane %v2055_v19, 4  ;;  %v2095_v11 = vmul.f32 %v4350_v62, %v2088_v56 }
 0x262   :  { %v2100_v59 = vadd.f32 %v2094_v51, %v2093_v8  ;;  %v3045_v5 = vadd.f32 -39.0, %v3367_v48  ;;  %v2096_v14 = vmul.f32 %v4385_v10, %v2089_v58  ;;  %v2097_v60 = vmul.f32 %v4321_v6, %v2090_v3 }
 0x263   :  { %v3046_v22 = vadd.f32 -39.0, %v3401_v25  ;;  %v3047_v39 = vadd.f32 -39.0, %v3369_v49  ;;  %v2098_v54 = vmul.f32 %v4329_v46, %v2091_v27  ;;  %v3048_v35 = vadd.f32 -39.0, %v3403_v26 }
 0x264   :  { %v2101_v50 = vadd.f32 %v2100_v59, %v2095_v11  ;;  %v3049_v37 = vadd.f32 -39.0, %v3346_v16  ;;  %v2099_v34 = vmul.f32 %v4397_v63, %v2092_v41  ;;  %v3050_v61 = vadd.f32 -39.0, %v3351_v21 }
 0x265   :  { %v3051_v23 = vadd.f32 -39.0, %v3422_v9  ;;  %v2123_v7 = vand.u32 2147483647, %v3045_v5  ;;  %v2124_v55 = vand.u32 2147483647, %v3046_v22  ;;  %v4516_v29 = vadd.f32 %v2056_v52, %v2055_v19 }
 0x266   :  { %v2102_v45 = vadd.f32 %v2101_v50, %v2096_v14  ;;  %v2125_v31 = vand.u32 2147483647, %v3047_v39  ;;  %v2126_v32 = vand.u32 2147483647, %v3048_v35  ;;  %v2127_v13 = vand.u32 2147483647, %v3049_v37 }
 0x267   :  { %v2128_v44 = vand.u32 2147483647, %v3050_v61  ;;  %v2129_v33 = vand.u32 2147483647, %v3051_v23  ;;  %v2130_v47 = vsub.f32 1.0, %v2123_v7  ;;  %v2131_v38 = vsub.f32 1.0, %v2124_v55 }
 0x268   :  { %v2103_v4 = vadd.f32 %v2102_v45, %v2097_v60  ;;  %v2132_v18 = vsub.f32 1.0, %v2125_v31  ;;  %v2105_v15 = vsel %vm166_vm0, %v2099_v34, 0.0  ;;  %v2133_v28 = vsub.f32 1.0, %v2126_v32 }
 0x269   :  { %v2134_v30 = vsub.f32 1.0, %v2127_v13  ;;  %v2135_v12 = vsub.f32 1.0, %v2128_v44  ;;  %v2136_v56 = vsub.f32 1.0, %v2129_v33  ;;  %v2137_v19 = vmax.f32 %v2130_v47, 0.0 }
 0x26a   :  { %v2104_v42 = vadd.f32 %v2103_v4, %v2098_v54  ;;  %v2138_v58 = vmax.f32 %v2131_v38, 0.0  ;;  %v1809_v3 = vsub.f32 %v4492_v57, %v4494_v36  ;;  %v2139_v27 = vmax.f32 %v2132_v18, 0.0 }
 0x26b   :  { %v2140_v8 = vmax.f32 %v2133_v28, 0.0  ;;  %v1859_v51 = vmul.f32 %v1858_v1, %v1857_v24  ;;  %v1908_v41 = vadd.f32 %v1907_v53, %v4471_v0  ;;  %v2141_v11 = vmax.f32 %v2134_v30, 0.0  ;;  %v1909_v1 = vld [vmem:[%s4888_s0 + $0x22] sm:$0x1] }
 0x26c   :  { %v2106_v52 = vadd.f32 %v2105_v15, %v2104_v42  ;;  %v1958_v59 = vrot.slane %v4501_v43, 1  ;;  %v4527_v5 = vadd.f32 %v2007_v40, %v4490_v2  ;;  %v2144_v14 = vmul.f32 %v4341_v20, %v2137_v19 }
 0x26d   :  { %v2145_v60 = vmul.f32 %v4380_v17, %v2138_v58  ;;  %v2058_v22 = vrot.slane %v4516_v29, 2  ;;  %v2142_v39 = vmax.f32 %v2135_v12, 0.0  ;;  %v2143_v57 = vmax.f32 %v2136_v56, 0.0 }
 0x26e   :  { %v2146_v36 = vmul.f32 %v4350_v62, %v2139_v27  ;;  %v2147_v24 = vmul.f32 %v4385_v10, %v2140_v8  ;;  %v3052_v53 = vadd.f32 -40.0, %v3367_v48  ;;  %v3053_v54 = vadd.f32 -40.0, %v3401_v25 }
 0x26f   :  { %v2151_v0 = vadd.f32 %v2145_v60, %v2144_v14  ;;  %v2107_v50 = vrot.slane %v2106_v52, 4  ;;  %v2148_v2 = vmul.f32 %v4321_v6, %v2141_v11  ;;  %v3054_v40 = vadd.f32 -40.0, %v3369_v49 }
 0x270   :  { %v3055_v35 = vadd.f32 -40.0, %v3403_v26  ;;  %v3056_v34 = vadd.f32 -40.0, %v3346_v16  ;;  %v3057_v61 = vadd.f32 -40.0, %v3351_v21  ;;  %v3058_v23 = vadd.f32 -40.0, %v3422_v9 }
 0x271   :  { %v2152_v37 = vadd.f32 %v2151_v0, %v2146_v36  ;;  %v2149_v7 = vmul.f32 %v4329_v46, %v2142_v39  ;;  %v2150_v45 = vmul.f32 %v4397_v63, %v2143_v57  ;;  %v2174_v55 = vand.u32 2147483647, %v3052_v53 }
 0x272   :  { %v2175_v31 = vand.u32 2147483647, %v3053_v54  ;;  %v2176_v13 = vand.u32 2147483647, %v3054_v40  ;;  %v2177_v44 = vand.u32 2147483647, %v3055_v35  ;;  %v4544_v4 = vadd.f32 %v2107_v50, %v2106_v52 }
 0x273   :  { %v2153_v32 = vadd.f32 %v2152_v37, %v2147_v24  ;;  %v2178_v33 = vand.u32 2147483647, %v3056_v34  ;;  %v2179_v47 = vand.u32 2147483647, %v3057_v61  ;;  %v2180_v38 = vand.u32 2147483647, %v3058_v23 }
 0x274   :  { %v2181_v18 = vsub.f32 1.0, %v2174_v55  ;;  %v2182_v28 = vsub.f32 1.0, %v2175_v31  ;;  %v2183_v30 = vsub.f32 1.0, %v2176_v13  ;;  %v2184_v12 = vsub.f32 1.0, %v2177_v44 }
 0x275   :  { %v2154_v15 = vadd.f32 %v2153_v32, %v2148_v2  ;;  %v2156_v42 = vsel %vm166_vm0, %v2150_v45, 0.0  ;;  %v2185_v56 = vsub.f32 1.0, %v2178_v33  ;;  %v2186_v19 = vsub.f32 1.0, %v2179_v47 }
 0x276   :  { %v2187_v58 = vsub.f32 1.0, %v2180_v38  ;;  %v2188_v8 = vmax.f32 %v2181_v18, 0.0  ;;  %v2189_v52 = vmax.f32 %v2182_v28, 0.0  ;;  %v2190_v11 = vmax.f32 %v2183_v30, 0.0 }
 0x277   :  { %v2155_v27 = vadd.f32 %v2154_v15, %v2149_v7  ;;  %v4550_v14 = vsub.f32 %v1809_v3, %v1859_v51  ;;  %v4552_v60 = vmul.f32 %v1909_v1, %v1908_v41  ;;  %v1959_v39 = vadd.f32 %v1958_v59, %v4501_v43 }
 0x278   :  { %v2191_v57 = vmax.f32 %v2184_v12, 0.0  ;;  %v2194_v24 = vmax.f32 %v2187_v58, 0.0  ;;  %v2195_v0 = vmul.f32 %v4341_v20, %v2188_v8  ;;  %v2196_v53 = vmul.f32 %v4380_v17, %v2189_v52 }
 0x279   :  { %v2157_v36 = vadd.f32 %v2156_v42, %v2155_v27  ;;  %v2009_v54 = vrot.slane %v4527_v5, 1  ;;  %v4559_v50 = vadd.f32 %v2058_v22, %v4516_v29  ;;  %v2109_v2 = vrot.slane %v4544_v4, 2  ;;  %v1960_v42 = vld [vmem:[%s4888_s0 + $0x23] sm:$0x1] }
 0x27a   :  { %v3059_v3 = vadd.f32 -41.0, %v3367_v48  ;;  %v2192_v51 = vmax.f32 %v2185_v56, 0.0  ;;  %v2193_v41 = vmax.f32 %v2186_v19, 0.0  ;;  %v2197_v43 = vmul.f32 %v4350_v62, %v2190_v11 }
 0x27b   :  { %v2202_v59 = vadd.f32 %v2196_v53, %v2195_v0  ;;  %v2198_v40 = vmul.f32 %v4385_v10, %v2191_v57  ;;  %v3060_v35 = vadd.f32 -41.0, %v3401_v25  ;;  %v3061_v37 = vadd.f32 -41.0, %v3369_v49 }
 0x27c   :  { %v3062_v34 = vadd.f32 -41.0, %v3403_v26  ;;  %v2158_v61 = vrot.slane %v2157_v36, 4  ;;  %v2201_v29 = vmul.f32 %v4397_v63, %v2194_v24  ;;  %v3063_v23 = vadd.f32 -41.0, %v3346_v16 }
 0x27d   :  { %v2203_v22 = vadd.f32 %v2202_v59, %v2197_v43  ;;  %v3064_v7 = vadd.f32 -41.0, %v3351_v21  ;;  %v3065_v45 = vadd.f32 -41.0, %v3422_v9  ;;  %v2225_v55 = vand.u32 2147483647, %v3059_v3 }
 0x27e   :  { %v2226_v31 = vand.u32 2147483647, %v3060_v35  ;;  %v2199_v32 = vmul.f32 %v4321_v6, %v2192_v51  ;;  %v2227_v44 = vand.u32 2147483647, %v3061_v37  ;;  %v2228_v33 = vand.u32 2147483647, %v3062_v34 }
 0x27f   :  { %v2204_v13 = vadd.f32 %v2203_v22, %v2198_v40  ;;  %v2200_v47 = vmul.f32 %v4329_v46, %v2193_v41  ;;  %v2229_v38 = vand.u32 2147483647, %v3063_v23  ;;  %v2230_v18 = vand.u32 2147483647, %v3064_v7 }
 0x280   :  { %v2231_v1 = vand.u32 2147483647, %v3065_v45  ;;  %v4574_v15 = vadd.f32 %v2158_v61, %v2157_v36  ;;  %v2232_v30 = vsub.f32 1.0, %v2225_v55  ;;  %v2233_v12 = vsub.f32 1.0, %v2226_v31 }
 0x281   :  { %v2205_v28 = vadd.f32 %v2204_v13, %v2199_v32  ;;  %v2207_v56 = vsel %vm166_vm0, %v2201_v29, 0.0  ;;  %v2234_v19 = vsub.f32 1.0, %v2227_v44  ;;  %v2235_v58 = vsub.f32 1.0, %v2228_v33 }
 0x282   :  { %v2236_v27 = vsub.f32 1.0, %v2229_v38  ;;  %v2237_v52 = vsub.f32 1.0, %v2230_v18  ;;  %v2238_v11 = vsub.f32 1.0, %v2231_v1  ;;  %v2239_v57 = vmax.f32 %v2232_v30, 0.0 }
 0x283   :  { %v2206_v8 = vadd.f32 %v2205_v28, %v2200_v47  ;;  %v1911_v36 = vsub.f32 %v4550_v14, %v4552_v60  ;;  %v2240_v24 = vmax.f32 %v2233_v12, 0.0  ;;  %v2241_v0 = vmax.f32 %v2234_v19, 0.0 }
 0x284   :  { %v1961_v53 = vmul.f32 %v1960_v42, %v1959_v39  ;;  %v2010_v3 = vadd.f32 %v2009_v54, %v4527_v5  ;;  %v2242_v41 = vmax.f32 %v2235_v58, 0.0  ;;  %v2060_v43 = vrot.slane %v4559_v50, 1  ;;  %v2011_v42 = vld [vmem:[%s4888_s0 + $0x24] sm:$0x1] }
 0x285   :  { %v2208_v51 = vadd.f32 %v2207_v56, %v2206_v8  ;;  %v2243_v59 = vmax.f32 %v2236_v27, 0.0  ;;  %v2246_v40 = vmul.f32 %v4341_v20, %v2239_v57  ;;  %v2247_v35 = vmul.f32 %v4380_v17, %v2240_v24 }
 0x286   :  { %v4587_v37 = vadd.f32 %v2109_v2, %v4544_v4  ;;  %v2160_v34 = vrot.slane %v4574_v15, 2  ;;  %v2244_v14 = vmax.f32 %v2237_v52, 0.0  ;;  %v2245_v60 = vmax.f32 %v2238_v11, 0.0 }
 0x287   :  { %v2248_v39 = vmul.f32 %v4350_v62, %v2241_v0  ;;  %v2253_v61 = vadd.f32 %v2247_v35, %v2246_v40  ;;  %v3066_v5 = vadd.f32 -42.0, %v3367_v48  ;;  %v3067_v54 = vadd.f32 -42.0, %v3401_v25 }
 0x288   :  { %v2209_v29 = vrot.slane %v2208_v51, 4  ;;  %v2249_v22 = vmul.f32 %v4385_v10, %v2242_v41  ;;  %v3068_v23 = vadd.f32 -42.0, %v3369_v49  ;;  %v3069_v7 = vadd.f32 -42.0, %v3403_v26 }
 0x289   :  { %v2250_v4 = vmul.f32 %v4321_v6, %v2243_v59  ;;  %v2254_v2 = vadd.f32 %v2253_v61, %v2248_v39  ;;  %v3070_v45 = vadd.f32 -42.0, %v3346_v16  ;;  %v3071_v55 = vadd.f32 -42.0, %v3351_v21 }
 0x28a   :  { %v2251_v31 = vmul.f32 %v4329_v46, %v2244_v14  ;;  %v3072_v32 = vadd.f32 -42.0, %v3422_v9  ;;  %v2276_v13 = vand.u32 2147483647, %v3066_v5  ;;  %v2277_v44 = vand.u32 2147483647, %v3067_v54 }
 0x28b   :  { %v2255_v33 = vadd.f32 %v2254_v2, %v2249_v22  ;;  %v2278_v47 = vand.u32 2147483647, %v3068_v23  ;;  %v2279_v38 = vand.u32 2147483647, %v3069_v7  ;;  %v2280_v18 = vand.u32 2147483647, %v3070_v45 }
 0x28c   :  { %v2252_v1 = vmul.f32 %v4397_v63, %v2245_v60  ;;  %v2281_v28 = vand.u32 2147483647, %v3071_v55  ;;  %v2282_v30 = vand.u32 2147483647, %v3072_v32  ;;  %v2283_v12 = vsub.f32 1.0, %v2276_v13 }
 0x28d   :  { %v2256_v56 = vadd.f32 %v2255_v33, %v2250_v4  ;;  %v2284_v19 = vsub.f32 1.0, %v2277_v44  ;;  %v2285_v58 = vsub.f32 1.0, %v2278_v47  ;;  %v2286_v27 = vsub.f32 1.0, %v2279_v38 }
 0x28e   :  { %v4605_v8 = vadd.f32 %v2209_v29, %v2208_v51  ;;  %v2287_v52 = vsub.f32 1.0, %v2280_v18  ;;  %v2288_v11 = vsub.f32 1.0, %v2281_v28  ;;  %v2289_v57 = vsub.f32 1.0, %v2282_v30 }
 0x28f   :  { %v2257_v24 = vadd.f32 %v2256_v56, %v2251_v31  ;;  %v2290_v0 = vmax.f32 %v2283_v12, 0.0  ;;  %v2291_v41 = vmax.f32 %v2284_v19, 0.0  ;;  %v2292_v59 = vmax.f32 %v2285_v58, 0.0  ;;  %v2062_v58 = vld [vmem:[%s4888_s0 + $0x25] sm:$0x1] }
 0x290   :  { %v4607_v40 = vsub.f32 %v1911_v36, %v1961_v53  ;;  %v4609_v35 = vmul.f32 %v2011_v42, %v2010_v3  ;;  %v2258_v14 = vsel %vm166_vm0, %v2252_v1, 0.0  ;;  %v2293_v60 = vmax.f32 %v2286_v27, 0.0 }
 0x291   :  { %v2294_v39 = vmax.f32 %v2287_v52, 0.0  ;;  %v2296_v61 = vmax.f32 %v2289_v57, 0.0  ;;  %v2297_v5 = vmul.f32 %v4341_v20, %v2290_v0  ;;  %v2298_v51 = vmul.f32 %v4380_v17, %v2291_v41 }
 0x292   :  { %v2061_v54 = vadd.f32 %v2060_v43, %v4559_v50  ;;  %v2111_v29 = vrot.slane %v4587_v37, 1  ;;  %v4617_v22 = vadd.f32 %v2160_v34, %v4574_v15  ;;  %v2211_v36 = vrot.slane %v4605_v8, 2 }
 0x293   :  { %v2259_v53 = vadd.f32 %v2258_v14, %v2257_v24  ;;  %v2295_v3 = vmax.f32 %v2288_v11, 0.0  ;;  %v2299_v23 = vmul.f32 %v4350_v62, %v2292_v59  ;;  %v2304_v7 = vadd.f32 %v2298_v51, %v2297_v5 }
 0x294   :  { %v2300_v4 = vmul.f32 %v4385_v10, %v2293_v60  ;;  %v3073_v2 = vadd.f32 -43.0, %v3367_v48  ;;  %v3074_v45 = vadd.f32 -43.0, %v3401_v25  ;;  %v3075_v50 = vadd.f32 -43.0, %v3369_v49 }
 0x295   :  { %v2301_v43 = vmul.f32 %v4321_v6, %v2294_v39  ;;  %v2303_v15 = vmul.f32 %v4397_v63, %v2296_v61  ;;  %v2305_v34 = vadd.f32 %v2304_v7, %v2299_v23  ;;  %v3076_v55 = vadd.f32 -43.0, %v3403_v26 }
 0x296   :  { %v3077_v31 = vadd.f32 -43.0, %v3346_v16  ;;  %v3078_v32 = vadd.f32 -43.0, %v3351_v21  ;;  %v3079_v13 = vadd.f32 -43.0, %v3422_v9  ;;  %v2327_v44 = vand.u32 2147483647, %v3073_v2 }
 0x297   :  { %v2260_v33 = vrot.slane %v2259_v53, 4  ;;  %v2306_v47 = vadd.f32 %v2305_v34, %v2300_v4  ;;  %v2328_v38 = vand.u32 2147483647, %v3074_v45  ;;  %v2329_v18 = vand.u32 2147483647, %v3075_v50 }
 0x298   :  { %v2302_v1 = vmul.f32 %v4329_v46, %v2295_v3  ;;  %v2330_v28 = vand.u32 2147483647, %v3076_v55  ;;  %v2331_v6 = vand.u32 2147483647, %v3077_v31  ;;  %v2332_v30 = vand.u32 2147483647, %v3078_v32 }
 0x299   :  { %v2307_v12 = vadd.f32 %v2306_v47, %v2301_v43  ;;  %v2309_v42 = vsel %vm166_vm0, %v2303_v15, 0.0  ;;  %v2333_v56 = vand.u32 2147483647, %v3079_v13  ;;  %v2334_v19 = vsub.f32 1.0, %v2327_v44 }
 0x29a   :  { %v2335_v27 = vsub.f32 1.0, %v2328_v38  ;;  %v2336_v52 = vsub.f32 1.0, %v2329_v18  ;;  %v2337_v11 = vsub.f32 1.0, %v2330_v28  ;;  %v2338_v57 = vsub.f32 1.0, %v2331_v6 }
 0x29b   :  { %v4636_v24 = vadd.f32 %v2260_v33, %v2259_v53  ;;  %v2308_v0 = vadd.f32 %v2307_v12, %v2302_v1  ;;  %v2339_v46 = vsub.f32 1.0, %v2332_v30  ;;  %v2340_v41 = vsub.f32 1.0, %v2333_v56 }
 0x29c   :  { %v2013_v59 = vsub.f32 %v4607_v40, %v4609_v35  ;;  %v2341_v14 = vmax.f32 %v2334_v19, 0.0  ;;  %v2342_v60 = vmax.f32 %v2335_v27, 0.0  ;;  %v2343_v39 = vmax.f32 %v2336_v52, 0.0  ;;  %v2113_v52 = vld [vmem:[%s4888_s0 + $0x26] sm:$0x1] }
 0x29d   :  { %v2063_v61 = vmul.f32 %v2062_v58, %v2061_v54  ;;  %v2310_v5 = vadd.f32 %v2309_v42, %v2308_v0  ;;  %v2344_v51 = vmax.f32 %v2337_v11, 0.0  ;;  %v2345_v3 = vmax.f32 %v2338_v57, 0.0 }
 0x29e   :  { %v2112_v23 = vadd.f32 %v2111_v29, %v4587_v37  ;;  %v2346_v7 = vmax.f32 %v2339_v46, 0.0  ;;  %v2348_v4 = vmul.f32 %v4341_v20, %v2341_v14  ;;  %v2349_v53 = vmul.f32 %v4380_v17, %v2342_v60  ;;  %v4651_v29 = vld [vmem:[#allocation2 + $0x20] sm:$0xff] }
 0x29f   :  { %v2162_v2 = vrot.slane %v4617_v22, 1  ;;  %v4645_v45 = vadd.f32 %v2211_v36, %v4605_v8  ;;  %v2262_v40 = vrot.slane %v4636_v24, 2  ;;  %v2347_v35 = vmax.f32 %v2340_v41, 0.0  ;;  %v4656_v36 = vld [vmem:[#allocation2 + $0x28] sm:$0xff] }
 0x2a0   :  { %v2311_v50 = vrot.slane %v2310_v5, 4  ;;  %v2350_v54 = vmul.f32 %v4350_v62, %v2343_v39  ;;  %v2355_v43 = vadd.f32 %v2349_v53, %v2348_v4  ;;  %v3080_v15 = vadd.f32 -44.0, %v3367_v48 }
 0x2a1   :  { %v2351_v37 = vmul.f32 %v4385_v10, %v2344_v51  ;;  %v2352_v20 = vmul.f32 %v4651_v29, %v2345_v3  ;;  %v3081_v34 = vadd.f32 -44.0, %v3401_v25  ;;  %v3082_v8 = vadd.f32 -44.0, %v3369_v49 }
 0x2a2   :  { %v2353_v55 = vmul.f32 %v4656_v36, %v2346_v7  ;;  %v2356_v31 = vadd.f32 %v2355_v43, %v2350_v54  ;;  %v3083_v62 = vadd.f32 -44.0, %v3403_v26  ;;  %v3084_v32 = vadd.f32 -44.0, %v3346_v16  ;;  %v4679_v43 = vld [vmem:[#allocation2] sm:$0xff] }
 0x2a3   :  { %v2354_v13 = vmul.f32 %v4397_v63, %v2347_v35  ;;  %v3085_v44 = vadd.f32 -44.0, %v3351_v21  ;;  %v3086_v33 = vadd.f32 -44.0, %v3422_v9  ;;  %v2378_v47 = vand.u32 2147483647, %v3080_v15 }
 0x2a4   :  { %v2357_v38 = vadd.f32 %v2356_v31, %v2351_v37  ;;  %v2379_v18 = vand.u32 2147483647, %v3081_v34  ;;  %v2380_v1 = vand.u32 2147483647, %v3082_v8  ;;  %v2381_v28 = vand.u32 2147483647, %v3083_v62 }
 0x2a5   :  { %v4664_v6 = vadd.f32 %v2311_v50, %v2310_v5  ;;  %v2382_v30 = vand.u32 2147483647, %v3084_v32  ;;  %v2383_v12 = vand.u32 2147483647, %v3085_v44  ;;  %v2384_v42 = vand.u32 2147483647, %v3086_v33 }
 0x2a6   :  { %v2358_v56 = vadd.f32 %v2357_v38, %v2352_v20  ;;  %v2385_v19 = vsub.f32 1.0, %v2378_v47  ;;  %v2386_v58 = vsub.f32 1.0, %v2379_v18  ;;  %v2387_v27 = vsub.f32 1.0, %v2380_v1  ;;  %v4684_v20 = vld [vmem:[#allocation2 + $0x10] sm:$0xff] }
 0x2a7   :  { %v2360_v11 = vsel %vm166_vm0, %v2354_v13, 0.0  ;;  %v2388_v57 = vsub.f32 1.0, %v2381_v28  ;;  %v2389_v0 = vsub.f32 1.0, %v2382_v30  ;;  %v2390_v46 = vsub.f32 1.0, %v2383_v12 }
 0x2a8   :  { %v2359_v41 = vadd.f32 %v2358_v56, %v2353_v55  ;;  %v2391_v14 = vsub.f32 1.0, %v2384_v42  ;;  %v2392_v60 = vmax.f32 %v2385_v19, 0.0  ;;  %v2393_v39 = vmax.f32 %v2386_v58, 0.0  ;;  %v2164_v58 = vld [vmem:[%s4888_s0 + $0x27] sm:$0x1] }
 0x2a9   :  { %v4670_v5 = vsub.f32 %v2013_v59, %v2063_v61  ;;  %v2394_v51 = vmax.f32 %v2387_v27, 0.0  ;;  %v2395_v3 = vmax.f32 %v2388_v57, 0.0  ;;  %v4672_v7 = vmul.f32 %v2113_v52, %v2112_v23 }
 0x2aa   :  { %v2163_v4 = vadd.f32 %v2162_v2, %v4617_v22  ;;  %v2361_v53 = vadd.f32 %v2360_v11, %v2359_v41  ;;  %v2396_v35 = vmax.f32 %v2389_v0, 0.0  ;;  %v2213_v50 = vrot.slane %v4645_v45, 1 }
 0x2ab   :  { %v4677_v54 = vadd.f32 %v2262_v40, %v4636_v24  ;;  %v2399_v15 = vmul.f32 %v4679_v43, %v2392_v60  ;;  %v2400_v59 = vmul.f32 %v4380_v17, %v2393_v39  ;;  %v2313_v61 = vrot.slane %v4664_v6, 2 }
 0x2ac   :  { %v2397_v37 = vmax.f32 %v2390_v46, 0.0  ;;  %v2398_v23 = vmax.f32 %v2391_v14, 0.0  ;;  %v2401_v22 = vmul.f32 %v4684_v20, %v2394_v51  ;;  %v2402_v2 = vmul.f32 %v4385_v10, %v2395_v3 }
 0x2ad   :  { %v2406_v34 = vadd.f32 %v2400_v59, %v2399_v15  ;;  %v3087_v24 = vadd.f32 -45.0, %v3367_v48  ;;  %v3088_v40 = vadd.f32 -45.0, %v3401_v25  ;;  %v2362_v8 = vrot.slane %v2361_v53, 4 }
 0x2ae   :  { %v2403_v55 = vmul.f32 %v4651_v29, %v2396_v35  ;;  %v3089_v17 = vadd.f32 -45.0, %v3369_v49  ;;  %v3090_v31 = vadd.f32 -45.0, %v3403_v26  ;;  %v3091_v32 = vadd.f32 -45.0, %v3346_v16 }
 0x2af   :  { %v2407_v62 = vadd.f32 %v2406_v34, %v2401_v22  ;;  %v3092_v13 = vadd.f32 -45.0, %v3351_v21  ;;  %v3093_v44 = vadd.f32 -45.0, %v3422_v9  ;;  %v2404_v10 = vmul.f32 %v4656_v36, %v2397_v37  ;;  %v4708_v22 = vld [vmem:[#allocation2 + $0x8] sm:$0xff] }
 0x2b0   :  { %v2405_v33 = vmul.f32 %v4397_v63, %v2398_v23  ;;  %v2429_v47 = vand.u32 2147483647, %v3087_v24  ;;  %v2430_v38 = vand.u32 2147483647, %v3088_v40  ;;  %v2431_v1 = vand.u32 2147483647, %v3089_v17 }
 0x2b1   :  { %v2408_v18 = vadd.f32 %v2407_v62, %v2402_v2  ;;  %v2432_v28 = vand.u32 2147483647, %v3090_v31  ;;  %v2433_v30 = vand.u32 2147483647, %v3091_v32  ;;  %v4698_v12 = vadd.f32 %v2362_v8, %v2361_v53  ;;  %v4718_v8 = vld [vmem:[#allocation2 + $0x18] sm:$0xff] }
 0x2b2   :  { %v2434_v42 = vand.u32 2147483647, %v3092_v13  ;;  %v2435_v56 = vand.u32 2147483647, %v3093_v44  ;;  %v2436_v19 = vsub.f32 1.0, %v2429_v47  ;;  %v2437_v52 = vsub.f32 1.0, %v2430_v38 }
 0x2b3   :  { %v2409_v27 = vadd.f32 %v2408_v18, %v2403_v55  ;;  %v2438_v11 = vsub.f32 1.0, %v2431_v1  ;;  %v2439_v57 = vsub.f32 1.0, %v2432_v28  ;;  %v2411_v63 = vsel %vm166_vm0, %v2405_v33, 0.0  ;;  %v4724_v62 = vld [vmem:[#allocation2 + $0x30] sm:$0x7] }
 0x2b4   :  { %v2440_v0 = vsub.f32 1.0, %v2433_v30  ;;  %v2441_v46 = vsub.f32 1.0, %v2434_v42  ;;  %v2442_v41 = vsub.f32 1.0, %v2435_v56  ;;  %v2443_v60 = vmax.f32 %v2436_v19, 0.0 }
 0x2b5   :  { %v2410_v14 = vadd.f32 %v2409_v27, %v2404_v10  ;;  %v2444_v39 = vmax.f32 %v2437_v52, 0.0  ;;  %v2445_v51 = vmax.f32 %v2438_v11, 0.0  ;;  %v2115_v3 = vsub.f32 %v4670_v5, %v4672_v7 }
 0x2b6   :  { %v2165_v53 = vmul.f32 %v2164_v58, %v2163_v4  ;;  %v2214_v35 = vadd.f32 %v2213_v50, %v4645_v45  ;;  %v2446_v15 = vmax.f32 %v2439_v57, 0.0  ;;  %v2449_v37 = vmax.f32 %v2442_v41, 0.0 }
 0x2b7   :  { %v2412_v59 = vadd.f32 %v2411_v63, %v2410_v14  ;;  %v2450_v23 = vmul.f32 %v4679_v43, %v2443_v60  ;;  %v2451_v2 = vmul.f32 %v4708_v22, %v2444_v39  ;;  %v2264_v34 = vrot.slane %v4677_v54, 1  ;;  %v2215_v63 = vld [vmem:[%s4888_s0 + $0x28] sm:$0x1] }
 0x2b8   :  { %v4713_v24 = vadd.f32 %v2313_v61, %v4664_v6  ;;  %v2364_v40 = vrot.slane %v4698_v12, 2  ;;  %v3094_v5 = vadd.f32 -46.0, %v3367_v48  ;;  %v2447_v7 = vmax.f32 %v2440_v0, 0.0 }
 0x2b9   :  { %v2448_v45 = vmax.f32 %v2441_v46, 0.0  ;;  %v2452_v4 = vmul.f32 %v4684_v20, %v2445_v51  ;;  %v2457_v50 = vadd.f32 %v2451_v2, %v2450_v23  ;;  %v2453_v55 = vmul.f32 %v4718_v8, %v2446_v15 }
 0x2ba   :  { %v3095_v17 = vadd.f32 -46.0, %v3401_v25  ;;  %v3096_v31 = vadd.f32 -46.0, %v3369_v49  ;;  %v3097_v6 = vadd.f32 -46.0, %v3403_v26  ;;  %v2413_v61 = vrot.slane %v2412_v59, 4 }
 0x2bb   :  { %v2456_v32 = vmul.f32 %v4724_v62, %v2449_v37  ;;  %v2458_v13 = vadd.f32 %v2457_v50, %v2452_v4  ;;  %v3098_v44 = vadd.f32 -46.0, %v3346_v16  ;;  %v3099_v10 = vadd.f32 -46.0, %v3351_v21 }
 0x2bc   :  { %v3100_v33 = vadd.f32 -46.0, %v3422_v9  ;;  %v2480_v47 = vand.u32 2147483647, %v3094_v5  ;;  %v2481_v38 = vand.u32 2147483647, %v3095_v17  ;;  %v2454_v18 = vmul.f32 %v4651_v29, %v2447_v7 }
 0x2bd   :  { %v2459_v1 = vadd.f32 %v2458_v13, %v2453_v55  ;;  %v2482_v28 = vand.u32 2147483647, %v3096_v31  ;;  %v2483_v30 = vand.u32 2147483647, %v3097_v6  ;;  %v2455_v42 = vmul.f32 %v4656_v36, %v2448_v45 }
 0x2be   :  { %v2484_v56 = vand.u32 2147483647, %v3098_v44  ;;  %v2485_v19 = vand.u32 2147483647, %v3099_v10  ;;  %v2486_v58 = vand.u32 2147483647, %v3100_v33  ;;  %v4732_v27 = vadd.f32 %v2413_v61, %v2412_v59 }
 0x2bf   :  { %v2460_v52 = vadd.f32 %v2459_v1, %v2454_v18  ;;  %v2487_v11 = vsub.f32 1.0, %v2480_v47  ;;  %v2488_v57 = vsub.f32 1.0, %v2481_v38  ;;  %v2462_v0 = vsel %vm166_vm0, %v2456_v32, 0.0 }
 0x2c0   :  { %v2489_v46 = vsub.f32 1.0, %v2482_v28  ;;  %v2490_v41 = vsub.f32 1.0, %v2483_v30  ;;  %v2491_v14 = vsub.f32 1.0, %v2484_v56  ;;  %v2492_v39 = vsub.f32 1.0, %v2485_v19 }
 0x2c1   :  { %v2461_v60 = vadd.f32 %v2460_v52, %v2455_v42  ;;  %v2493_v51 = vsub.f32 1.0, %v2486_v58  ;;  %v2494_v15 = vmax.f32 %v2487_v11, 0.0  ;;  %v4738_v37 = vsub.f32 %v2115_v3, %v2165_v53 }
 0x2c2   :  { %v2495_v59 = vmax.f32 %v2488_v57, 0.0  ;;  %v2496_v23 = vmax.f32 %v2489_v46, 0.0  ;;  %v4740_v2 = vmul.f32 %v2215_v63, %v2214_v35  ;;  %v2265_v5 = vadd.f32 %v2264_v34, %v4677_v54  ;;  %v2266_v63 = vld [vmem:[%s4888_s0 + $0x29] sm:$0x1] }
 0x2c3   :  { %v2463_v7 = vadd.f32 %v2462_v0, %v2461_v60  ;;  %v2497_v45 = vmax.f32 %v2490_v41, 0.0  ;;  %v2315_v4 = vrot.slane %v4713_v24, 1  ;;  %v2498_v50 = vmax.f32 %v2491_v14, 0.0 }
 0x2c4   :  { %v2501_v55 = vmul.f32 %v4679_v43, %v2494_v15  ;;  %v2502_v17 = vmul.f32 %v4708_v22, %v2495_v59  ;;  %v4747_v31 = vadd.f32 %v2364_v40, %v4698_v12  ;;  %v2415_v3 = vrot.slane %v4732_v27, 2 }
 0x2c5   :  { %v2499_v53 = vmax.f32 %v2492_v39, 0.0  ;;  %v2500_v6 = vmax.f32 %v2493_v51, 0.0  ;;  %v2503_v35 = vmul.f32 %v4684_v20, %v2496_v23  ;;  %v3101_v54 = vadd.f32 -47.0, %v3367_v48 }
 0x2c6   :  { %v2508_v61 = vadd.f32 %v2502_v17, %v2501_v55  ;;  %v3102_v34 = vadd.f32 -47.0, %v3401_v25  ;;  %v2464_v32 = vrot.slane %v2463_v7, 4  ;;  %v2504_v13 = vmul.f32 %v4718_v8, %v2497_v45 }
 0x2c7   :  { %v3103_v44 = vadd.f32 -47.0, %v3369_v49  ;;  %v3104_v10 = vadd.f32 -47.0, %v3403_v26  ;;  %v2505_v12 = vmul.f32 %v4651_v29, %v2498_v50  ;;  %v3105_v33 = vadd.f32 -47.0, %v3346_v16 }
 0x2c8   :  { %v2509_v40 = vadd.f32 %v2508_v61, %v2503_v35  ;;  %v3106_v47 = vadd.f32 -47.0, %v3351_v21  ;;  %v2506_v38 = vmul.f32 %v4656_v36, %v2499_v53  ;;  %v3107_v18 = vadd.f32 -47.0, %v3422_v9 }
 0x2c9   :  { %v2531_v1 = vand.u32 2147483647, %v3101_v54  ;;  %v2532_v28 = vand.u32 2147483647, %v3102_v34  ;;  %v2533_v42 = vand.u32 2147483647, %v3103_v44  ;;  %v2507_v58 = vmul.f32 %v4724_v62, %v2500_v6 }
 0x2ca   :  { %v2510_v30 = vadd.f32 %v2509_v40, %v2504_v13  ;;  %v2534_v56 = vand.u32 2147483647, %v3104_v10  ;;  %v2535_v19 = vand.u32 2147483647, %v3105_v33  ;;  %v2536_v52 = vand.u32 2147483647, %v3106_v47 }
 0x2cb   :  { %v2537_v11 = vand.u32 2147483647, %v3107_v18  ;;  %v2538_v57 = vsub.f32 1.0, %v2531_v1  ;;  %v2539_v46 = vsub.f32 1.0, %v2532_v28  ;;  %v2540_v41 = vsub.f32 1.0, %v2533_v42 }
 0x2cc   :  { %v2511_v0 = vadd.f32 %v2510_v30, %v2505_v12  ;;  %v2541_v14 = vsub.f32 1.0, %v2534_v56  ;;  %v4765_v60 = vadd.f32 %v2464_v32, %v2463_v7  ;;  %v2542_v39 = vsub.f32 1.0, %v2535_v19 }
 0x2cd   :  { %v2543_v51 = vsub.f32 1.0, %v2536_v52  ;;  %v2544_v15 = vsub.f32 1.0, %v2537_v11  ;;  %v2545_v23 = vmax.f32 %v2538_v57, 0.0  ;;  %v2546_v45 = vmax.f32 %v2539_v46, 0.0 }
 0x2ce   :  { %v2512_v59 = vadd.f32 %v2511_v0, %v2506_v38  ;;  %v2547_v50 = vmax.f32 %v2540_v41, 0.0  ;;  %v2217_v55 = vsub.f32 %v4738_v37, %v4740_v2  ;;  %v2267_v17 = vmul.f32 %v2266_v63, %v2265_v5 }
 0x2cf   :  { %v2513_v53 = vsel %vm166_vm0, %v2507_v58, 0.0  ;;  %v2548_v6 = vmax.f32 %v2541_v14, 0.0  ;;  %v2549_v35 = vmax.f32 %v2542_v39, 0.0  ;;  %v2551_v61 = vmax.f32 %v2544_v15, 0.0  ;;  %v2317_v14 = vld [vmem:[%s4888_s0 + $0x2a] sm:$0x1] }
 0x2d0   :  { %v2552_v54 = vmul.f32 %v4679_v43, %v2545_v23  ;;  %v2553_v7 = vmul.f32 %v4708_v22, %v2546_v45  ;;  %v2316_v34 = vadd.f32 %v2315_v4, %v4713_v24  ;;  %v2366_v32 = vrot.slane %v4747_v31, 1 }
 0x2d1   :  { %v4775_v13 = vadd.f32 %v2415_v3, %v4732_v27  ;;  %v2466_v44 = vrot.slane %v4765_v60, 2  ;;  %v2514_v37 = vadd.f32 %v2513_v53, %v2512_v59  ;;  %v2550_v2 = vmax.f32 %v2543_v51, 0.0 }
 0x2d2   :  { %v2554_v5 = vmul.f32 %v4684_v20, %v2547_v50  ;;  %v2559_v10 = vadd.f32 %v2553_v7, %v2552_v54  ;;  %v2555_v12 = vmul.f32 %v4718_v8, %v2548_v6  ;;  %v3108_v40 = vadd.f32 -48.0, %v3367_v48 }
 0x2d3   :  { %v3109_v33 = vadd.f32 -48.0, %v3401_v25  ;;  %v3110_v24 = vadd.f32 -48.0, %v3369_v49  ;;  %v2556_v4 = vmul.f32 %v4651_v29, %v2549_v35  ;;  %v2558_v27 = vmul.f32 %v4724_v62, %v2551_v61 }
 0x2d4   :  { %v2560_v3 = vadd.f32 %v2559_v10, %v2554_v5  ;;  %v3111_v47 = vadd.f32 -48.0, %v3403_v26  ;;  %v3112_v38 = vadd.f32 -48.0, %v3346_v16  ;;  %v3113_v18 = vadd.f32 -48.0, %v3351_v21 }
 0x2d5   :  { %v3114_v1 = vadd.f32 -48.0, %v3422_v9  ;;  %v2582_v28 = vand.u32 2147483647, %v3108_v40  ;;  %v2515_v30 = vrot.slane %v2514_v37, 4  ;;  %v2583_v56 = vand.u32 2147483647, %v3109_v33 }
 0x2d6   :  { %v2561_v42 = vadd.f32 %v2560_v3, %v2555_v12  ;;  %v2584_v19 = vand.u32 2147483647, %v3110_v24  ;;  %v2557_v58 = vmul.f32 %v4656_v36, %v2550_v2  ;;  %v2585_v52 = vand.u32 2147483647, %v3111_v47 }
 0x2d7   :  { %v2586_v11 = vand.u32 2147483647, %v3112_v38  ;;  %v2587_v57 = vand.u32 2147483647, %v3113_v18  ;;  %v2564_v0 = vsel %vm166_vm0, %v2558_v27, 0.0  ;;  %v2589_v41 = vsub.f32 1.0, %v2582_v28 }
 0x2d8   :  { %v2562_v63 = vadd.f32 %v2561_v42, %v2556_v4  ;;  %v2588_v46 = vand.u32 2147483647, %v3114_v1  ;;  %v2590_v39 = vsub.f32 1.0, %v2583_v56  ;;  %v2591_v51 = vsub.f32 1.0, %v2584_v19 }
 0x2d9   :  { %v2592_v15 = vsub.f32 1.0, %v2585_v52  ;;  %v2593_v59 = vsub.f32 1.0, %v2586_v11  ;;  %v4794_v23 = vadd.f32 %v2515_v30, %v2514_v37  ;;  %v2594_v50 = vsub.f32 1.0, %v2587_v57 }
 0x2da   :  { %v2563_v45 = vadd.f32 %v2562_v63, %v2557_v58  ;;  %v2595_v53 = vsub.f32 1.0, %v2588_v46  ;;  %v4796_v6 = vsub.f32 %v2217_v55, %v2267_v17  ;;  %v2596_v35 = vmax.f32 %v2589_v41, 0.0 }
 0x2db   :  { %v2597_v61 = vmax.f32 %v2590_v39, 0.0  ;;  %v2598_v54 = vmax.f32 %v2591_v51, 0.0  ;;  %v4798_v7 = vmul.f32 %v2317_v14, %v2316_v34  ;;  %v2599_v5 = vmax.f32 %v2592_v15, 0.0 }
 0x2dc   :  { %v2565_v2 = vadd.f32 %v2564_v0, %v2563_v45  ;;  %v2600_v10 = vmax.f32 %v2593_v59, 0.0  ;;  %v2367_v12 = vadd.f32 %v2366_v32, %v4747_v31  ;;  %v2601_v40 = vmax.f32 %v2594_v50, 0.0  ;;  %v2368_v59 = vld [vmem:[%s4888_s0 + $0x2b] sm:$0x1] }
 0x2dd   :  { %v2603_v33 = vmul.f32 %v4679_v43, %v2596_v35  ;;  %v2604_v37 = vmul.f32 %v4708_v22, %v2597_v61  ;;  %v2417_v24 = vrot.slane %v4775_v13, 1  ;;  %v4805_v55 = vadd.f32 %v2466_v44, %v4765_v60 }
 0x2de   :  { %v2517_v17 = vrot.slane %v4794_v23, 2  ;;  %v2602_v4 = vmax.f32 %v2595_v53, 0.0  ;;  %v2566_v34 = vrot.slane %v2565_v2, 4  ;;  %v2605_v27 = vmul.f32 %v4684_v20, %v2598_v54 }
 0x2df   :  { %v2610_v3 = vadd.f32 %v2604_v37, %v2603_v33  ;;  %v3115_v47 = vadd.f32 -49.0, %v3367_v48  ;;  %v2606_v31 = vmul.f32 %v4718_v8, %v2599_v5  ;;  %v2607_v32 = vmul.f32 %v4651_v29, %v2600_v10 }
 0x2e0   :  { %v3116_v38 = vadd.f32 -49.0, %v3401_v25  ;;  %v3117_v18 = vadd.f32 -49.0, %v3369_v49  ;;  %v2608_v60 = vmul.f32 %v4656_v36, %v2601_v40  ;;  %v3118_v1 = vadd.f32 -49.0, %v3403_v26 }
 0x2e1   :  { %v2611_v44 = vadd.f32 %v2610_v3, %v2605_v27  ;;  %v3119_v28 = vadd.f32 -49.0, %v3346_v16  ;;  %v2609_v30 = vmul.f32 %v4724_v62, %v2602_v4  ;;  %v3120_v42 = vadd.f32 -49.0, %v3351_v21 }
 0x2e2   :  { %v3121_v56 = vadd.f32 -49.0, %v3422_v9  ;;  %v2633_v19 = vand.u32 2147483647, %v3115_v47  ;;  %v2634_v52 = vand.u32 2147483647, %v3116_v38  ;;  %v4820_v63 = vadd.f32 %v2566_v34, %v2565_v2 }
 0x2e3   :  { %v2612_v58 = vadd.f32 %v2611_v44, %v2606_v31  ;;  %v2635_v11 = vand.u32 2147483647, %v3117_v18  ;;  %v2636_v57 = vand.u32 2147483647, %v3118_v1  ;;  %v2637_v0 = vand.u32 2147483647, %v3119_v28 }
 0x2e4   :  { %v2638_v46 = vand.u32 2147483647, %v3120_v42  ;;  %v2639_v41 = vand.u32 2147483647, %v3121_v56  ;;  %v2640_v39 = vsub.f32 1.0, %v2633_v19  ;;  %v2641_v51 = vsub.f32 1.0, %v2634_v52 }
 0x2e5   :  { %v2613_v14 = vadd.f32 %v2612_v58, %v2607_v32  ;;  %v2642_v15 = vsub.f32 1.0, %v2635_v11  ;;  %v2615_v45 = vsel %vm166_vm0, %v2609_v30, 0.0  ;;  %v2643_v50 = vsub.f32 1.0, %v2636_v57 }
 0x2e6   :  { %v2644_v53 = vsub.f32 1.0, %v2637_v0  ;;  %v2645_v35 = vsub.f32 1.0, %v2638_v46  ;;  %v2646_v54 = vsub.f32 1.0, %v2639_v41  ;;  %v2647_v2 = vmax.f32 %v2640_v39, 0.0 }
 0x2e7   :  { %v2614_v61 = vadd.f32 %v2613_v14, %v2608_v60  ;;  %v2648_v5 = vmax.f32 %v2641_v51, 0.0  ;;  %v2319_v10 = vsub.f32 %v4796_v6, %v4798_v7  ;;  %v2649_v40 = vmax.f32 %v2642_v15, 0.0 }
 0x2e8   :  { %v2369_v33 = vmul.f32 %v2368_v59, %v2367_v12  ;;  %v2418_v37 = vadd.f32 %v2417_v24, %v4775_v13  ;;  %v2650_v34 = vmax.f32 %v2643_v50, 0.0  ;;  %v2468_v27 = vrot.slane %v4805_v55, 1 }
 0x2e9   :  { %v2616_v4 = vadd.f32 %v2615_v45, %v2614_v61  ;;  %v4831_v3 = vadd.f32 %v2517_v17, %v4794_v23  ;;  %v2654_v47 = vmul.f32 %v4679_v43, %v2647_v2  ;;  %v2655_v31 = vmul.f32 %v4708_v22, %v2648_v5 }
 0x2ea   :  { %v2568_v32 = vrot.slane %v4820_v63, 2  ;;  %v2651_v38 = vmax.f32 %v2644_v53, 0.0  ;;  %v2652_v18 = vmax.f32 %v2645_v35, 0.0  ;;  %v2653_v6 = vmax.f32 %v2646_v54, 0.0 }
 0x2eb   :  { %v2656_v7 = vmul.f32 %v4684_v20, %v2649_v40  ;;  %v2661_v12 = vadd.f32 %v2655_v31, %v2654_v47  ;;  %v3122_v13 = vadd.f32 -50.0, %v3367_v48  ;;  %v3123_v24 = vadd.f32 -50.0, %v3401_v25 }
 0x2ec   :  { %v2617_v60 = vrot.slane %v2616_v4, 4  ;;  %v2657_v23 = vmul.f32 %v4718_v8, %v2650_v34  ;;  %v3124_v17 = vadd.f32 -50.0, %v3369_v49  ;;  %v3125_v44 = vadd.f32 -50.0, %v3403_v26 }
 0x2ed   :  { %v2662_v1 = vadd.f32 %v2661_v12, %v2656_v7  ;;  %v3126_v28 = vadd.f32 -50.0, %v3346_v16  ;;  %v3127_v30 = vadd.f32 -50.0, %v3351_v21  ;;  %v3128_v42 = vadd.f32 -50.0, %v3422_v9  ;;  %v2419_v16 = vld [vmem:[%s4888_s0 + $0x2c] sm:$0x1] }
 0x2ee   :  { %v2658_v56 = vmul.f32 %v4651_v29, %v2651_v38  ;;  %v2660_v48 = vmul.f32 %v4724_v62, %v2653_v6  ;;  %v2684_v19 = vand.u32 2147483647, %v3122_v13  ;;  %v2685_v25 = vand.u32 2147483647, %v3123_v24 }
 0x2ef   :  { %v2663_v58 = vadd.f32 %v2662_v1, %v2657_v23  ;;  %v2686_v52 = vand.u32 2147483647, %v3124_v17  ;;  %v2687_v11 = vand.u32 2147483647, %v3125_v44  ;;  %v2688_v57 = vand.u32 2147483647, %v3126_v28 }
 0x2f0   :  { %v2659_v49 = vmul.f32 %v4656_v36, %v2652_v18  ;;  %v2689_v26 = vand.u32 2147483647, %v3127_v30  ;;  %v2690_v0 = vand.u32 2147483647, %v3128_v42  ;;  %v2691_v46 = vsub.f32 1.0, %v2684_v19 }
 0x2f1   :  { %v2664_v21 = vadd.f32 %v2663_v58, %v2658_v56  ;;  %v2692_v9 = vsub.f32 1.0, %v2685_v25  ;;  %v2693_v41 = vsub.f32 1.0, %v2686_v52  ;;  %v2694_v14 = vsub.f32 1.0, %v2687_v11  ;;  %v2521_v23 = vld [vmem:[%s4888_s0 + $0x2e] sm:$0x1] }
 0x2f2   :  { %v2618_v39 = vadd.f32 %v2617_v60, %v2616_v4  ;;  %v2666_v51 = vsel %vm166_vm0, %v2660_v48, 0.0  ;;  %v2695_v15 = vsub.f32 1.0, %v2688_v57  ;;  %v2697_v59 = vsub.f32 1.0, %v2690_v0  ;;  %v2572_v25 = vld [vmem:[%s4888_s0 + $0x2f] sm:$0x1] }
 0x2f3   :  { %v2665_v45 = vadd.f32 %v2664_v21, %v2659_v49  ;;  %v2698_v50 = vmax.f32 %v2691_v46, 0.0  ;;  %v2699_v53 = vmax.f32 %v2692_v9, 0.0  ;;  %v2700_v35 = vmax.f32 %v2693_v41, 0.0  ;;  %v2674_v9 = vld [vmem:[%s4888_s0 + $0x31] sm:$0x1] }
 0x2f4   :  { %v2370_v61 = vsub.f32 %v2319_v10, %v2369_v33  ;;  %v2420_v54 = vmul.f32 %v2419_v16, %v2418_v37  ;;  %v2469_v2 = vadd.f32 %v2468_v27, %v4805_v55  ;;  %v2696_v5 = vsub.f32 1.0, %v2689_v26  ;;  %v2470_v10 = vld [vmem:[%s4888_s0 + $0x2d] sm:$0x1] }
 0x2f5   :  { %v2667_v40 = vadd.f32 %v2666_v51, %v2665_v45  ;;  %v2701_v34 = vmax.f32 %v2694_v14, 0.0  ;;  %v2705_v47 = vmul.f32 %v4679_v43, %v2698_v50  ;;  %v2706_v31 = vmul.f32 %v4708_v22, %v2699_v53  ;;  %v95_v53 = vld [vmem:[#allocation5 + $0x2] sm:$0x1] }
 0x2f6   :  { %v2519_v4 = vrot.slane %v4831_v3, 1  ;;  %v2569_v38 = vadd.f32 %v2568_v32, %v4820_v63  ;;  %v2619_v18 = vrot.slane %v2618_v39, 2  ;;  %v2704_v6 = vmax.f32 %v2697_v59, 0.0 }
 0x2f7   :  { %v2668_v33 = vrot.slane %v2667_v40, 4  ;;  %v2702_v37 = vmax.f32 %v2695_v15, 0.0  ;;  %v2707_v55 = vmul.f32 %v4684_v20, %v2700_v35  ;;  %v2712_v27 = vadd.f32 %v2706_v31, %v2705_v47  ;;  %v2725_v15 = vld [vmem:[%s4888_s0 + $0x32] sm:$0x1] }
 0x2f8   :  { %v2421_v7 = vsub.f32 %v2370_v61, %v2420_v54  ;;  %v2703_v43 = vmax.f32 %v2696_v5, 0.0  ;;  %v2708_v22 = vmul.f32 %v4718_v8, %v2701_v34  ;;  %v2471_v24 = vmul.f32 %v2470_v10, %v2469_v2 }
 0x2f9   :  { %v2669_v12 = vadd.f32 %v2668_v33, %v2667_v40  ;;  %v2713_v13 = vadd.f32 %v2712_v27, %v2707_v55  ;;  %v2520_v63 = vadd.f32 %v2519_v4, %v4831_v3  ;;  %v2570_v32 = vrot.slane %v2569_v38, 1 }
 0x2fa   :  { %v2711_v60 = vmul.f32 %v4724_v62, %v2704_v6  ;;  %v2620_v17 = vadd.f32 %v2619_v18, %v2618_v39  ;;  %v2709_v20 = vmul.f32 %v4651_v29, %v2702_v37  ;;  %v2472_v28 = vsub.f32 %v2421_v7, %v2471_v24 }
 0x2fb   :  { %v2670_v44 = vrot.slane %v2669_v12, 2  ;;  %v2714_v1 = vadd.f32 %v2713_v13, %v2708_v22  ;;  %v2710_v30 = vmul.f32 %v4656_v36, %v2703_v43  ;;  %v2522_v42 = vmul.f32 %v2521_v23, %v2520_v63  ;;  %v2623_v36 = vld [vmem:[%s4888_s0 + $0x30] sm:$0x1]  ;;  %s3281_s0 = smov [#allocation8]  }
 0x2fc   :  { %v2717_v56 = vsel %vm166_vm0, %v2711_v60, 0.0  ;;  %v2571_v3 = vadd.f32 %v2570_v32, %v2569_v38  ;;  %v2621_v48 = vrot.slane %v2620_v17, 1  ;;  %s2761_s12 = sshll.u32 %s3281_s0, 4  ;;  %s2762_s12 = int_to_ptr.vmem [resolvable:$true] %s2761_s12 }
 0x2fd   :  { %v2715_v8 = vadd.f32 %v2714_v1, %v2709_v20  ;;  %v2671_v19 = vadd.f32 %v2670_v44, %v2669_v12  ;;  %v2523_v58 = vsub.f32 %v2472_v28, %v2522_v42 }
 0x2fe   :  { %v2573_v11 = vmul.f32 %v2572_v25, %v2571_v3  ;;  %v2622_v29 = vadd.f32 %v2621_v48, %v2620_v17 }
 0x2ff   :  { %v2716_v62 = vadd.f32 %v2715_v8, %v2710_v30  ;;  %v2672_v57 = vrot.slane %v2671_v19, 1 }
 0x300   :  { %v2574_v26 = vsub.f32 %v2523_v58, %v2573_v11  ;;  %v2624_v46 = vmul.f32 %v2623_v36, %v2622_v29 }
 0x301   :  { %v2718_v52 = vadd.f32 %v2717_v56, %v2716_v62  ;;  %v2673_v16 = vadd.f32 %v2672_v57, %v2671_v19 }
 0x302   :  { %v2625_v41 = vsub.f32 %v2574_v26, %v2624_v46 }
 0x303   :  { %v2719_v49 = vrot.slane %v2718_v52, 4  ;;  %v2675_v39 = vmul.f32 %v2674_v9, %v2673_v16 }
 0x305   :  { %v2720_v0 = vadd.f32 %v2719_v49, %v2718_v52  ;;  %v2676_v59 = vsub.f32 %v2625_v41, %v2675_v39 }
 0x307   :  { %v2721_v21 = vrot.slane %v2720_v0, 2 }
 0x309   :  { %v2722_v14 = vadd.f32 %v2721_v21, %v2720_v0 }
 0x30b   :  { %v2723_v51 = vrot.slane %v2722_v14, 1 }
 0x30d   :  { %v2724_v45 = vadd.f32 %v2723_v51, %v2722_v14 }
 0x30f   :  { %v2726_v50 = vmul.f32 %v2725_v15, %v2724_v45 }
 0x311   :  { %v2727_v35 = vsub.f32 %v2676_v59, %v2726_v50 }
 0x313   :  { %v2729_v61 = vmul.f32 %v2727_v35, %v95_v53  ;;  %2728 = vst [vmem:[#allocation7] sm:$0x1] %v2727_v35 }
 0x314   :  { %2755 = dma.vmem_to_hbm [thread:$0]  %s2751_s11, 16, %s2753_s9, [#allocation4]  }
 0x315   :  { %v2732_v54 = vsel %vm2731_vm1, %v2729_v61, 0.0 }
 0x316   :  { %2733 = vadd.xlane.f32.xlu1 %v2732_v54 }
 0x389   :  { %v2734_v2 = vpop.xlane.xlu1 %2733 }
 0x38a   :  { %v2735_v5 = vrot.slane %v2734_v2, 4 }
 0x38c   :  { %v2736_v40 = vadd.f32 %v2735_v5, %v2734_v2 }
 0x38e   :  { %v2737_v34 = vrot.slane %v2736_v40, 2 }
 0x390   :  { %v2738_v47 = vadd.f32 %v2737_v34, %v2736_v40 }
 0x392   :  { %v2739_v31 = vrot.slane %v2738_v47, 1 }
 0x394   :  { %v2740_v4 = vadd.f32 %v2739_v31, %v2738_v47 }
 0x396   :  { %3129 = vpush %v2740_v4 }
 0x3c7   :  { %s3130_s4 = spop %3129 }
 0x3c8   :  { %v2742_v38 = vstv %s3130_s4 }
 0x3c9   :  { %2744 = vst.msk [vmem:[#allocation8] sm:$0x1] %vm2743_vm2, %v2742_v38 }
 0x3ca   :  { %2766 = dma.vmem_to_hbm [thread:$0]  %s2762_s12, 16, %s2764_s15, [#allocation9]  }
 0x3cb   :  { %3271 = dma.done.wait [#allocation4], 16  }
 0x3cc   :  { %3272 = vsyncadd [#allocation4], 4294967280 }
 0x3cd   :  { %3273 = dma.done.wait [#allocation9], 16  }
 0x3ce   :  { %3274 = vsyncadd [#allocation9], 4294967280 }
 0x3cf   :  { %2775 = vsyncpa [#allocation3], 1 }
 0x3d0   :  { %2776 = vsyncpa [#allocation6], 1 }
 0x3d1   :  { %2777 = vsyncpa [#allocation4], 1 }
 0x3d2   :  { %2778 = vsyncpa [#allocation9], 1 }

</bundles_post_ra>
